<compile_context>
chip_gen: v7x
topology: tpu7x:2x2x1
jax: 0.10.0
libtpu: 0.0.40
codegen_flags: <defaults>
</compile_context>

<pallas_src>
import functools

import jax
import jax.numpy as jnp
import numpy as np
from jax.experimental import pallas as pl
from jax.experimental.pallas import tpu as pltpu

EPS = 1e-5           # nn.BatchNorm2d default eps
LANE = 128           # lane width; channel / K padding target


def _round_up(x, m):
    return (x + m - 1) // m * m


# ----------------------------- VMEM / tiling --------------------------------
def _vmem_limit_bytes():
    cap = 128 * 1024 * 1024
    try:
        cap = int(getattr(pltpu.get_tpu_info(), "vmem_capacity_bytes", cap))
    except Exception:
        pass
    # v5e/v6e (128 MiB physical) -> 64 MiB scoped; v7x (64 MiB) -> 48 MiB.
    return min(64 * 1024 * 1024, (cap * 3) // 4)


def _choose_tile_m(m, k_cols, out_cols, weight_elems, budget):
    """Row tile for the matmul kernels.

    k_cols/out_cols: bf16 elements streamed per row (double-buffered);
    weight_elems: resident bf16 weight elements (double-buffered by pipeline).
    """
    per_row = 2 * 2 * (k_cols + out_cols)          # x2 double-buffer, x2 bytes
    fixed = 2 * 2 * weight_elems
    tile = max((budget - fixed) // per_row, 8)
    tile = min(tile, 1024)
    # keep >= ~4 grid steps when m allows (>= 2 pipelined steps per v7x core)
    tile = min(tile, max(128, -(-m // 4)))
    return max(8, (tile // 8) * 8)


def _ew_tile(m_pad, tile_m, cout_p, budget):
    """Larger row tile for the HBM-bound elementwise kernels (divides m_pad)."""
    nt = m_pad // tile_m
    cap_rows = min(2048, budget // max(16 * cout_p, 1))
    min_steps = min(4, nt)
    best = tile_m
    for d in range(1, nt + 1):
        if nt % d == 0 and tile_m * d <= cap_rows and nt // d >= min_steps:
            best = max(best, tile_m * d)
    return best


# ------------------------------- kernels -----------------------------------
def conv_stats_kernel(p_ref, w_ref, o_ref, sum_ref, sq_ref):
    # One (TILE_M, K) x (K, C) bf16 matmul, f32 accumulate; output stored bf16,
    # BN sum / sum-of-squares taken from the f32 accumulator (single pass).
    acc = jnp.dot(p_ref[...], w_ref[...], preferred_element_type=jnp.float32)
    o_ref[...] = acc.astype(o_ref.dtype)
    c = acc.shape[-1]
    sum_ref[...] = jnp.broadcast_to(jnp.sum(acc, axis=0, keepdims=True), (8, c))
    sq_ref[...] = jnp.broadcast_to(jnp.sum(acc * acc, axis=0, keepdims=True), (8, c))


def conv2_proj_stats_kernel(p_ref, w_ref, xs_ref, ws_ref,
                            o_ref, so_ref, sum_ref, sq_ref, ssum_ref, ssq_ref):
    # Main 3x3 conv (single matmul) + 1x1 projection shortcut conv + stats
    # for both, fused in one pass over the row tile.
    c = o_ref.shape[-1]
    main = jnp.dot(p_ref[...], w_ref[...], preferred_element_type=jnp.float32)
    sc = jnp.dot(xs_ref[...], ws_ref[...], preferred_element_type=jnp.float32)
    o_ref[...] = main.astype(o_ref.dtype)
    so_ref[...] = sc.astype(so_ref.dtype)
    sum_ref[...] = jnp.broadcast_to(jnp.sum(main, axis=0, keepdims=True), (8, c))
    sq_ref[...] = jnp.broadcast_to(jnp.sum(main * main, axis=0, keepdims=True), (8, c))
    ssum_ref[...] = jnp.broadcast_to(jnp.sum(sc, axis=0, keepdims=True), (8, c))
    ssq_ref[...] = jnp.broadcast_to(jnp.sum(sc * sc, axis=0, keepdims=True), (8, c))


def bn_relu_kernel(x_ref, scale_ref, shift_ref, o_ref):
    # Finalize BN (precomputed scale/shift) + ReLU; emits bf16 for conv2 input.
    y = x_ref[...].astype(jnp.float32) * scale_ref[...] + shift_ref[...]
    o_ref[...] = jnp.maximum(y, 0.0).astype(o_ref.dtype)


def final_proj_kernel(m_ref, s_ref, sc2_ref, sh2_ref, scs_ref, shs_ref, o_ref):
    # relu(bn2(conv2) + bn_s(conv1x1_s(x)))
    main = m_ref[...].astype(jnp.float32) * sc2_ref[...] + sh2_ref[...]
    sc = s_ref[...].astype(jnp.float32) * scs_ref[...] + shs_ref[...]
    o_ref[...] = jnp.maximum(main + sc, 0.0)


def final_id_kernel(m_ref, x_ref, sc2_ref, sh2_ref, o_ref):
    # relu(bn2(conv2) + x)   (identity shortcut; x tiled identically to output)
    main = m_ref[...].astype(jnp.float32) * sc2_ref[...] + sh2_ref[...]
    o_ref[...] = jnp.maximum(main + x_ref[...].astype(jnp.float32), 0.0)


# --------------------------- pallas_call wrappers ---------------------------
def _mosaic_params(vmem_limit):
    return pltpu.CompilerParams(
        dimension_semantics=("parallel",),       # split row tiles across TCs
        vmem_limit_bytes=int(vmem_limit),
    )


def _cost(flops, bytes_accessed):
    return pl.CostEstimate(flops=int(flops), transcendentals=0,
                           bytes_accessed=int(bytes_accessed))


def _conv_stats(patches, weights, tile_m, vmem_limit):
    m_pad, k = patches.shape
    c = weights.shape[1]
    nt = m_pad // tile_m
    flops = 2 * m_pad * k * c + 4 * m_pad * c
    bytes_acc = (patches.size + weights.size + m_pad * c) * 2 + 2 * nt * 8 * c * 4
    return pl.pallas_call(
        conv_stats_kernel,
        grid=(nt,),
        in_specs=[
            pl.BlockSpec((tile_m, k), lambda i: (i, 0)),
            pl.BlockSpec((k, c), lambda i: (0, 0)),          # resident weights
        ],
        out_specs=(
            pl.BlockSpec((tile_m, c), lambda i: (i, 0)),
            pl.BlockSpec((8, c), lambda i: (i, 0)),
            pl.BlockSpec((8, c), lambda i: (i, 0)),
        ),
        out_shape=(
            jax.ShapeDtypeStruct((m_pad, c), jnp.bfloat16),
            jax.ShapeDtypeStruct((nt * 8, c), jnp.float32),
            jax.ShapeDtypeStruct((nt * 8, c), jnp.float32),
        ),
        compiler_params=_mosaic_params(vmem_limit),
        cost_estimate=_cost(flops, bytes_acc),
    )(patches, weights)


def _conv2_proj_stats(patches, w2, xs, ws, tile_m, vmem_limit):
    m_pad, k2 = patches.shape
    c = w2.shape[1]
    kc = xs.shape[1]
    nt = m_pad // tile_m
    flops = 2 * m_pad * (k2 + kc) * c + 8 * m_pad * c
    bytes_acc = ((patches.size + w2.size + xs.size + ws.size + 2 * m_pad * c) * 2
                 + 4 * nt * 8 * c * 4)
    return pl.pallas_call(
        conv2_proj_stats_kernel,
        grid=(nt,),
        in_specs=[
            pl.BlockSpec((tile_m, k2), lambda i: (i, 0)),
            pl.BlockSpec((k2, c), lambda i: (0, 0)),
            pl.BlockSpec((tile_m, kc), lambda i: (i, 0)),
            pl.BlockSpec((kc, c), lambda i: (0, 0)),
        ],
        out_specs=(
            pl.BlockSpec((tile_m, c), lambda i: (i, 0)),
            pl.BlockSpec((tile_m, c), lambda i: (i, 0)),
            pl.BlockSpec((8, c), lambda i: (i, 0)),
            pl.BlockSpec((8, c), lambda i: (i, 0)),
            pl.BlockSpec((8, c), lambda i: (i, 0)),
            pl.BlockSpec((8, c), lambda i: (i, 0)),
        ),
        out_shape=(
            jax.ShapeDtypeStruct((m_pad, c), jnp.bfloat16),
            jax.ShapeDtypeStruct((m_pad, c), jnp.bfloat16),
            jax.ShapeDtypeStruct((nt * 8, c), jnp.float32),
            jax.ShapeDtypeStruct((nt * 8, c), jnp.float32),
            jax.ShapeDtypeStruct((nt * 8, c), jnp.float32),
            jax.ShapeDtypeStruct((nt * 8, c), jnp.float32),
        ),
        compiler_params=_mosaic_params(vmem_limit),
        cost_estimate=_cost(flops, bytes_acc),
    )(patches, w2, xs, ws)


def _bn_relu(conv_out, scale, shift, tile_m, vmem_limit):
    m_pad, c = conv_out.shape
    nt = m_pad // tile_m
    return pl.pallas_call(
        bn_relu_kernel,
        grid=(nt,),
        in_specs=[
            pl.BlockSpec((tile_m, c), lambda i: (i, 0)),
            pl.BlockSpec((1, c), lambda i: (0, 0)),
            pl.BlockSpec((1, c), lambda i: (0, 0)),
        ],
        out_specs=pl.BlockSpec((tile_m, c), lambda i: (i, 0)),
        out_shape=jax.ShapeDtypeStruct((m_pad, c), jnp.bfloat16),
        compiler_params=_mosaic_params(vmem_limit),
        cost_estimate=_cost(3 * m_pad * c, m_pad * c * 4 + 2 * c * 4),
    )(conv_out, scale, shift)


def _final_proj(main, sc, scale2, shift2, scale_s, shift_s, tile_m, vmem_limit):
    m_pad, c = main.shape
    nt = m_pad // tile_m
    return pl.pallas_call(
        final_proj_kernel,
        grid=(nt,),
        in_specs=[
            pl.BlockSpec((tile_m, c), lambda i: (i, 0)),
            pl.BlockSpec((tile_m, c), lambda i: (i, 0)),
            pl.BlockSpec((1, c), lambda i: (0, 0)),
            pl.BlockSpec((1, c), lambda i: (0, 0)),
            pl.BlockSpec((1, c), lambda i: (0, 0)),
            pl.BlockSpec((1, c), lambda i: (0, 0)),
        ],
        out_specs=pl.BlockSpec((tile_m, c), lambda i: (i, 0)),
        out_shape=jax.ShapeDtypeStruct((m_pad, c), jnp.float32),
        compiler_params=_mosaic_params(vmem_limit),
        cost_estimate=_cost(7 * m_pad * c, m_pad * c * (2 + 2 + 4) + 4 * c * 4),
    )(main, sc, scale2, shift2, scale_s, shift_s)


def _final_id(main, x_rows, scale2, shift2, tile_m, vmem_limit):
    m_pad, c = main.shape
    nt = m_pad // tile_m
    return pl.pallas_call(
        final_id_kernel,
        grid=(nt,),
        in_specs=[
            pl.BlockSpec((tile_m, c), lambda i: (i, 0)),
            pl.BlockSpec((tile_m, c), lambda i: (i, 0)),   # x tiled same as output
            pl.BlockSpec((1, c), lambda i: (0, 0)),
            pl.BlockSpec((1, c), lambda i: (0, 0)),
        ],
        out_specs=pl.BlockSpec((tile_m, c), lambda i: (i, 0)),
        out_shape=jax.ShapeDtypeStruct((m_pad, c), jnp.float32),
        compiler_params=_mosaic_params(vmem_limit),
        cost_estimate=_cost(4 * m_pad * c, m_pad * c * (2 + 2 + 4) + 2 * c * 4),
    )(main, x_rows, scale2, shift2)


# ------------------------------ glue helpers --------------------------------
def _im2col_3x3(x_nhwc, stride):
    # Pad + gather the 9 shifted views of a 3x3/pad=1 conv and concatenate the
    # taps along the lane (channel) axis: (N*Ho*Wo, 9*C), tight (no C padding).
    n, h, w, c = x_nhwc.shape
    xp = jnp.pad(x_nhwc, ((0, 0), (1, 1), (1, 1), (0, 0)))
    ho = (h - 1) // stride + 1
    wo = (w - 1) // stride + 1
    cols = []
    for dh in range(3):
        for dw in range(3):
            sl = xp[:, dh:dh + (ho - 1) * stride + 1:stride,
                    dw:dw + (wo - 1) * stride + 1:stride, :]
            cols.append(sl.reshape(n * ho * wo, c))
    return jnp.concatenate(cols, axis=-1)


def _pad_gb(g, b, c, c_pad):
    # gamma/beta zero-padded: padded output channels (conv output exactly 0,
    # var 0) get scale = 0 * rsqrt(eps) = 0 and shift = 0 -> stay zero.
    g = jnp.reshape(g, (-1,))
    b = jnp.reshape(b, (-1,))
    return jnp.pad(g, (0, c_pad - c)), jnp.pad(b, (0, c_pad - c))


def _bn_scale_shift(sum_tiles, sq_tiles, gamma, beta, m_rows):
    # Cross-tile reduction of the per-tile sums (tiny: num_tiles x C_pad rows,
    # each tile's value replicated across 8 sublanes -> take every 8th row).
    s = jnp.sum(sum_tiles[::8], axis=0)
    q = jnp.sum(sq_tiles[::8], axis=0)
    mean = s / m_rows
    # NOTE: E[x^2]-E[x]^2 in f32 is cancellation-prone when |mean| >> std;
    # acceptable for post-BN activation scales, clamp guards the sqrt.
    var = jnp.maximum(q / m_rows - mean * mean, 0.0)
    scale = gamma * jax.lax.rsqrt(var + EPS)
    shift = beta - mean * scale
    return scale[None, :], shift[None, :]


# ------------------------------- forward pass -------------------------------
def basic_block_forward(x_nchw, params, stride=1, tile_m=None):
    x = jnp.transpose(x_nchw, (0, 2, 3, 1)).astype(jnp.float32)   # -> NHWC
    n, h, w, cin = x.shape
    cout = params["w1"].shape[-1]
    cout_p = _round_up(cout, LANE)
    k1 = 9 * cin
    k1p = _round_up(k1, LANE)          # tight K padding: round_up(9*Cin, 128)
    k2 = 9 * cout
    k2p = _round_up(k2, LANE)
    kcp = _round_up(cin, LANE)

    ho = (h - 1) // stride + 1
    wo = (w - 1) // stride + 1
    m = n * ho * wo
    has_proj = (stride != 1) or (cin != cout)

    vmem_limit = _vmem_limit_bytes()
    budget = (vmem_limit * 3) // 4
    if tile_m is None:
        t1 = _choose_tile_m(m, k1p, cout_p, k1p * cout_p, budget)
        if has_proj:
            t2 = _choose_tile_m(m, k2p + kcp, 2 * cout_p,
                                (k2p + kcp) * cout_p, budget)
        else:
            t2 = _choose_tile_m(m, k2p, cout_p, k2p * cout_p, budget)
        tile_m = min(t1, t2)
    m_pad = _round_up(m, tile_m)
    tile_ew = _ew_tile(m_pad, tile_m, cout_p, budget)

    # ---------------- conv1 + bn1 + relu ----------------
    p1 = _im2col_3x3(x.astype(jnp.bfloat16), stride)              # (m, 9*Cin)
    p1 = jnp.pad(p1, ((0, m_pad - m), (0, k1p - k1)))

    w1 = params["w1"].reshape(k1, cout)
    w1 = jnp.pad(w1, ((0, k1p - k1), (0, cout_p - cout))).astype(jnp.bfloat16)
    g1, b1 = _pad_gb(params["g1"], params["b1"], cout, cout_p)

    c1, s1, q1 = _conv_stats(p1, w1, tile_m, vmem_limit)
    sc1, sh1 = _bn_scale_shift(s1, q1, g1, b1, m)
    mid = _bn_relu(c1, sc1, sh1, tile_ew, vmem_limit)             # bf16 (m_pad, Cout_p)

    # ---------------- conv2 (+ shortcut) ----------------
    # Drop padded channels before im2col so conv2's K is the tight 9*Cout.
    mid_nhwc = mid[:m, :cout].reshape(n, ho, wo, cout)
    p2 = _im2col_3x3(mid_nhwc, 1)                                 # (m, 9*Cout)
    p2 = jnp.pad(p2, ((0, m_pad - m), (0, k2p - k2)))

    w2 = params["w2"].reshape(k2, cout)
    w2 = jnp.pad(w2, ((0, k2p - k2), (0, cout_p - cout))).astype(jnp.bfloat16)
    g2, b2 = _pad_gb(params["g2"], params["b2"], cout, cout_p)

    if has_proj:
        xs = x[:, ::stride, ::stride, :].reshape(m, cin)
        xs = jnp.pad(xs, ((0, m_pad - m), (0, kcp - cin))).astype(jnp.bfloat16)
        ws = params["ws"].reshape(cin, cout)
        ws = jnp.pad(ws, ((0, kcp - cin), (0, cout_p - cout))).astype(jnp.bfloat16)
        gs, bs = _pad_gb(params["gs"], params["bs"], cout, cout_p)

        c2, csc, s2, q2, ss, qs = _conv2_proj_stats(p2, w2, xs, ws, tile_m,
                                                    vmem_limit)
        sc2, sh2 = _bn_scale_shift(s2, q2, g2, b2, m)
        scs, shs = _bn_scale_shift(ss, qs, gs, bs, m)
        out = _final_proj(c2, csc, sc2, sh2, scs, shs, tile_ew, vmem_limit)
    else:
        xid = x.reshape(m, cin)
        xid = jnp.pad(xid, ((0, m_pad - m), (0, cout_p - cin))).astype(jnp.bfloat16)
        c2, s2, q2 = _conv_stats(p2, w2, tile_m, vmem_limit)
        sc2, sh2 = _bn_scale_shift(s2, q2, g2, b2, m)
        out = _final_id(c2, xid, sc2, sh2, tile_ew, vmem_limit)

    out = out[:m, :cout].reshape(n, ho, wo, cout)
    return jnp.transpose(out, (0, 3, 1, 2))                       # -> NCHW


# --------------------------- pure-JAX reference -----------------------------
def reference_basic_block(x_nchw, params, stride=1):
    x = jnp.transpose(x_nchw, (0, 2, 3, 1)).astype(jnp.float32)

    def conv(y, wt, s, pad):
        return jax.lax.conv_general_dilated(
            y, wt, (s, s), pad,
            dimension_numbers=("NHWC", "HWIO", "NHWC"),
            precision=jax.lax.Precision.HIGHEST)

    def bn(y, g, b):
        mean = jnp.mean(y, axis=(0, 1, 2), keepdims=True)
        var = jnp.mean((y - mean) ** 2, axis=(0, 1, 2), keepdims=True)
        return (y - mean) * (g.reshape(1, 1, 1, -1) * jax.lax.rsqrt(var + EPS)) \
            + b.reshape(1, 1, 1, -1)

    out = jax.nn.relu(bn(conv(x, params["w1"], stride, ((1, 1), (1, 1))),
                         params["g1"], params["b1"]))
    out = bn(conv(out, params["w2"], 1, ((1, 1), (1, 1))),
             params["g2"], params["b2"])
    cin, cout = x.shape[-1], params["w1"].shape[-1]
    if stride != 1 or cin != cout:
        sc = bn(conv(x, params["ws"], stride, ((0, 0), (0, 0))),
                params["gs"], params["bs"])
    else:
        sc = x
    out = jax.nn.relu(out + sc)
    return jnp.transpose(out, (0, 3, 1, 2))


# ----------------------------------- main -----------------------------------
if __name__ == "__main__":
    key = jax.random.PRNGKey(0)
    all_keys = jax.random.split(key, 20)

    def make_params(keys, cin, cout):
        return {
            "w1": 0.1 * jax.random.normal(keys[0], (3, 3, cin, cout), jnp.float32),
            "g1": 1.0 + 0.1 * jax.random.normal(keys[1], (1, cout), jnp.float32),
            "b1": 0.1 * jax.random.normal(keys[2], (1, cout), jnp.float32),
            "w2": 0.1 * jax.random.normal(keys[3], (3, 3, cout, cout), jnp.float32),
            "g2": 1.0 + 0.1 * jax.random.normal(keys[4], (1, cout), jnp.float32),
            "b2": 0.1 * jax.random.normal(keys[5], (1, cout), jnp.float32),
            "ws": 0.1 * jax.random.normal(keys[6], (1, 1, cin, cout), jnp.float32),
            "gs": 1.0 + 0.1 * jax.random.normal(keys[7], (1, cout), jnp.float32),
            "bs": 0.1 * jax.random.normal(keys[8], (1, cout), jnp.float32),
        }

    # Case 1: projection shortcut (Cin != Cout), stride=1, 16x16 spatial.
    x1 = jax.random.normal(all_keys[0], (2, 4, 16, 16), jnp.float32)
    prm1 = make_params(all_keys[1:10], 4, 8)
    fwd = jax.jit(functools.partial(basic_block_forward, stride=1))
    out1 = fwd(x1, prm1)
    jax.block_until_ready(out1)
    ref1 = reference_basic_block(x1, prm1, 1)
    np.testing.assert_allclose(np.asarray(out1), np.asarray(ref1),
                               rtol=2e-2, atol=2e-2)
    assert out1.shape == (2, 8, 16, 16)

    # Case 2: identity shortcut (Cin == Cout), 12x12 spatial exercises the
    # row-padding + multi-tile BN-statistics path.
    x2 = jax.random.normal(all_keys[10], (2, 8, 12, 12), jnp.float32)
    prm2 = make_params(all_keys[11:20], 8, 8)
    out2 = fwd(x2, prm2)
    jax.block_until_ready(out2)
    ref2 = reference_basic_block(x2, prm2, 1)
    np.testing.assert_allclose(np.asarray(out2), np.asarray(ref2),
                               rtol=2e-2, atol=2e-2)
    assert out2.shape == (2, 8, 12, 12)

    print("KERNEL_OK")
</pallas_src>

<mosaic_0001>
module attributes {stable_mosaic.version = 11 : i64} {
  func.func @conv_stats_kernel(%arg0: i32, %arg1: memref<128x128xbf16, #tpu.memory_space<vmem>>, %arg2: memref<128x128xbf16, #tpu.memory_space<vmem>>, %arg3: memref<128x128xbf16, #tpu.memory_space<vmem>>, %arg4: memref<8x128xf32, #tpu.memory_space<vmem>>, %arg5: memref<8x128xf32, #tpu.memory_space<vmem>>) attributes {dimension_semantics = [#tpu.dimension_semantics<parallel>], iteration_bounds = array<i64: 4>, scalar_prefetch = 0 : i64, scratch_operands = 0 : i64, tpu.core_type = #tpu.core_type<tc>, window_params = [{transform_indices = @transform_0, window_bounds = array<i64: 128, 128>}, {pipeline_mode = #tpu.pipeline_mode<synchronous>, transform_indices = @transform_1, window_bounds = array<i64: 128, 128>}, {transform_indices = @transform_2, window_bounds = array<i64: 128, 128>}, {transform_indices = @transform_3, window_bounds = array<i64: 8, 128>}, {transform_indices = @transform_4, window_bounds = array<i64: 8, 128>}]} {
    %c0 = arith.constant 0 : index
    %c0_0 = arith.constant 0 : index
    %0 = vector.load %arg1[%c0, %c0_0] : memref<128x128xbf16, #tpu.memory_space<vmem>>, vector<128x128xbf16>
    %c0_1 = arith.constant 0 : index
    %c0_2 = arith.constant 0 : index
    %1 = vector.load %arg2[%c0_1, %c0_2] : memref<128x128xbf16, #tpu.memory_space<vmem>>, vector<128x128xbf16>
    %cst = arith.constant dense<0.000000e+00> : vector<128x128xf32>
    %2 = tpu.matmul %0, %1, %cst {dimension_numbers = #tpu.dot_dimension_numbers<[1], [0], [0], [1], [0, 0, 1, 1], [], []>} : vector<128x128xbf16>, vector<128x128xbf16>, vector<128x128xf32> -> vector<128x128xf32>
    %3 = arith.truncf %2 : vector<128x128xf32> to vector<128x128xbf16>
    %c0_3 = arith.constant 0 : index
    %c0_4 = arith.constant 0 : index
    %4 = vector.load %arg3[%c0_3, %c0_4] : memref<128x128xbf16, #tpu.memory_space<vmem>>, vector<128x128xbf16>
    tpu.vector_store %arg3[%c0_3, %c0_4], %3 {strides = array<i32>} : memref<128x128xbf16, #tpu.memory_space<vmem>>, vector<128x128xbf16>,
    %cst_5 = arith.constant dense<0.000000e+00> : vector<128xf32>
    %5 = vector.multi_reduction <add>, %2, %cst_5 [0] : vector<128x128xf32> to vector<128xf32>
    %6 = vector.shape_cast %5 : vector<128xf32> to vector<1x128xf32>
    %7 = vector.shape_cast %6 : vector<1x128xf32> to vector<1x128xf32>
    %8 = vector.broadcast %7 : vector<1x128xf32> to vector<8x128xf32>
    %c0_6 = arith.constant 0 : index
    %c0_7 = arith.constant 0 : index
    %9 = vector.load %arg4[%c0_6, %c0_7] : memref<8x128xf32, #tpu.memory_space<vmem>>, vector<8x128xf32>
    tpu.vector_store %arg4[%c0_6, %c0_7], %8 {strides = array<i32>} : memref<8x128xf32, #tpu.memory_space<vmem>>, vector<8x128xf32>,
    %10 = arith.mulf %2, %2 : vector<128x128xf32>
    %cst_8 = arith.constant dense<0.000000e+00> : vector<128xf32>
    %11 = vector.multi_reduction <add>, %10, %cst_8 [0] : vector<128x128xf32> to vector<128xf32>
    %12 = vector.shape_cast %11 : vector<128xf32> to vector<1x128xf32>
    %13 = vector.shape_cast %12 : vector<1x128xf32> to vector<1x128xf32>
    %14 = vector.broadcast %13 : vector<1x128xf32> to vector<8x128xf32>
    %c0_9 = arith.constant 0 : index
    %c0_10 = arith.constant 0 : index
    %15 = vector.load %arg5[%c0_9, %c0_10] : memref<8x128xf32, #tpu.memory_space<vmem>>, vector<8x128xf32>
    tpu.vector_store %arg5[%c0_9, %c0_10], %14 {strides = array<i32>} : memref<8x128xf32, #tpu.memory_space<vmem>>, vector<8x128xf32>,
    return
  }
  func.func @transform_0(%arg0: i32) -> (i32, i32) {
    %c0_i32 = arith.constant 0 : i32
    %c0_i32_0 = arith.constant 0 : i32
    return %arg0, %c0_i32 : i32, i32
  }
  func.func @transform_1(%arg0: i32) -> (i32, i32) {
    %c0_i32 = arith.constant 0 : i32
    %c0_i32_0 = arith.constant 0 : i32
    %c0_i32_1 = arith.constant 0 : i32
    return %c0_i32, %c0_i32_0 : i32, i32
  }
  func.func @transform_2(%arg0: i32) -> (i32, i32) {
    %c0_i32 = arith.constant 0 : i32
    %c0_i32_0 = arith.constant 0 : i32
    return %arg0, %c0_i32 : i32, i32
  }
  func.func @transform_3(%arg0: i32) -> (i32, i32) {
    %c0_i32 = arith.constant 0 : i32
    %c0_i32_0 = arith.constant 0 : i32
    return %arg0, %c0_i32 : i32, i32
  }
  func.func @transform_4(%arg0: i32) -> (i32, i32) {
    %c0_i32 = arith.constant 0 : i32
    %c0_i32_0 = arith.constant 0 : i32
    return %arg0, %c0_i32 : i32, i32
  }
}

module attributes {stable_mosaic.version = 11 : i64} {
  func.func @bn_relu_kernel(%arg0: i32, %arg1: memref<128x128xbf16, #tpu.memory_space<vmem>>, %arg2: memref<1x128xf32, #tpu.memory_space<vmem>>, %arg3: memref<1x128xf32, #tpu.memory_space<vmem>>, %arg4: memref<128x128xbf16, #tpu.memory_space<vmem>>) attributes {dimension_semantics = [#tpu.dimension_semantics<parallel>], iteration_bounds = array<i64: 4>, scalar_prefetch = 0 : i64, scratch_operands = 0 : i64, tpu.core_type = #tpu.core_type<tc>, window_params = [{transform_indices = @transform_0, window_bounds = array<i64: 128, 128>}, {pipeline_mode = #tpu.pipeline_mode<synchronous>, transform_indices = @transform_1, window_bounds = array<i64: 1, 128>}, {pipeline_mode = #tpu.pipeline_mode<synchronous>, transform_indices = @transform_2, window_bounds = array<i64: 1, 128>}, {transform_indices = @transform_3, window_bounds = array<i64: 128, 128>}]} {
    %c0 = arith.constant 0 : index
    %c0_0 = arith.constant 0 : index
    %0 = vector.load %arg1[%c0, %c0_0] : memref<128x128xbf16, #tpu.memory_space<vmem>>, vector<128x128xbf16>
    %1 = arith.extf %0 : vector<128x128xbf16> to vector<128x128xf32>
    %c0_1 = arith.constant 0 : index
    %c0_2 = arith.constant 0 : index
    %2 = vector.load %arg2[%c0_1, %c0_2] : memref<1x128xf32, #tpu.memory_space<vmem>>, vector<1x128xf32>
    %3 = vector.broadcast %2 : vector<1x128xf32> to vector<128x128xf32>
    %4 = arith.mulf %1, %3 : vector<128x128xf32>
    %c0_3 = arith.constant 0 : index
    %c0_4 = arith.constant 0 : index
    %5 = vector.load %arg3[%c0_3, %c0_4] : memref<1x128xf32, #tpu.memory_space<vmem>>, vector<1x128xf32>
    %6 = vector.broadcast %5 : vector<1x128xf32> to vector<128x128xf32>
    %7 = arith.addf %4, %6 : vector<128x128xf32>
    %cst = arith.constant 0.000000e+00 : f32
    %8 = vector.broadcast %cst : f32 to vector<128x128xf32>
    %9 = arith.maximumf %7, %8 : vector<128x128xf32>
    %10 = arith.truncf %9 : vector<128x128xf32> to vector<128x128xbf16>
    %c0_5 = arith.constant 0 : index
    %c0_6 = arith.constant 0 : index
    %11 = vector.load %arg4[%c0_5, %c0_6] : memref<128x128xbf16, #tpu.memory_space<vmem>>, vector<128x128xbf16>
    tpu.vector_store %arg4[%c0_5, %c0_6], %10 {strides = array<i32>} : memref<128x128xbf16, #tpu.memory_space<vmem>>, vector<128x128xbf16>,
    return
  }
  func.func @transform_0(%arg0: i32) -> (i32, i32) {
    %c0_i32 = arith.constant 0 : i32
    %c0_i32_0 = arith.constant 0 : i32
    return %arg0, %c0_i32 : i32, i32
  }
  func.func @transform_1(%arg0: i32) -> (i32, i32) {
    %c0_i32 = arith.constant 0 : i32
    %c0_i32_0 = arith.constant 0 : i32
    %c0_i32_1 = arith.constant 0 : i32
    return %c0_i32, %c0_i32_0 : i32, i32
  }
  func.func @transform_2(%arg0: i32) -> (i32, i32) {
    %c0_i32 = arith.constant 0 : i32
    %c0_i32_0 = arith.constant 0 : i32
    %c0_i32_1 = arith.constant 0 : i32
    return %c0_i32, %c0_i32_0 : i32, i32
  }
  func.func @transform_3(%arg0: i32) -> (i32, i32) {
    %c0_i32 = arith.constant 0 : i32
    %c0_i32_0 = arith.constant 0 : i32
    return %arg0, %c0_i32 : i32, i32
  }
}

module attributes {stable_mosaic.version = 11 : i64} {
  func.func @conv2_proj_stats_kernel(%arg0: i32, %arg1: memref<128x128xbf16, #tpu.memory_space<vmem>>, %arg2: memref<128x128xbf16, #tpu.memory_space<vmem>>, %arg3: memref<128x128xbf16, #tpu.memory_space<vmem>>, %arg4: memref<128x128xbf16, #tpu.memory_space<vmem>>, %arg5: memref<128x128xbf16, #tpu.memory_space<vmem>>, %arg6: memref<128x128xbf16, #tpu.memory_space<vmem>>, %arg7: memref<8x128xf32, #tpu.memory_space<vmem>>, %arg8: memref<8x128xf32, #tpu.memory_space<vmem>>, %arg9: memref<8x128xf32, #tpu.memory_space<vmem>>, %arg10: memref<8x128xf32, #tpu.memory_space<vmem>>) attributes {dimension_semantics = [#tpu.dimension_semantics<parallel>], iteration_bounds = array<i64: 4>, scalar_prefetch = 0 : i64, scratch_operands = 0 : i64, tpu.core_type = #tpu.core_type<tc>, window_params = [{transform_indices = @transform_0, window_bounds = array<i64: 128, 128>}, {pipeline_mode = #tpu.pipeline_mode<synchronous>, transform_indices = @transform_1, window_bounds = array<i64: 128, 128>}, {transform_indices = @transform_2, window_bounds = array<i64: 128, 128>}, {pipeline_mode = #tpu.pipeline_mode<synchronous>, transform_indices = @transform_3, window_bounds = array<i64: 128, 128>}, {transform_indices = @transform_4, window_bounds = array<i64: 128, 128>}, {transform_indices = @transform_5, window_bounds = array<i64: 128, 128>}, {transform_indices = @transform_6, window_bounds = array<i64: 8, 128>}, {transform_indices = @transform_7, window_bounds = array<i64: 8, 128>}, {transform_indices = @transform_8, window_bounds = array<i64: 8, 128>}, {transform_indices = @transform_9, window_bounds = array<i64: 8, 128>}]} {
    %c0 = arith.constant 0 : index
    %c0_0 = arith.constant 0 : index
    %0 = vector.load %arg1[%c0, %c0_0] : memref<128x128xbf16, #tpu.memory_space<vmem>>, vector<128x128xbf16>
    %c0_1 = arith.constant 0 : index
    %c0_2 = arith.constant 0 : index
    %1 = vector.load %arg2[%c0_1, %c0_2] : memref<128x128xbf16, #tpu.memory_space<vmem>>, vector<128x128xbf16>
    %cst = arith.constant dense<0.000000e+00> : vector<128x128xf32>
    %2 = tpu.matmul %0, %1, %cst {dimension_numbers = #tpu.dot_dimension_numbers<[1], [0], [0], [1], [0, 0, 1, 1], [], []>} : vector<128x128xbf16>, vector<128x128xbf16>, vector<128x128xf32> -> vector<128x128xf32>
    %c0_3 = arith.constant 0 : index
    %c0_4 = arith.constant 0 : index
    %3 = vector.load %arg3[%c0_3, %c0_4] : memref<128x128xbf16, #tpu.memory_space<vmem>>, vector<128x128xbf16>
    %c0_5 = arith.constant 0 : index
    %c0_6 = arith.constant 0 : index
    %4 = vector.load %arg4[%c0_5, %c0_6] : memref<128x128xbf16, #tpu.memory_space<vmem>>, vector<128x128xbf16>
    %cst_7 = arith.constant dense<0.000000e+00> : vector<128x128xf32>
    %5 = tpu.matmul %3, %4, %cst_7 {dimension_numbers = #tpu.dot_dimension_numbers<[1], [0], [0], [1], [0, 0, 1, 1], [], []>} : vector<128x128xbf16>, vector<128x128xbf16>, vector<128x128xf32> -> vector<128x128xf32>
    %6 = arith.truncf %2 : vector<128x128xf32> to vector<128x128xbf16>
    %c0_8 = arith.constant 0 : index
    %c0_9 = arith.constant 0 : index
    %7 = vector.load %arg5[%c0_8, %c0_9] : memref<128x128xbf16, #tpu.memory_space<vmem>>, vector<128x128xbf16>
    tpu.vector_store %arg5[%c0_8, %c0_9], %6 {strides = array<i32>} : memref<128x128xbf16, #tpu.memory_space<vmem>>, vector<128x128xbf16>,
    %8 = arith.truncf %5 : vector<128x128xf32> to vector<128x128xbf16>
    %c0_10 = arith.constant 0 : index
    %c0_11 = arith.constant 0 : index
    %9 = vector.load %arg6[%c0_10, %c0_11] : memref<128x128xbf16, #tpu.memory_space<vmem>>, vector<128x128xbf16>
    tpu.vector_store %arg6[%c0_10, %c0_11], %8 {strides = array<i32>} : memref<128x128xbf16, #tpu.memory_space<vmem>>, vector<128x128xbf16>,
    %cst_12 = arith.constant dense<0.000000e+00> : vector<128xf32>
    %10 = vector.multi_reduction <add>, %2, %cst_12 [0] : vector<128x128xf32> to vector<128xf32>
    %11 = vector.shape_cast %10 : vector<128xf32> to vector<1x128xf32>
    %12 = vector.shape_cast %11 : vector<1x128xf32> to vector<1x128xf32>
    %13 = vector.broadcast %12 : vector<1x128xf32> to vector<8x128xf32>
    %c0_13 = arith.constant 0 : index
    %c0_14 = arith.constant 0 : index
    %14 = vector.load %arg7[%c0_13, %c0_14] : memref<8x128xf32, #tpu.memory_space<vmem>>, vector<8x128xf32>
    tpu.vector_store %arg7[%c0_13, %c0_14], %13 {strides = array<i32>} : memref<8x128xf32, #tpu.memory_space<vmem>>, vector<8x128xf32>,
    %15 = arith.mulf %2, %2 : vector<128x128xf32>
    %cst_15 = arith.constant dense<0.000000e+00> : vector<128xf32>
    %16 = vector.multi_reduction <add>, %15, %cst_15 [0] : vector<128x128xf32> to vector<128xf32>
    %17 = vector.shape_cast %16 : vector<128xf32> to vector<1x128xf32>
    %18 = vector.shape_cast %17 : vector<1x128xf32> to vector<1x128xf32>
    %19 = vector.broadcast %18 : vector<1x128xf32> to vector<8x128xf32>
    %c0_16 = arith.constant 0 : index
    %c0_17 = arith.constant 0 : index
    %20 = vector.load %arg8[%c0_16, %c0_17] : memref<8x128xf32, #tpu.memory_space<vmem>>, vector<8x128xf32>
    tpu.vector_store %arg8[%c0_16, %c0_17], %19 {strides = array<i32>} : memref<8x128xf32, #tpu.memory_space<vmem>>, vector<8x128xf32>,
    %cst_18 = arith.constant dense<0.000000e+00> : vector<128xf32>
    %21 = vector.multi_reduction <add>, %5, %cst_18 [0] : vector<128x128xf32> to vector<128xf32>
    %22 = vector.shape_cast %21 : vector<128xf32> to vector<1x128xf32>
    %23 = vector.shape_cast %22 : vector<1x128xf32> to vector<1x128xf32>
    %24 = vector.broadcast %23 : vector<1x128xf32> to vector<8x128xf32>
    %c0_19 = arith.constant 0 : index
    %c0_20 = arith.constant 0 : index
    %25 = vector.load %arg9[%c0_19, %c0_20] : memref<8x128xf32, #tpu.memory_space<vmem>>, vector<8x128xf32>
    tpu.vector_store %arg9[%c0_19, %c0_20], %24 {strides = array<i32>} : memref<8x128xf32, #tpu.memory_space<vmem>>, vector<8x128xf32>,
    %26 = arith.mulf %5, %5 : vector<128x128xf32>
    %cst_21 = arith.constant dense<0.000000e+00> : vector<128xf32>
    %27 = vector.multi_reduction <add>, %26, %cst_21 [0] : vector<128x128xf32> to vector<128xf32>
    %28 = vector.shape_cast %27 : vector<128xf32> to vector<1x128xf32>
    %29 = vector.shape_cast %28 : vector<1x128xf32> to vector<1x128xf32>
    %30 = vector.broadcast %29 : vector<1x128xf32> to vector<8x128xf32>
    %c0_22 = arith.constant 0 : index
    %c0_23 = arith.constant 0 : index
    %31 = vector.load %arg10[%c0_22, %c0_23] : memref<8x128xf32, #tpu.memory_space<vmem>>, vector<8x128xf32>
    tpu.vector_store %arg10[%c0_22, %c0_23], %30 {strides = array<i32>} : memref<8x128xf32, #tpu.memory_space<vmem>>, vector<8x128xf32>,
    return
  }
  func.func @transform_0(%arg0: i32) -> (i32, i32) {
    %c0_i32 = arith.constant 0 : i32
    %c0_i32_0 = arith.constant 0 : i32
    return %arg0, %c0_i32 : i32, i32
  }
  func.func @transform_1(%arg0: i32) -> (i32, i32) {
    %c0_i32 = arith.constant 0 : i32
    %c0_i32_0 = arith.constant 0 : i32
    %c0_i32_1 = arith.constant 0 : i32
    return %c0_i32, %c0_i32_0 : i32, i32
  }
  func.func @transform_2(%arg0: i32) -> (i32, i32) {
    %c0_i32 = arith.constant 0 : i32
    %c0_i32_0 = arith.constant 0 : i32
    return %arg0, %c0_i32 : i32, i32
  }
  func.func @transform_3(%arg0: i32) -> (i32, i32) {
    %c0_i32 = arith.constant 0 : i32
    %c0_i32_0 = arith.constant 0 : i32
    %c0_i32_1 = arith.constant 0 : i32
    return %c0_i32, %c0_i32_0 : i32, i32
  }
  func.func @transform_4(%arg0: i32) -> (i32, i32) {
    %c0_i32 = arith.constant 0 : i32
    %c0_i32_0 = arith.constant 0 : i32
    return %arg0, %c0_i32 : i32, i32
  }
  func.func @transform_5(%arg0: i32) -> (i32, i32) {
    %c0_i32 = arith.constant 0 : i32
    %c0_i32_0 = arith.constant 0 : i32
    return %arg0, %c0_i32 : i32, i32
  }
  func.func @transform_6(%arg0: i32) -> (i32, i32) {
    %c0_i32 = arith.constant 0 : i32
    %c0_i32_0 = arith.constant 0 : i32
    return %arg0, %c0_i32 : i32, i32
  }
  func.func @transform_7(%arg0: i32) -> (i32, i32) {
    %c0_i32 = arith.constant 0 : i32
    %c0_i32_0 = arith.constant 0 : i32
    return %arg0, %c0_i32 : i32, i32
  }
  func.func @transform_8(%arg0: i32) -> (i32, i32) {
    %c0_i32 = arith.constant 0 : i32
    %c0_i32_0 = arith.constant 0 : i32
    return %arg0, %c0_i32 : i32, i32
  }
  func.func @transform_9(%arg0: i32) -> (i32, i32) {
    %c0_i32 = arith.constant 0 : i32
    %c0_i32_0 = arith.constant 0 : i32
    return %arg0, %c0_i32 : i32, i32
  }
}

module attributes {stable_mosaic.version = 11 : i64} {
  func.func @final_proj_kernel(%arg0: i32, %arg1: memref<128x128xbf16, #tpu.memory_space<vmem>>, %arg2: memref<128x128xbf16, #tpu.memory_space<vmem>>, %arg3: memref<1x128xf32, #tpu.memory_space<vmem>>, %arg4: memref<1x128xf32, #tpu.memory_space<vmem>>, %arg5: memref<1x128xf32, #tpu.memory_space<vmem>>, %arg6: memref<1x128xf32, #tpu.memory_space<vmem>>, %arg7: memref<128x128xf32, #tpu.memory_space<vmem>>) attributes {dimension_semantics = [#tpu.dimension_semantics<parallel>], iteration_bounds = array<i64: 4>, scalar_prefetch = 0 : i64, scratch_operands = 0 : i64, tpu.core_type = #tpu.core_type<tc>, window_params = [{transform_indices = @transform_0, window_bounds = array<i64: 128, 128>}, {transform_indices = @transform_1, window_bounds = array<i64: 128, 128>}, {pipeline_mode = #tpu.pipeline_mode<synchronous>, transform_indices = @transform_2, window_bounds = array<i64: 1, 128>}, {pipeline_mode = #tpu.pipeline_mode<synchronous>, transform_indices = @transform_3, window_bounds = array<i64: 1, 128>}, {pipeline_mode = #tpu.pipeline_mode<synchronous>, transform_indices = @transform_4, window_bounds = array<i64: 1, 128>}, {pipeline_mode = #tpu.pipeline_mode<synchronous>, transform_indices = @transform_5, window_bounds = array<i64: 1, 128>}, {transform_indices = @transform_6, window_bounds = array<i64: 128, 128>}]} {
    %c0 = arith.constant 0 : index
    %c0_0 = arith.constant 0 : index
    %0 = vector.load %arg1[%c0, %c0_0] : memref<128x128xbf16, #tpu.memory_space<vmem>>, vector<128x128xbf16>
    %1 = arith.extf %0 : vector<128x128xbf16> to vector<128x128xf32>
    %c0_1 = arith.constant 0 : index
    %c0_2 = arith.constant 0 : index
    %2 = vector.load %arg3[%c0_1, %c0_2] : memref<1x128xf32, #tpu.memory_space<vmem>>, vector<1x128xf32>
    %3 = vector.broadcast %2 : vector<1x128xf32> to vector<128x128xf32>
    %4 = arith.mulf %1, %3 : vector<128x128xf32>
    %c0_3 = arith.constant 0 : index
    %c0_4 = arith.constant 0 : index
    %5 = vector.load %arg4[%c0_3, %c0_4] : memref<1x128xf32, #tpu.memory_space<vmem>>, vector<1x128xf32>
    %6 = vector.broadcast %5 : vector<1x128xf32> to vector<128x128xf32>
    %7 = arith.addf %4, %6 : vector<128x128xf32>
    %c0_5 = arith.constant 0 : index
    %c0_6 = arith.constant 0 : index
    %8 = vector.load %arg2[%c0_5, %c0_6] : memref<128x128xbf16, #tpu.memory_space<vmem>>, vector<128x128xbf16>
    %9 = arith.extf %8 : vector<128x128xbf16> to vector<128x128xf32>
    %c0_7 = arith.constant 0 : index
    %c0_8 = arith.constant 0 : index
    %10 = vector.load %arg5[%c0_7, %c0_8] : memref<1x128xf32, #tpu.memory_space<vmem>>, vector<1x128xf32>
    %11 = vector.broadcast %10 : vector<1x128xf32> to vector<128x128xf32>
    %12 = arith.mulf %9, %11 : vector<128x128xf32>
    %c0_9 = arith.constant 0 : index
    %c0_10 = arith.constant 0 : index
    %13 = vector.load %arg6[%c0_9, %c0_10] : memref<1x128xf32, #tpu.memory_space<vmem>>, vector<1x128xf32>
    %14 = vector.broadcast %13 : vector<1x128xf32> to vector<128x128xf32>
    %15 = arith.addf %12, %14 : vector<128x128xf32>
    %16 = arith.addf %7, %15 : vector<128x128xf32>
    %cst = arith.constant 0.000000e+00 : f32
    %17 = vector.broadcast %cst : f32 to vector<128x128xf32>
    %18 = arith.maximumf %16, %17 : vector<128x128xf32>
    %c0_11 = arith.constant 0 : index
    %c0_12 = arith.constant 0 : index
    %19 = vector.load %arg7[%c0_11, %c0_12] : memref<128x128xf32, #tpu.memory_space<vmem>>, vector<128x128xf32>
    tpu.vector_store %arg7[%c0_11, %c0_12], %18 {strides = array<i32>} : memref<128x128xf32, #tpu.memory_space<vmem>>, vector<128x128xf32>,
    return
  }
  func.func @transform_0(%arg0: i32) -> (i32, i32) {
    %c0_i32 = arith.constant 0 : i32
    %c0_i32_0 = arith.constant 0 : i32
    return %arg0, %c0_i32 : i32, i32
  }
  func.func @transform_1(%arg0: i32) -> (i32, i32) {
    %c0_i32 = arith.constant 0 : i32
    %c0_i32_0 = arith.constant 0 : i32
    return %arg0, %c0_i32 : i32, i32
  }
  func.func @transform_2(%arg0: i32) -> (i32, i32) {
    %c0_i32 = arith.constant 0 : i32
    %c0_i32_0 = arith.constant 0 : i32
    %c0_i32_1 = arith.constant 0 : i32
    return %c0_i32, %c0_i32_0 : i32, i32
  }
  func.func @transform_3(%arg0: i32) -> (i32, i32) {
    %c0_i32 = arith.constant 0 : i32
    %c0_i32_0 = arith.constant 0 : i32
    %c0_i32_1 = arith.constant 0 : i32
    return %c0_i32, %c0_i32_0 : i32, i32
  }
  func.func @transform_4(%arg0: i32) -> (i32, i32) {
    %c0_i32 = arith.constant 0 : i32
    %c0_i32_0 = arith.constant 0 : i32
    %c0_i32_1 = arith.constant 0 : i32
    return %c0_i32, %c0_i32_0 : i32, i32
  }
  func.func @transform_5(%arg0: i32) -> (i32, i32) {
    %c0_i32 = arith.constant 0 : i32
    %c0_i32_0 = arith.constant 0 : i32
    %c0_i32_1 = arith.constant 0 : i32
    return %c0_i32, %c0_i32_0 : i32, i32
  }
  func.func @transform_6(%arg0: i32) -> (i32, i32) {
    %c0_i32 = arith.constant 0 : i32
    %c0_i32_0 = arith.constant 0 : i32
    return %arg0, %c0_i32 : i32, i32
  }
}

</mosaic_0001>

<bundles_post_ra>
// kernel: basic_block_forward.5
= control target key start
LH: loop header
LB: loop body
LE: loop exit
PB: predicated region body
PF: predicated region fallthrough
CT: control target
= control target key end

     0   :  { %8 = vsyncpa [#allocation3], 0  ;;  %s1184_s0 = inlined_call_operand.hbm [shape: bf16[512,128], index: 0, kind: input, shape index: {}]   ;;  %s1185_s1 = inlined_call_operand.hbm [shape: f32[1,128], index: 1, kind: input, shape index: {}]   ;;  %s1186_s2 = inlined_call_operand.hbm [shape: f32[1,128], index: 2, kind: input, shape index: {}]   ;;  %s1187_s3 = inlined_call_operand.hbm [shape: bf16[512,128], index: 3, kind: output, shape index: {}]  }
   0x1   :  { %10 = vsyncpa [#allocation3 + $0x1], 0 }
   0x2   :  { %11 = vsyncpa [#allocation6], 0 }
   0x3   :  { %12 = vsyncpa [#allocation4], 0 }
   0x4   :  { %14 = vsyncpa [#allocation4 + $0x1], 0  ;;  %s893_s12 = smov 0   ;;  %s895_s13 = smov 0  }
   0x5   :  { %s897_s14 = smov 0   ;;  %s899_s15 = smov 0  }
   0x6 LB: > { %s914_s16 = sadd.s32 4294967295, %s863_s15   ;;  %s496_s17 = sadd.s32 4294967294, %s863_s15   ;;  %s863_s15 = sphi %s899_s15, %s1210_s15   ;;  %s859_s14 = sphi %s897_s14, %s1209_s14   ;;  %s855_s13 = sphi %s895_s13, %s1208_s13   ;;  %s851_s12 = sphi %s893_s12, %s1207_s12  }
   0x7   : > { %s918_s18 = sadd.s32 1, %s863_s15   ;;  %s27_s19 = sadd.s32 1, %s859_s14 }
   0x8   : > { %s24_s20 = ssub.s32 %s863_s15, %s918_s18  ;;  %p34_p0 = scmp.ne.s32.totalorder %s859_s14, %s855_s13 }
   0x9   : > { %p25_p1 = scmp.eq.s32.totalorder %s24_s20, 0  ;;  %p35_p2 = scmp.eq.s32.totalorder %s863_s15, 0 }
   0xa   : > { %p40_p3 = scmp.ne.s32.totalorder %s855_s13, %s851_s12  ;;  %p1188_p4 = scmp.eq.s32.totalorder %s914_s16, 0 }
   0xb   : > { %s930_s21 = scalar_select %p25_p1, %s859_s14, %s27_s19  }
   0xc   : > { %p932_p5 = por %p35_p2, %p34_p0  ;;  %p938_p6 = por %p1188_p4, %p40_p3 }
   0xd   : > { %p106_p7 = scmp.eq.s32.totalorder %s914_s16, 3  ;;  %p112_p8 = scmp.eq.s32.totalorder %s496_s17, 3 }
   0xe   : > { %s1194_s23 = scalar_select %p938_p6, 1, 0 }
   0xf   : > { %p497_p9 = scmp.ge.s32.totalorder %s863_s15, 1  ;;  %p119_p10 = scmp.lt.s32.totalorder %s863_s15, 5 }
  0x10   : > { %p945_p11 = por %p106_p7, %p34_p0  ;;  %p949_p12 = por %p112_p8, %p40_p3 }
  0x11   : > { %p953_p13 = pnand %p497_p9, %p119_p10  ;;  %s865_s27 = smov [#allocation5]  }
  0x12   : > { %s1195_s24 = scalar_select %p945_p11, 1, 0 }
  0x13   : > { %s1196_s25 = scalar_select %p949_p12, 1, 0 }
  0x14   : > { %s1197_s26 = scalar_select %p953_p13, 1, 0 }
  0x15   : > { %p648_p1 = pneg %p953_p13  ;;  %s132_s28 = sshll.u32 %s865_s27, 4  ;;  %s133_s28 = int_to_ptr.vmem [resolvable:$true] %s132_s28 }
  0x16   : > { %p665_p2 = scmp.lt.s32.totalorder %s863_s15, 4  ;;  %s866_s4 = smov [#allocation7]  }
  0x17   : > { %p962_p0 = pnand %p648_p1, %p1188_p4  ;;  %s143_s5 = sshll.u32 %s866_s4, 4  ;;  %s972_s5 = int_to_ptr.vmem [resolvable:$true] %s143_s5 }
  0x18   : > { %p968_p3 = pnand %p665_p2, %p932_p5  ;;  %s707_s8 = scalar_lea.hbm %s1185_s1, 16 }
  0x19   : > { %p708_p7 = scmp.ne.s32.totalorder %s1185_s1, %s707_s8  ;;  %p709_p8 = pneg %p962_p0 }
  0x1a   : > { %s1199_s30 = scalar_select %p968_p3, 1, 0 }
  0x1b   : > { %p710_p5 = pnand %p709_p8, %p708_p7  ;;  %p714_p10 = scmp.lt.u32.totalorder %s707_s8, %s1185_s1 }
  0x1d   : > { %p711_p9 = pneg %p710_p5 }
  0x1f   : > { %p716_p1 = pnand %p714_p10, %p711_p9 }
  0x21   : > { %719 = shalt.err (!%p716_p1)
}
  0x22   : > { %s720_s19 = scalar_lea.vmem %s133_s28, 16  ;;  %s727_s20 = scalar_lea.vmem %s133_s28, 32 }
  0x23   : > { %p721_p2 = scmp.ne.s32.totalorder %s133_s28, %s720_s19  ;;  %p728_p11 = scmp.lt.s32.totalorder %s133_s28, %s133_s28 }
  0x24   : > { %p729_p6 = scmp.lt.s32.totalorder %s727_s20, %s720_s19 }
  0x25   : > { %p723_p4 = pnand %p721_p2, %p709_p8 }
  0x26   : > { %p730_p13 = por %p729_p6, %p728_p11 }
  0x27   : > { %p724_p12 = pneg %p723_p4 }
  0x29   : > { %p731_p3 = pnand %p730_p13, %p724_p12 }
  0x2b   : > { %734 = shalt.err (!%p731_p3)
}
  0x2c   : > { %651 = dma.hbm_to_vmem [thread:$0]  (!%p962_p0), %s1185_s1, 16, %s133_s28, [#allocation6]  }
  0x2d   : > { %s154_s4 = sand.u32 1, %s859_s14   ;;  %s735_s8 = scalar_lea.hbm %s1186_s2, 16 }
  0x2e   : > { %p736_p4 = scmp.ne.s32.totalorder %s1186_s2, %s735_s8  ;;  %p742_p12 = scmp.lt.u32.totalorder %s735_s8, %s1186_s2 }
  0x30   : > { %p738_p6 = pnand %p736_p4, %p709_p8 }
  0x32   : > { %p739_p11 = pneg %p738_p6 }
  0x34   : > { %p744_p13 = pnand %p742_p12, %p739_p11 }
  0x36   : > { %747 = shalt.err (!%p744_p13)
}
  0x37   : > { %s748_s28 = scalar_lea.vmem %s972_s5, 16  ;;  %s755_s19 = scalar_lea.vmem %s972_s5, 32 }
  0x38   : > { %p749_p3 = scmp.ne.s32.totalorder %s972_s5, %s748_s28  ;;  %p756_p9 = scmp.lt.s32.totalorder %s972_s5, %s972_s5 }
  0x39   : > { %p757_p10 = scmp.lt.s32.totalorder %s755_s19, %s748_s28 }
  0x3a   : > { %p751_p7 = pnand %p749_p3, %p709_p8 }
  0x3b   : > { %p758_p1 = por %p757_p10, %p756_p9 }
  0x3c   : > { %p752_p5 = pneg %p751_p7 }
  0x3e   : > { %p759_p2 = pnand %p758_p1, %p752_p5 }
  0x40   : > { %762 = shalt.err (!%p759_p2)
}
  0x41   : > { %654 = dma.hbm_to_vmem [thread:$0]  (!%p962_p0), %s1186_s2, 16, %s972_s5, [#allocation6]  }
  0x42   : > { %s501_s27 = sshll.u32 %s154_s4, 6  ;;  %s532_s6 = sshll.u32 %s863_s15, 10 }
  0x43   : > { %s1027_s9 = scalar_lea.hbm %s1184_s0, %s532_s6  ;;  %s158_s29 = scalar_lea.vmem [#allocation2], %s501_s27 }
  0x44   : > { %s165_s10 = sshll.u32 %s158_s29, 4  ;;  %s1031_s11 = scalar_lea.sflag [#allocation3], %s154_s4  ;;  %s1029_s10 = int_to_ptr.vmem [resolvable:$true] %s165_s10 }
  0x45   : > { %s763_s17 = scalar_lea.hbm %s1027_s9, 1024  ;;  %p1200_p0 = scmp.ne.s32.totalorder %s1199_s30, 0 }
  0x46   : > { %p764_p8 = scmp.ne.s32.totalorder %s1027_s9, %s763_s17  ;;  %s768_s19 = scalar_lea.hbm %s1184_s0, 4096 }
  0x47   : > { %p765_p4 = pneg %p1200_p0  ;;  %p769_p12 = scmp.lt.u32.totalorder %s1027_s9, %s1184_s0 }
  0x48   : > { %p770_p13 = scmp.lt.u32.totalorder %s768_s19, %s763_s17  ;;  %p772_p7 = scmp.lt.u32.totalorder %s763_s17, %s1027_s9 }
  0x49   : > { %p766_p6 = pnand %p765_p4, %p764_p8 }
  0x4a   : > { %p771_p3 = por %p770_p13, %p769_p12 }
  0x4b   : > { %p767_p11 = pneg %p766_p6 }
  0x4c   : > { %p773_p5 = por %p772_p7, %p771_p3 }
  0x4e   : > { %p774_p9 = pnand %p773_p5, %p767_p11 }
  0x50   : > { %777 = shalt.err (!%p774_p9)
}
  0x51   : > { %s778_s4 = scalar_lea.vmem %s1029_s10, 1024  ;;  %s867_s27 = smov [#allocation2]  }
  0x52   : > { %p779_p10 = scmp.ne.s32.totalorder %s1029_s10, %s778_s4  ;;  %s783_s6 = sshll.u32 %s867_s27, 4  ;;  %s784_s6 = int_to_ptr.vmem [resolvable:$false] %s783_s6 }
  0x53   : > { %s785_s7 = scalar_lea.vmem %s784_s6, 2048  ;;  %p786_p8 = scmp.lt.s32.totalorder %s1029_s10, %s784_s6 }
  0x54   : > { %p781_p1 = pnand %p779_p10, %p765_p4  ;;  %p787_p6 = scmp.lt.s32.totalorder %s785_s7, %s778_s4 }
  0x56   : > { %p782_p2 = pneg %p781_p1  ;;  %p788_p12 = por %p787_p6, %p786_p8 }
  0x58   : > { %p789_p13 = pnand %p788_p12, %p782_p2 }
  0x5a   : > { %792 = shalt.err (!%p789_p13)
}
  0x5b   : > { %s868_s8 = smov 64   ;;  %s869_s29 = smov 4  }
  0x5c   : > { %658 = dma.hbm_to_vmem [thread:$0]  (!%p1200_p0), %s1027_s9, 1024, %s1029_s10, %s1031_s11, %s868_s8, %s868_s8, %s869_s29  }
  0x5d   : > { %p1201_p4 = scmp.ne.s32.totalorder %s1197_s26, 0 }
  0x5e   : > { %s1062_s17 = sand.u32 (!%p1201_p4), 1, %s855_s13   ;;  %p1202_p11 = scmp.ne.s32.totalorder (!%p1201_p4), %s1194_s23, 0 }
  0x5f   : > { %177 = sbr.rel (%p1201_p4) target bundleno = 143 (0x8f), region = 32  ;;  %s505_s5 = sshll.u32 (!%p1201_p4), %s1062_s17, 6 }
  0x60   : > { %s180_s28 = scalar_lea.sflag (!%p1201_p4), [#allocation3], %s1062_s17  ;;  %s1068_s19 = scalar_lea.vmem (!%p1201_p4), [#allocation2], %s505_s5 }
  0x66   : > { %838 = dma.done.wait (%p1202_p11), %s180_s28, 1024  }
  0x67   : > { %840 = vsyncadd (%p1202_p11), %s180_s28, 4294966272  ;;  %p1203_p0 = scmp.eq.s32.totalorder %s914_s16, 0 }
  0x69   : > { %842 = dma.done.wait (%p1203_p0), [#allocation6], 32   ;;  %p1204_p3 = pmov %p1203_p0 }
  0x6a   : > { %v551_v0 = vld [vmem:[%s1068_s19] sm:$0xff]   ;;  %v622_v4 = vld [vmem:[%s1068_s19 + $0x8] sm:$0xff]   ;;  %v623_v5 = vld [vmem:[%s1068_s19 + $0x10] sm:$0xff]   ;;  %s1108_s23 = scalar_lea.vmem [#allocation8], %s505_s5  ;;  %s549_s30 = sshll.u32 %s914_s16, 10 }
  0x6b   : > { %844 = vsyncadd (%p1204_p3), [#allocation6], 4294967264  ;;  %v1079_v1 = vld [vmem:[#allocation5] ss:$0 sm:$0xff]  ;;  %v552_v2 = vunpack.c.l.bf16 %v551_v0  ;;  %v553_v3 = vunpack.c.h.bf16 %v551_v0  ;;  %v624_v6 = vld [vmem:[%s1068_s19 + $0x18] sm:$0xff]   ;;  %v556_v8 = vunpack.c.l.bf16 %v622_v4  ;;  %v557_v9 = vunpack.c.h.bf16 %v622_v4  ;;  %s404_s26 = sshll.u32 %s1108_s23, 4  ;;  %s1138_s11 = scalar_lea.hbm %s1187_s3, %s549_s30  ;;  %s1132_s26 = int_to_ptr.vmem [resolvable:$true] %s404_s26 }
  0x6c   : > { %v1084_v7 = vld [vmem:[#allocation7] ss:$0 sm:$0xff]  ;;  %v560_v10 = vunpack.c.l.bf16 %v623_v5  ;;  %v561_v11 = vunpack.c.h.bf16 %v623_v5  ;;  %v564_v14 = vunpack.c.l.bf16 %v624_v6  ;;  %v565_v15 = vunpack.c.h.bf16 %v624_v6  ;;  %v626_v33 = vld [vmem:[%s1068_s19 + $0x28] sm:$0xff]   ;;  %v627_v38 = vld [vmem:[%s1068_s19 + $0x30] sm:$0xff]   ;;  %s391_s16 = scalar_lea.sflag [#allocation4], %s1062_s17  ;;  %s793_s20 = scalar_lea.vmem %s1132_s26, 1024 }
  0x6d   : > { %v255_v12 = vmul.f32 %v552_v2, %v1079_v1  ;;  %v256_v13 = vmul.f32 %v553_v3, %v1079_v1  ;;  %v257_v16 = vmul.f32 %v556_v8, %v1079_v1  ;;  %v258_v17 = vmul.f32 %v557_v9, %v1079_v1  ;;  %v625_v28 = vld [vmem:[%s1068_s19 + $0x20] sm:$0xff]   ;;  %v628_v43 = vld [vmem:[%s1068_s19 + $0x38] sm:$0xff]   ;;  %p794_p7 = scmp.ne.s32.totalorder %s1132_s26, %s793_s20  ;;  %p1205_p5 = scmp.ne.s32.totalorder %s1195_s24, 0 }
  0x6e   : > { %v259_v18 = vmul.f32 %v560_v10, %v1079_v1  ;;  %v260_v19 = vmul.f32 %v561_v11, %v1079_v1  ;;  %v261_v22 = vmul.f32 %v564_v14, %v1079_v1  ;;  %v262_v23 = vmul.f32 %v565_v15, %v1079_v1  ;;  %s870_s22 = smov [#allocation8]  }
  0x6f   : > { %v278_v20 = vadd.f32 %v1084_v7, %v255_v12  ;;  %v279_v21 = vadd.f32 %v1084_v7, %v256_v13  ;;  %v280_v24 = vadd.f32 %v1084_v7, %v257_v16  ;;  %v281_v25 = vadd.f32 %v1084_v7, %v258_v17  ;;  %p795_p9 = pnand %p794_p7, %p1205_p5  ;;  %s797_s4 = sshll.u32 %s870_s22, 4  ;;  %s798_s4 = int_to_ptr.vmem [resolvable:$false] %s797_s4 }
  0x70   : > { %v282_v26 = vadd.f32 %v1084_v7, %v259_v18  ;;  %v283_v27 = vadd.f32 %v1084_v7, %v260_v19  ;;  %v284_v31 = vadd.f32 %v1084_v7, %v261_v22  ;;  %v285_v32 = vadd.f32 %v1084_v7, %v262_v23  ;;  %s799_s27 = scalar_lea.vmem %s798_s4, 2048  ;;  %p800_p1 = scmp.lt.s32.totalorder %s1132_s26, %s798_s4 }
  0x71   : > { %v294_v29 = vmax.f32 %v278_v20, 0.0  ;;  %v295_v30 = vmax.f32 %v279_v21, 0.0  ;;  %v296_v34 = vmax.f32 %v280_v24, 0.0  ;;  %v297_v35 = vmax.f32 %v281_v25, 0.0  ;;  %p796_p10 = pneg %p795_p9  ;;  %p801_p2 = scmp.lt.s32.totalorder %s799_s27, %s793_s20 }
  0x72   : > { %v298_v36 = vmax.f32 %v282_v26, 0.0  ;;  %v299_v37 = vmax.f32 %v283_v27, 0.0  ;;  %v300_v40 = vmax.f32 %v284_v31, 0.0  ;;  %v301_v41 = vmax.f32 %v285_v32, 0.0 }
  0x73   : > { %v585_v39 = vpack.c.bf16 %v295_v30, %v294_v29  ;;  %v568_v42 = vunpack.c.l.bf16 %v625_v28  ;;  %v590_v44 = vpack.c.bf16 %v297_v35, %v296_v34  ;;  %v569_v46 = vunpack.c.h.bf16 %v625_v28  ;;  %p802_p8 = por %p801_p2, %p800_p1 }
  0x74   : > { %v595_v45 = vpack.c.bf16 %v299_v37, %v298_v36  ;;  %v572_v47 = vunpack.c.l.bf16 %v626_v33  ;;  %v600_v48 = vpack.c.bf16 %v301_v41, %v300_v40  ;;  %v573_v50 = vunpack.c.h.bf16 %v626_v33 }
  0x75   : > { %586 = vst [vmem:[%s1108_s23] sm:$0xff] %v585_v39   ;;  %v263_v49 = vmul.f32 %v568_v42, %v1079_v1  ;;  %v576_v51 = vunpack.c.l.bf16 %v627_v38  ;;  %629 = vst [vmem:[%s1108_s23 + $0x8] sm:$0xff] %v590_v44   ;;  %v264_v52 = vmul.f32 %v569_v46, %v1079_v1  ;;  %v577_v54 = vunpack.c.h.bf16 %v627_v38  ;;  %p803_p6 = pnand %p802_p8, %p796_p10 }
  0x76   : > { %630 = vst [vmem:[%s1108_s23 + $0x10] sm:$0xff] %v595_v45   ;;  %v265_v53 = vmul.f32 %v572_v47, %v1079_v1  ;;  %v580_v55 = vunpack.c.l.bf16 %v628_v43  ;;  %631 = vst [vmem:[%s1108_s23 + $0x18] sm:$0xff] %v600_v48   ;;  %v266_v57 = vmul.f32 %v573_v50, %v1079_v1  ;;  %v581_v59 = vunpack.c.h.bf16 %v628_v43 }
  0x77   : > { %v286_v56 = vadd.f32 %v1084_v7, %v263_v49  ;;  %v267_v58 = vmul.f32 %v576_v51, %v1079_v1  ;;  %v287_v60 = vadd.f32 %v1084_v7, %v264_v52  ;;  %v268_v62 = vmul.f32 %v577_v54, %v1079_v1 }
  0x78   : > { %v288_v61 = vadd.f32 %v1084_v7, %v265_v53  ;;  %v269_v63 = vmul.f32 %v580_v55, %v1079_v1  ;;  %v289_v2 = vadd.f32 %v1084_v7, %v266_v57  ;;  %v270_v4 = vmul.f32 %v581_v59, %v1079_v1 }
  0x79   : > { %v302_v0 = vmax.f32 %v286_v56, 0.0  ;;  %v290_v3 = vadd.f32 %v1084_v7, %v267_v58  ;;  %v303_v5 = vmax.f32 %v287_v60, 0.0  ;;  %v291_v8 = vadd.f32 %v1084_v7, %v268_v62 }
  0x7a   : > { %v304_v6 = vmax.f32 %v288_v61, 0.0  ;;  %v292_v9 = vadd.f32 %v1084_v7, %v269_v63  ;;  %v305_v10 = vmax.f32 %v289_v2, 0.0  ;;  %v293_v12 = vadd.f32 %v1084_v7, %v270_v4 }
  0x7b   : > { %v306_v11 = vmax.f32 %v290_v3, 0.0  ;;  %v605_v13 = vpack.c.bf16 %v303_v5, %v302_v0  ;;  %v307_v1 = vmax.f32 %v291_v8, 0.0 }
  0x7c   : > { %v308_v14 = vmax.f32 %v292_v9, 0.0  ;;  %v610_v15 = vpack.c.bf16 %v305_v10, %v304_v6  ;;  %v309_v16 = vmax.f32 %v293_v12, 0.0 }
  0x7d   : > { %632 = vst [vmem:[%s1108_s23 + $0x20] sm:$0xff] %v605_v13   ;;  %v615_v17 = vpack.c.bf16 %v307_v1, %v306_v11 }
  0x7e   : > { %633 = vst [vmem:[%s1108_s23 + $0x28] sm:$0xff] %v610_v15   ;;  %v620_v7 = vpack.c.bf16 %v309_v16, %v308_v14 }
  0x7f   : > { %634 = vst [vmem:[%s1108_s23 + $0x30] sm:$0xff] %v615_v17  }
  0x80   : > { %635 = vst [vmem:[%s1108_s23 + $0x38] sm:$0xff] %v620_v7  }
  0x81   : > { %806 = shalt.err (!%p803_p6)
}
  0x82   : > { %s807_s6 = scalar_lea.hbm %s1138_s11, 1024  ;;  %s811_s29 = scalar_lea.hbm %s1187_s3, 4096 }
  0x83   : > { %p808_p12 = scmp.ne.s32.totalorder %s1138_s11, %s807_s6  ;;  %p812_p11 = scmp.lt.u32.totalorder %s1138_s11, %s1187_s3 }
  0x84   : > { %p813_p0 = scmp.lt.u32.totalorder %s811_s29, %s807_s6  ;;  %p815_p7 = scmp.lt.u32.totalorder %s807_s6, %s1138_s11 }
  0x85   : > { %p809_p13 = pnand %p808_p12, %p1205_p5 }
  0x86   : > { %p814_p3 = por %p813_p0, %p812_p11 }
  0x87   : > { %p810_p4 = pneg %p809_p13 }
  0x88   : > { %p816_p9 = por %p815_p7, %p814_p3 }
  0x8a   : > { %p817_p10 = pnand %p816_p9, %p810_p4 }
  0x8c   : > { %820 = shalt.err (!%p817_p10)
}
  0x8d   : > { %s871_s19 = smov 64   ;;  %s872_s23 = smov 4  }
  0x8e   : > { %646 = dma.vmem_to_hbm [thread:$0]  (%p1205_p5), %s1132_s26, 1024, %s1138_s11, %s391_s16, %s871_s19, %s871_s19, %s872_s23  }
  0x8f PF: > { %p668_p1 = scmp.ge.s32.totalorder %s863_s15, 2  ;;  %s419_s30 = sand.u32 1, %s851_s12  }
  0x90   : > { %p1206_p2 = scmp.ne.s32.totalorder %s1196_s25, 0  ;;  %s420_s9 = scalar_lea.sflag [#allocation4], %s419_s30 }
  0x92   : > { %p660_p8 = pnand %p668_p1, %p1206_p2 }
  0x94   : > { %846 = dma.done.wait (!%p660_p8), %s420_s9, 1024  }
  0x95   : > { %848 = vsyncadd (!%p660_p8), %s420_s9, 4294966272  ;;  %p17_p6 = scmp.ge.s32.totalorder %s918_s18, 6   ;;  %s1207_s12 = smov %s855_s13 }
  0x96   : > { %s1208_s13 = smov %s859_s14  ;;  %s1209_s14 = smov %s930_s21 }
  0x97   : > { %s1210_s15 = smov %s918_s18  ;;  %19 = sbr.rel (!%p17_p6) target bundleno = 6 (0x6), region = 85 }
  0x9e   :  { %425 = vsyncpa [#allocation3], 1 }
  0x9f   :  { %427 = vsyncpa [#allocation3 + $0x1], 1 }
  0xa0   :  { %428 = vsyncpa [#allocation6], 1 }
  0xa1   :  { %429 = vsyncpa [#allocation4], 1 }
  0xa2   :  { %431 = vsyncpa [#allocation4 + $0x1], 1 }

// kernel: basic_block_forward.4
= control target key start
LH: loop header
LB: loop body
LE: loop exit
PB: predicated region body
PF: predicated region fallthrough
CT: control target
= control target key end

     0   :  { %10 = vsyncpa [#allocation3], 0  ;;  %s1647_s0 = inlined_call_operand.hbm [shape: bf16[512,128], index: 0, kind: input, shape index: {}]   ;;  %s1648_s1 = inlined_call_operand.hbm [shape: bf16[128,128], index: 1, kind: input, shape index: {}]   ;;  %s1649_s2 = inlined_call_operand.hbm [shape: bf16[512,128], index: 2, kind: output, shape index: {0}]   ;;  %s1650_s3 = inlined_call_operand.hbm [shape: f32[32,128], index: 3, kind: output, shape index: {1}]   ;;  %s1651_s4 = inlined_call_operand.hbm [shape: f32[32,128], index: 4, kind: output, shape index: {2}]  }
   0x1   :  { %12 = vsyncpa [#allocation3 + $0x1], 0 }
   0x2   :  { %13 = vsyncpa [#allocation6], 0 }
   0x3   :  { %14 = vsyncpa [#allocation4], 0 }
   0x4   :  { %16 = vsyncpa [#allocation4 + $0x1], 0 }
   0x5   :  { %17 = vsyncpa [#allocation9], 0 }
   0x6   :  { %19 = vsyncpa [#allocation9 + $0x1], 0  ;;  %s1305_s15 = smov 0   ;;  %s1307_s16 = smov 0  }
   0x7   :  { %s1309_s17 = smov 0   ;;  %s1311_s18 = smov 0  }
   0x8 LB: > { %s1326_s19 = sadd.s32 4294967295, %s1269_s18   ;;  %s811_s20 = sadd.s32 4294967294, %s1269_s18   ;;  %s1269_s18 = sphi %s1311_s18, %s1670_s18   ;;  %s1265_s17 = sphi %s1309_s17, %s1669_s17   ;;  %s1261_s16 = sphi %s1307_s16, %s1668_s16   ;;  %s1257_s15 = sphi %s1305_s15, %s1667_s15  }
   0x9   : > { %p45_p0 = scmp.ne.s32.totalorder %s1261_s16, %s1257_s15  ;;  %p1652_p1 = scmp.eq.s32.totalorder %s1326_s19, 0 }
   0xa   : > { %p96_p3 = scmp.eq.s32.totalorder %s811_s20, 3  ;;  %p812_p5 = scmp.ge.s32.totalorder %s1269_s18, 1 }
   0xb   : > { %p1337_p4 = por %p1652_p1, %p45_p0  ;;  %p155_p7 = scmp.lt.s32.totalorder %s1269_s18, 5 }
   0xc   : > { %p1342_p6 = por %p96_p3, %p45_p0  ;;  %s1271_s24 = smov [#allocation5]  }
   0xd   : > { %s1655_s21 = scalar_select %p1337_p4, 1, 0 }
   0xe   : > { %s1656_s22 = scalar_select %p1342_p6, 1, 0 }
   0xf   : > { %p1347_p8 = pnand %p812_p5, %p155_p7  ;;  %s167_s25 = sshll.u32 %s1271_s24, 4  ;;  %s168_s25 = int_to_ptr.vmem [resolvable:$true] %s167_s25 }
  0x10   : > { %s1360_s27 = sadd.s32 1, %s1269_s18   ;;  %s32_s28 = sadd.s32 1, %s1265_s17 }
  0x11   : > { %s1657_s23 = scalar_select %p1347_p8, 1, 0 }
  0x12   : > { %p1006_p9 = pneg %p1347_p8  ;;  %s29_s29 = ssub.s32 %s1269_s18, %s1360_s27 }
  0x13   : > { %s1081_s6 = scalar_lea.hbm %s1648_s1, 1024 }
  0x14   : > { %p1355_p10 = pnand %p1006_p9, %p1652_p1  ;;  %p1082_p11 = scmp.ne.s32.totalorder %s1648_s1, %s1081_s6 }
  0x15   : > { %p1088_p3 = scmp.lt.u32.totalorder %s1081_s6, %s1648_s1 }
  0x16   : > { %p1083_p12 = pneg %p1355_p10 }
  0x18   : > { %p1084_p13 = pnand %p1083_p12, %p1082_p11 }
  0x1a   : > { %p1085_p0 = pneg %p1084_p13 }
  0x1c   : > { %p1090_p5 = pnand %p1088_p3, %p1085_p0 }
  0x1e   : > { %1093 = shalt.err (!%p1090_p5)
}
  0x1f   : > { %s1094_s11 = scalar_lea.vmem %s168_s25, 1024  ;;  %p1102_p2 = scmp.lt.s32.totalorder %s168_s25, %s168_s25 }
  0x20   : > { %p1095_p7 = scmp.ne.s32.totalorder %s168_s25, %s1094_s11  ;;  %p1103_p6 = scmp.lt.s32.totalorder %s1094_s11, %s1094_s11 }
  0x22   : > { %p1097_p9 = pnand %p1095_p7, %p1083_p12  ;;  %p1104_p4 = por %p1103_p6, %p1102_p2 }
  0x24   : > { %p1098_p1 = pneg %p1097_p9 }
  0x26   : > { %p1105_p8 = pnand %p1104_p4, %p1098_p1 }
  0x28   : > { %1108 = shalt.err (!%p1105_p8)
}
  0x29   : > { %s1272_s12 = smov 64   ;;  %s1273_s13 = smov 4  }
  0x2a   : > { %1009 = dma.hbm_to_vmem [thread:$0]  (!%p1355_p10), %s1648_s1, 1024, %s168_s25, [#allocation6], %s1272_s12, %s1272_s12, %s1273_s13  }
  0x2b   : > { %p30_p1 = scmp.eq.s32.totalorder %s29_s29, 0  ;;  %p39_p2 = scmp.ne.s32.totalorder %s1265_s17, %s1261_s16 }
  0x2c   : > { %p40_p4 = scmp.eq.s32.totalorder %s1269_s18, 0  ;;  %p1025_p6 = scmp.lt.s32.totalorder %s1269_s18, 4 }
  0x2d   : > { %s1389_s30 = scalar_select %p30_p1, %s1265_s17, %s32_s28  }
  0x2e   : > { %p41_p8 = por %p40_p4, %p39_p2  ;;  %p1659_p11 = scmp.eq.s32.totalorder %s1326_s19, 3 }
  0x2f   : > { %s181_s26 = sand.u32 1, %s1265_s17   ;;  %s865_s6 = sshll.u32 %s1269_s18, 10 }
  0x30   : > { %p1393_p12 = por %p1659_p11, %p39_p2  ;;  %s815_s7 = sshll.u32 %s181_s26, 6 }
  0x31   : > { %s1402_s10 = scalar_lea.hbm %s1647_s0, %s865_s6  ;;  %s185_s25 = scalar_lea.vmem [#allocation2], %s815_s7 }
  0x32   : > { %s192_s28 = sshll.u32 %s185_s25, 4  ;;  %p1404_p10 = pnand %p1025_p6, %p41_p8  ;;  %s1408_s28 = int_to_ptr.vmem [resolvable:$true] %s192_s28 }
  0x33   : > { %s1410_s11 = scalar_lea.sflag [#allocation3], %s181_s26  ;;  %s1109_s14 = scalar_lea.hbm %s1402_s10, 1024 }
  0x34   : > { %p1110_p13 = scmp.ne.s32.totalorder %s1402_s10, %s1109_s14  ;;  %p1111_p0 = pneg %p1404_p10 }
  0x35   : > { %s1114_s7 = scalar_lea.hbm %s1647_s0, 4096  ;;  %p1115_p7 = scmp.lt.u32.totalorder %s1402_s10, %s1647_s0 }
  0x36   : > { %p1112_p3 = pnand %p1111_p0, %p1110_p13  ;;  %p1116_p9 = scmp.lt.u32.totalorder %s1114_s7, %s1109_s14 }
  0x37   : > { %p1118_p2 = scmp.lt.u32.totalorder %s1109_s14, %s1402_s10 }
  0x38   : > { %p1113_p5 = pneg %p1112_p3  ;;  %p1117_p1 = por %p1116_p9, %p1115_p7 }
  0x3a   : > { %p1119_p4 = por %p1118_p2, %p1117_p1 }
  0x3c   : > { %p1120_p6 = pnand %p1119_p4, %p1113_p5 }
  0x3e   : > { %1123 = shalt.err (!%p1120_p6)
}
  0x3f   : > { %s1124_s26 = scalar_lea.vmem %s1408_s28, 1024  ;;  %s1274_s25 = smov [#allocation2]  }
  0x40   : > { %p1125_p8 = scmp.ne.s32.totalorder %s1408_s28, %s1124_s26  ;;  %s1129_s24 = sshll.u32 %s1274_s25, 4  ;;  %s1130_s24 = int_to_ptr.vmem [resolvable:$false] %s1129_s24 }
  0x41   : > { %s1131_s6 = scalar_lea.vmem %s1130_s24, 2048  ;;  %p1132_p3 = scmp.lt.s32.totalorder %s1408_s28, %s1130_s24 }
  0x42   : > { %p1127_p11 = pnand %p1125_p8, %p1111_p0  ;;  %p1133_p7 = scmp.lt.s32.totalorder %s1131_s6, %s1124_s26 }
  0x44   : > { %p1128_p13 = pneg %p1127_p11  ;;  %p1134_p9 = por %p1133_p7, %p1132_p3 }
  0x46   : > { %p1135_p1 = pnand %p1134_p9, %p1128_p13 }
  0x48   : > { %1138 = shalt.err (!%p1135_p1)
}
  0x49   : > { %1013 = dma.hbm_to_vmem [thread:$0]  (!%p1404_p10), %s1402_s10, 1024, %s1408_s28, %s1410_s11, %s1272_s12, %s1272_s12, %s1273_s13  }
  0x4a   : > { %p1662_p0 = scmp.ne.s32.totalorder %s1657_s23, 0 }
  0x4b   : > { %s1444_s14 = sand.u32 (!%p1662_p0), 1, %s1261_s16   ;;  %p1663_p5 = scmp.ne.s32.totalorder (!%p1662_p0), %s1655_s21, 0 }
  0x4c   : > { %204 = sbr.rel (%p1662_p0) target bundleno = 424 (0x1a8), region = 28  ;;  %s819_s7 = sshll.u32 (!%p1662_p0), %s1444_s14, 6 }
  0x4d   : > { %s207_s8 = scalar_lea.sflag (!%p1662_p0), [#allocation3], %s1444_s14  ;;  %s1450_s29 = scalar_lea.vmem (!%p1662_p0), [#allocation2], %s819_s7 }
  0x53   : > { %1240 = dma.done.wait (%p1663_p5), %s207_s8, 1024  }
  0x54   : > { %1242 = vsyncadd (%p1663_p5), %s207_s8, 4294966272  ;;  %p1664_p10 = scmp.eq.s32.totalorder %s1326_s19, 0 }
  0x56   : > { %1244 = dma.done.wait (%p1664_p10), [#allocation6], 1024   ;;  %p1665_p2 = pmov %p1664_p10 }
  0x57   : > { %v1065_v0 = vld [vmem:[#allocation5] sm:$0xff]   ;;  %v1066_v1 = vld [vmem:[#allocation5 + $0x8] sm:$0xff]   ;;  %v1067_v2 = vld [vmem:[#allocation5 + $0x10] sm:$0xff]   ;;  %s1482_s21 = scalar_lea.vmem [#allocation7], %s819_s7  ;;  %s882_s12 = sshll.u32 %s1326_s19, 10 }
  0x58   : > { %1246 = vsyncadd (%p1665_p2), [#allocation6], 4294966272  ;;  %946 = vmatprep.subr.bf16.mxu0 %v1065_v0  ;;  %978 = vmatprep.subr.bf16.mxu1 %v1065_v0  ;;  %v1068_v3 = vld [vmem:[#allocation5 + $0x18] sm:$0xff]   ;;  %v1073_v4 = vld [vmem:[%s1450_s29] sm:$0xff]   ;;  %s641_s23 = sshll.u32 %s1482_s21, 4  ;;  %s1503_s28 = scalar_lea.hbm %s1649_s2, %s882_s12  ;;  %s1505_s23 = int_to_ptr.vmem [resolvable:$true] %s641_s23 }
  0x59   : > { %947 = vmatpush3.bf16.msra.mxu0 %v1065_v0  ;;  %986 = vmatpush3.bf16.msra.mxu1 %v1065_v0  ;;  %v1069_v5 = vld [vmem:[#allocation5 + $0x20] sm:$0xff]   ;;  %v1070_v7 = vld [vmem:[#allocation5 + $0x28] sm:$0xff]   ;;  %v1071_v8 = vld [vmem:[#allocation5 + $0x30] sm:$0xff]   ;;  %s618_s11 = scalar_lea.sflag [#allocation4], %s1444_s14  ;;  %s1139_s9 = scalar_lea.vmem %s1505_s23, 1024 }
  0x5a   : > { %948 = vmatprep.subr.bf16.mxu0 %v1066_v1  ;;  %979 = vmatprep.subr.bf16.mxu1 %v1066_v1  ;;  %v1077_v6 = vld [vmem:[%s1450_s29 + $0x20] sm:$0xff]   ;;  %v1072_v9 = vld [vmem:[#allocation5 + $0x38] sm:$0xff]   ;;  %v1074_v10 = vld [vmem:[%s1450_s29 + $0x8] sm:$0xff]   ;;  %p1140_p4 = scmp.ne.s32.totalorder %s1505_s23, %s1139_s9  ;;  %s1275_s26 = smov [#allocation7]  }
  0x5b   : > { %962 = vmatprep.mubr.bf16.mxu0 %v1073_v4  ;;  %970 = vmatprep.mubr.bf16.mxu1 %v1077_v6  ;;  %v1078_v11 = vld [vmem:[%s1450_s29 + $0x28] sm:$0xff]   ;;  %v1075_v12 = vld [vmem:[%s1450_s29 + $0x10] sm:$0xff]   ;;  %v1076_v14 = vld [vmem:[%s1450_s29 + $0x18] sm:$0xff]   ;;  %s1143_s25 = sshll.u32 %s1275_s26, 4  ;;  %s1144_s25 = int_to_ptr.vmem [resolvable:$false] %s1143_s25 }
  0x5c   : > { %v1079_v13 = vld [vmem:[%s1450_s29 + $0x30] sm:$0xff]   ;;  %v1080_v15 = vld [vmem:[%s1450_s29 + $0x38] sm:$0xff]   ;;  %p1141_p6 = pnand %p1140_p4, %p1393_p12  ;;  %s1145_s24 = scalar_lea.vmem %s1144_s25, 2048 }
  0x5d   : > { %949 = vmatpush3.bf16.msra.mxu0 %v1066_v1  ;;  %987 = vmatpush3.bf16.msra.mxu1 %v1066_v1  ;;  %p1146_p11 = scmp.lt.s32.totalorder %s1505_s23, %s1144_s25  ;;  %p1147_p13 = scmp.lt.s32.totalorder %s1145_s24, %s1139_s9 }
  0x5e   : > { %950 = vmatprep.subr.bf16.mxu0 %v1067_v2  ;;  %980 = vmatprep.subr.bf16.mxu1 %v1067_v2  ;;  %p1142_p8 = pneg %p1141_p6 }
  0x5f   : > { %p1148_p3 = por %p1147_p13, %p1146_p11 }
  0x61   : > { %951 = vmatpush3.bf16.msra.mxu0 %v1067_v2  ;;  %988 = vmatpush3.bf16.msra.mxu1 %v1067_v2  ;;  %p1149_p7 = pnand %p1148_p3, %p1142_p8 }
  0x62   : > { %952 = vmatprep.subr.bf16.mxu0 %v1068_v3  ;;  %981 = vmatprep.subr.bf16.mxu1 %v1068_v3 }
  0x65   : > { %953 = vmatpush3.bf16.msra.mxu0 %v1068_v3  ;;  %989 = vmatpush3.bf16.msra.mxu1 %v1068_v3 }
  0x66   : > { %954 = vmatprep.subr.bf16.mxu0 %v1069_v5  ;;  %982 = vmatprep.subr.bf16.mxu1 %v1069_v5 }
  0x69   : > { %955 = vmatpush3.bf16.msra.mxu0 %v1069_v5  ;;  %990 = vmatpush3.bf16.msra.mxu1 %v1069_v5 }
  0x6a   : > { %956 = vmatprep.subr.bf16.mxu0 %v1070_v7  ;;  %983 = vmatprep.subr.bf16.mxu1 %v1070_v7 }
  0x6d   : > { %957 = vmatpush3.bf16.msra.mxu0 %v1070_v7  ;;  %991 = vmatpush3.bf16.msra.mxu1 %v1070_v7 }
  0x6e   : > { %958 = vmatprep.subr.bf16.mxu0 %v1071_v8  ;;  %984 = vmatprep.subr.bf16.mxu1 %v1071_v8 }
  0x71   : > { %959 = vmatpush3.bf16.msra.mxu0 %v1071_v8  ;;  %992 = vmatpush3.bf16.msra.mxu1 %v1071_v8 }
  0x72   : > { %960 = vmatprep.subr.bf16.mxu0 %v1072_v9  ;;  %985 = vmatprep.subr.bf16.mxu1 %v1072_v9 }
  0x75   : > { %961 = vmatpush3.bf16.msra.mxu0 %v1072_v9  ;;  %993 = vmatpush3.bf16.msra.mxu1 %v1072_v9 }
  0x78   : > { %963 = vmatmul.mubr.bf16.vlgmr.msra.gmra.mrb[0].mxu0 %v1074_v10  ;;  %971 = vmatmul.mubr.bf16.vlgmr.msra.gmra.mrb[0].mxu1 %v1078_v11 }
  0x79   : > { %966 = vmatprep.mubr.bf16.mxu0 %v1075_v12  ;;  %974 = vmatprep.mubr.bf16.mxu1 %v1079_v13 }
  0x80   : > { %967 = vmatmul.mubr.bf16.gmra.mrb[4].mxu0 %v1076_v14  ;;  %975 = vmatmul.mubr.bf16.gmra.mrb[4].mxu1 %v1080_v15 }
 0x14b   : > { %v964_v16 = vpop.f32.mrb[0].mxu0  ;;  %v1468_v17 = vpop.f32.mrb[0].mxu1 }
 0x14c   : > { %v414_v18 = vpop.f32.mrb[1].mxu0  ;;  %v1470_v19 = vpop.f32.mrb[1].mxu1  ;;  %v581_v31 = vmul.f32 %v964_v16, %v964_v16 }
 0x14d   : > { %v965_v20 = vpop.f32.mrb[2].mxu0  ;;  %v1472_v21 = vpop.f32.mrb[2].mxu1  ;;  %v579_v22 = vmul.f32 %v414_v18, %v414_v18  ;;  %v587_v61 = vmul.f32 %v1470_v19, %v1470_v19 }
 0x14e   : > { %v891_v23 = vpack.c.bf16 %v965_v20, %v964_v16  ;;  %v417_v24 = vpop.f32.mrb[3].mxu0  ;;  %v911_v25 = vpack.c.bf16 %v1472_v21, %v1468_v17  ;;  %v1476_v26 = vpop.f32.mrb[3].mxu1  ;;  %v582_v34 = vmul.f32 %v965_v20, %v965_v20 }
 0x14f   : > { %v886_v27 = vpack.c.bf16 %v417_v24, %v414_v18  ;;  %v557_v28 = vadd.f32 %v417_v24, %v414_v18  ;;  %v580_v29 = vmul.f32 %v417_v24, %v417_v24  ;;  %v906_v30 = vpack.c.bf16 %v1476_v26, %v1470_v19 }
 0x150   : > { %923 = vst [vmem:[%s1482_s21 + $0x8] sm:$0xff] %v891_v23   ;;  %927 = vst [vmem:[%s1482_s21 + $0x28] sm:$0xff] %v911_v25  }
 0x151   : > { %887 = vst [vmem:[%s1482_s21] sm:$0xff] %v886_v27   ;;  %v558_v32 = vadd.f32 %v964_v16, %v557_v28  ;;  %v595_v33 = vadd.f32 %v580_v29, %v579_v22  ;;  %926 = vst [vmem:[%s1482_s21 + $0x20] sm:$0xff] %v906_v30  }
 0x153   : > { %v596_v35 = vadd.f32 %v595_v33, %v581_v31  ;;  %v968_v36 = vpop.f32.mrb[4].mxu0  ;;  %v559_v37 = vadd.f32 %v965_v20, %v558_v32  ;;  %v1488_v38 = vpop.f32.mrb[4].mxu1 }
 0x154   : > { %v430_v39 = vpop.f32.mrb[5].mxu0  ;;  %v1491_v40 = vpop.f32.mrb[5].mxu1  ;;  %v585_v55 = vmul.f32 %v968_v36, %v968_v36 }
 0x155   : > { %v560_v41 = vadd.f32 %v559_v37, %v430_v39  ;;  %v583_v42 = vmul.f32 %v430_v39, %v430_v39  ;;  %v597_v43 = vadd.f32 %v596_v35, %v582_v34  ;;  %v969_v44 = vpop.f32.mrb[6].mxu0  ;;  %v1494_v45 = vpop.f32.mrb[6].mxu1 }
 0x156   : > { %v901_v46 = vpack.c.bf16 %v969_v44, %v968_v36  ;;  %v433_v47 = vpop.f32.mrb[7].mxu0  ;;  %v921_v48 = vpack.c.bf16 %v1494_v45, %v1488_v38  ;;  %v1498_v49 = vpop.f32.mrb[7].mxu1  ;;  %v586_v58 = vmul.f32 %v969_v44, %v969_v44 }
 0x157   : > { %v598_v50 = vadd.f32 %v597_v43, %v583_v42  ;;  %v896_v51 = vpack.c.bf16 %v433_v47, %v430_v39  ;;  %v561_v52 = vadd.f32 %v560_v41, %v433_v47  ;;  %v584_v53 = vmul.f32 %v433_v47, %v433_v47 }
 0x158   : > { %925 = vst [vmem:[%s1482_s21 + $0x18] sm:$0xff] %v901_v46   ;;  %929 = vst [vmem:[%s1482_s21 + $0x38] sm:$0xff] %v921_v48   ;;  %v916_v54 = vpack.c.bf16 %v1498_v49, %v1491_v40 }
 0x159   : > { %924 = vst [vmem:[%s1482_s21 + $0x10] sm:$0xff] %v896_v51   ;;  %v562_v56 = vadd.f32 %v968_v36, %v561_v52  ;;  %v599_v57 = vadd.f32 %v598_v50, %v584_v53 }
 0x15a   : > { %928 = vst [vmem:[%s1482_s21 + $0x30] sm:$0xff] %v916_v54  }
 0x15b   : > { %v600_v59 = vadd.f32 %v599_v57, %v585_v55  ;;  %v563_v60 = vadd.f32 %v969_v44, %v562_v56 }
 0x15c   : > { %1152 = shalt.err (!%p1149_p7)
}
 0x15d   : > { %s1153_s6 = scalar_lea.hbm %s1503_s28, 1024  ;;  %s1157_s29 = scalar_lea.hbm %s1649_s2, 4096 }
 0x15e   : > { %p1154_p9 = scmp.ne.s32.totalorder %s1503_s28, %s1153_s6  ;;  %p1158_p5 = scmp.lt.u32.totalorder %s1503_s28, %s1649_s2 }
 0x15f   : > { %p1159_p10 = scmp.lt.u32.totalorder %s1157_s29, %s1153_s6  ;;  %p1161_p4 = scmp.lt.u32.totalorder %s1153_s6, %s1503_s28 }
 0x160   : > { %p1155_p1 = pnand %p1154_p9, %p1393_p12 }
 0x161   : > { %p1160_p2 = por %p1159_p10, %p1158_p5 }
 0x162   : > { %p1156_p0 = pneg %p1155_p1 }
 0x163   : > { %p1162_p6 = por %p1161_p4, %p1160_p2 }
 0x165   : > { %p1163_p8 = pnand %p1162_p6, %p1156_p0 }
 0x167   : > { %1166 = shalt.err (!%p1163_p8)
}
 0x168   : > { %s1276_s13 = smov 64   ;;  %s1277_s10 = smov 4   ;;  %v564_v62 = vadd.f32 %v563_v60, %v1470_v19  ;;  %v601_v63 = vadd.f32 %v600_v59, %v586_v58  ;;  %v588_v2 = vmul.f32 %v1476_v26, %v1476_v26  ;;  %v589_v3 = vmul.f32 %v1468_v17, %v1468_v17 }
 0x169   : > { %1000 = dma.vmem_to_hbm [thread:$0]  (%p1393_p12), %s1505_s23, 1024, %s1503_s28, %s618_s11, %s1276_s13, %s1276_s13, %s1277_s10   ;;  %v590_v6 = vmul.f32 %v1472_v21, %v1472_v21  ;;  %v591_v9 = vmul.f32 %v1491_v40, %v1491_v40  ;;  %v592_v14 = vmul.f32 %v1498_v49, %v1498_v49  ;;  %v593_v15 = vmul.f32 %v1488_v38, %v1488_v38 }
 0x16a   : > { %v602_v0 = vadd.f32 %v601_v63, %v587_v61  ;;  %v565_v1 = vadd.f32 %v564_v62, %v1476_v26  ;;  %v594_v18 = vmul.f32 %v1494_v45, %v1494_v45  ;;  %s822_s23 = sshll.u32 %s1444_s14, 3  ;;  %s622_s28 = sand.u32 1, %s1326_s19  }
 0x16b   : > { %s861_s11 = sshll.u32 %s1326_s19, 7  ;;  %s241_s9 = scalar_lea.vmem [#allocation8], %s822_s23 }
 0x16c   : > { %v566_v4 = vadd.f32 %v1468_v17, %v565_v1  ;;  %v603_v5 = vadd.f32 %v602_v0, %v588_v2  ;;  %s657_s26 = sshll.u32 %s241_s9, 4  ;;  %s1564_s25 = scalar_lea.vmem [#allocation10], %s822_s23  ;;  %s1572_s26 = int_to_ptr.vmem [resolvable:$true] %s657_s26 }
 0x16d   : > { %s670_s24 = sshll.u32 %s1564_s25, 4  ;;  %s1570_s7 = scalar_lea.hbm %s1650_s3, %s861_s11  ;;  %s1579_s24 = int_to_ptr.vmem [resolvable:$true] %s670_s24 }
 0x16e   : > { %v604_v7 = vadd.f32 %v603_v5, %v589_v3  ;;  %v567_v8 = vadd.f32 %v1472_v21, %v566_v4  ;;  %s1577_s29 = scalar_lea.hbm %s1651_s4, %s861_s11  ;;  %s1581_s21 = scalar_lea.sflag [#allocation9], %s622_s28 }
 0x16f   : > { %s1167_s12 = scalar_lea.vmem %s1572_s26, 128  ;;  %s1278_s13 = smov [#allocation8]  }
 0x170   : > { %v568_v10 = vadd.f32 %v567_v8, %v1491_v40  ;;  %v605_v11 = vadd.f32 %v604_v7, %v590_v6  ;;  %p1168_p11 = scmp.ne.s32.totalorder %s1572_s26, %s1167_s12  ;;  %s1171_s10 = sshll.u32 %s1278_s13, 4  ;;  %s1172_s10 = int_to_ptr.vmem [resolvable:$false] %s1171_s10 }
 0x171   : > { %s1173_s23 = scalar_lea.vmem %s1172_s10, 256  ;;  %p1174_p7 = scmp.lt.s32.totalorder %s1572_s26, %s1172_s10 }
 0x172   : > { %v606_v12 = vadd.f32 %v605_v11, %v591_v9  ;;  %v569_v13 = vadd.f32 %v568_v10, %v1498_v49  ;;  %p1169_p13 = pnand %p1168_p11, %p1393_p12  ;;  %p1175_p9 = scmp.lt.s32.totalorder %s1173_s23, %s1167_s12 }
 0x174   : > { %v570_v16 = vadd.f32 %v1488_v38, %v569_v13  ;;  %v607_v17 = vadd.f32 %v606_v12, %v592_v14  ;;  %p1170_p3 = pneg %p1169_p13  ;;  %p1176_p1 = por %p1175_p9, %p1174_p7 }
 0x176   : > { %v571_v19 = vadd.f32 %v1494_v45, %v570_v16  ;;  %v608_v20 = vadd.f32 %v607_v17, %v593_v15  ;;  %p1177_p0 = pnand %p1176_p1, %p1170_p3 }
 0x178   : > { %v572_v21 = vrot.slane %v571_v19, 4  ;;  %v609_v22 = vadd.f32 %v608_v20, %v594_v18 }
 0x17a   : > { %v573_v23 = vadd.f32 %v572_v21, %v571_v19  ;;  %v610_v24 = vrot.slane %v609_v22, 4 }
 0x17c   : > { %v574_v25 = vrot.slane %v573_v23, 2  ;;  %v611_v26 = vadd.f32 %v610_v24, %v609_v22 }
 0x17e   : > { %v575_v27 = vadd.f32 %v574_v25, %v573_v23  ;;  %v612_v28 = vrot.slane %v611_v26, 2 }
 0x180   : > { %v576_v29 = vrot.slane %v575_v27, 1  ;;  %v613_v30 = vadd.f32 %v612_v28, %v611_v26 }
 0x182   : > { %v614_v31 = vrot.slane %v613_v30, 1  ;;  %v577_v32 = vadd.f32 %v576_v29, %v575_v27 }
 0x184   : > { %578 = vst [vmem:[%s241_s9] sm:$0xff] %v577_v32  ;;  %v615_v33 = vadd.f32 %v614_v31, %v613_v30 }
 0x185   : > { %1180 = shalt.err (!%p1177_p0)
}
 0x186   : > { %s1181_s28 = scalar_lea.hbm %s1570_s7, 128  ;;  %s1185_s14 = scalar_lea.hbm %s1650_s3, 512 }
 0x187   : > { %p1182_p5 = scmp.ne.s32.totalorder %s1570_s7, %s1181_s28  ;;  %p1186_p4 = scmp.lt.u32.totalorder %s1570_s7, %s1650_s3 }
 0x188   : > { %p1187_p6 = scmp.lt.u32.totalorder %s1185_s14, %s1181_s28  ;;  %p1189_p11 = scmp.lt.u32.totalorder %s1181_s28, %s1570_s7 }
 0x189   : > { %p1183_p10 = pnand %p1182_p5, %p1393_p12 }
 0x18a   : > { %p1188_p8 = por %p1187_p6, %p1186_p4 }
 0x18b   : > { %p1184_p2 = pneg %p1183_p10 }
 0x18c   : > { %p1190_p13 = por %p1189_p11, %p1188_p8 }
 0x18e   : > { %p1191_p3 = pnand %p1190_p13, %p1184_p2 }
 0x190   : > { %1194 = shalt.err (!%p1191_p3)
}
 0x191   : > { %1001 = dma.vmem_to_hbm [thread:$0]  (%p1393_p12), %s1572_s26, 128, %s1570_s7, %s1581_s21   ;;  %616 = vst [vmem:[%s1564_s25] sm:$0xff] %v615_v33 }
 0x192   : > { %s1195_s8 = scalar_lea.vmem %s1579_s24, 128  ;;  %s1279_s12 = smov [#allocation10]  }
 0x193   : > { %p1196_p7 = scmp.ne.s32.totalorder %s1579_s24, %s1195_s8  ;;  %s1199_s13 = sshll.u32 %s1279_s12, 4  ;;  %s1200_s13 = int_to_ptr.vmem [resolvable:$false] %s1199_s13 }
 0x194   : > { %s1201_s10 = scalar_lea.vmem %s1200_s13, 256  ;;  %p1202_p0 = scmp.lt.s32.totalorder %s1579_s24, %s1200_s13 }
 0x195   : > { %p1197_p9 = pnand %p1196_p7, %p1393_p12  ;;  %p1203_p5 = scmp.lt.s32.totalorder %s1201_s10, %s1195_s8 }
 0x197   : > { %p1198_p1 = pneg %p1197_p9  ;;  %p1204_p10 = por %p1203_p5, %p1202_p0 }
 0x199   : > { %p1205_p2 = pnand %p1204_p10, %p1198_p1 }
 0x19b   : > { %1208 = shalt.err (!%p1205_p2)
}
 0x19c   : > { %s1209_s26 = scalar_lea.hbm %s1577_s29, 128  ;;  %s1213_s23 = scalar_lea.hbm %s1651_s4, 512 }
 0x19d   : > { %p1210_p4 = scmp.ne.s32.totalorder %s1577_s29, %s1209_s26  ;;  %p1214_p11 = scmp.lt.u32.totalorder %s1577_s29, %s1651_s4 }
 0x19e   : > { %p1215_p13 = scmp.lt.u32.totalorder %s1213_s23, %s1209_s26  ;;  %p1217_p7 = scmp.lt.u32.totalorder %s1209_s26, %s1577_s29 }
 0x19f   : > { %p1211_p6 = pnand %p1210_p4, %p1393_p12 }
 0x1a0   : > { %p1216_p3 = por %p1215_p13, %p1214_p11 }
 0x1a1   : > { %p1212_p8 = pneg %p1211_p6 }
 0x1a2   : > { %p1218_p9 = por %p1217_p7, %p1216_p3 }
 0x1a4   : > { %p1219_p1 = pnand %p1218_p9, %p1212_p8 }
 0x1a6   : > { %1222 = shalt.err (!%p1219_p1)
}
 0x1a7   : > { %1002 = dma.vmem_to_hbm [thread:$0]  (%p1393_p12), %s1579_s24, 128, %s1577_s29, %s1581_s21  }
 0x1a8 PF: > { %p1027_p0 = scmp.ge.s32.totalorder %s1269_s18, 2  ;;  %s682_s9 = sand.u32 1, %s1257_s15  }
 0x1a9   : > { %p1666_p5 = scmp.ne.s32.totalorder %s1656_s22, 0  ;;  %s683_s14 = scalar_lea.sflag [#allocation4], %s682_s9 }
 0x1ab   : > { %p1015_p10 = pnand %p1027_p0, %p1666_p5 }
 0x1ad   : > { %1248 = dma.done.wait (!%p1015_p10), %s683_s14, 1024  }
 0x1ae   : > { %1250 = vsyncadd (!%p1015_p10), %s683_s14, 4294966272  ;;  %s691_s6 = sand.u32 1, %s811_s20  }
 0x1af   : > { %s692_s19 = scalar_lea.sflag [#allocation9], %s691_s6 }
 0x1b0   : > { %1252 = dma.done.wait (!%p1015_p10), %s692_s19, 256  }
 0x1b1   : > { %1254 = vsyncadd (!%p1015_p10), %s692_s19, 4294967040  ;;  %p22_p12 = scmp.ge.s32.totalorder %s1360_s27, 6   ;;  %s1667_s15 = smov %s1261_s16 }
 0x1b2   : > { %s1668_s16 = smov %s1265_s17  ;;  %s1669_s17 = smov %s1389_s30 }
 0x1b3   : > { %s1670_s18 = smov %s1360_s27  ;;  %24 = sbr.rel (!%p22_p12) target bundleno = 8 (0x8), region = 109 }
 0x1ba   :  { %706 = vsyncpa [#allocation3], 1 }
 0x1bb   :  { %708 = vsyncpa [#allocation3 + $0x1], 1 }
 0x1bc   :  { %709 = vsyncpa [#allocation6], 1 }
 0x1bd   :  { %710 = vsyncpa [#allocation4], 1 }
 0x1be   :  { %712 = vsyncpa [#allocation4 + $0x1], 1 }
 0x1bf   :  { %713 = vsyncpa [#allocation9], 1 }
 0x1c0   :  { %715 = vsyncpa [#allocation9 + $0x1], 1 }

// kernel: basic_block_forward.7
= control target key start
LH: loop header
LB: loop body
LE: loop exit
PB: predicated region body
PF: predicated region fallthrough
CT: control target
= control target key end

     0   :  { %s1667_s0 = inlined_call_operand.hbm [shape: bf16[512,128], index: 0, kind: input, shape index: {}]   ;;  %s1668_s1 = inlined_call_operand.hbm [shape: bf16[512,128], index: 1, kind: input, shape index: {}]   ;;  %s1669_s2 = inlined_call_operand.hbm [shape: f32[1,128], index: 2, kind: input, shape index: {}]   ;;  %s1670_s3 = inlined_call_operand.hbm [shape: f32[1,128], index: 3, kind: input, shape index: {}]   ;;  %s1671_s4 = inlined_call_operand.hbm [shape: f32[1,128], index: 4, kind: input, shape index: {}]   ;;  %s1672_s5 = inlined_call_operand.hbm [shape: f32[1,128], index: 5, kind: input, shape index: {}]   ;;  %s1673_s6 = inlined_call_operand.hbm [shape: f32[512,128], index: 6, kind: output, shape index: {}]  }
   0x1   :  { %1677 = sst [smem:[#allocation20_spill]] %s1667_s0 }
   0x2   :  { %1678 = sst [smem:[#allocation21_spill]] %s1669_s2 }
   0x3   :  { %1679 = sst [smem:[#allocation22_spill]] %s1670_s3 }
   0x4   :  { %11 = vsyncpa [#allocation3], 0 }
   0x5   :  { %13 = vsyncpa [#allocation3 + $0x1], 0 }
   0x6   :  { %14 = vsyncpa [#allocation6], 0 }
   0x7   :  { %16 = vsyncpa [#allocation6 + $0x1], 0 }
   0x8   :  { %17 = vsyncpa [#allocation9], 0 }
   0x9   :  { %18 = vsyncpa [#allocation12], 0 }
   0xa   :  { %19 = vsyncpa [#allocation4], 0 }
   0xb   :  { %21 = vsyncpa [#allocation4 + $0x1], 0  ;;  %s1224_s21 = smov 0   ;;  %s1226_s22 = smov 0  }
   0xc   :  { %s1228_s23 = smov 0   ;;  %s1230_s24 = smov 0  }
   0xd LB: > { %s1245_s25 = sadd.s32 4294967295, %s1176_s24   ;;  %s715_s26 = sadd.s32 4294967294, %s1176_s24   ;;  %s1176_s24 = sphi %s1230_s24, %s1703_s24   ;;  %s1172_s23 = sphi %s1228_s23, %s1702_s23   ;;  %s1168_s22 = sphi %s1226_s22, %s1701_s22   ;;  %s1164_s21 = sphi %s1224_s21, %s1700_s21  }
   0xe   : > { %p47_p0 = scmp.ne.s32.totalorder %s1168_s22, %s1164_s21  ;;  %p1674_p1 = scmp.eq.s32.totalorder %s1245_s25, 0 }
   0xf   : > { %p187_p3 = scmp.eq.s32.totalorder %s715_s26, 3  ;;  %p716_p5 = scmp.ge.s32.totalorder %s1176_s24, 1 }
  0x10   : > { %p1254_p4 = por %p1674_p1, %p47_p0  ;;  %p194_p7 = scmp.lt.s32.totalorder %s1176_s24, 5 }
  0x11   : > { %p1259_p6 = por %p187_p3, %p47_p0  ;;  %s1178_s30 = smov [#allocation7]  }
  0x12   : > { %s1680_s27 = scalar_select %p1254_p4, 1, 0 }
  0x13   : > { %s1681_s28 = scalar_select %p1259_p6, 1, 0 }
  0x14   : > { %p1264_p8 = pnand %p716_p5, %p194_p7  ;;  %s207_s7 = sshll.u32 %s1178_s30, 4  ;;  %s208_s7 = int_to_ptr.vmem [resolvable:$true] %s207_s7 }
  0x15   : > { %s1179_s8 = smov [#allocation8]   ;;  %s1180_s11 = smov [#allocation10]  }
  0x16   : > { %s1682_s29 = scalar_select %p1264_p8, 1, 0 }
  0x17   : > { %p848_p9 = pneg %p1264_p8  ;;  %s218_s9 = sshll.u32 %s1179_s8, 4  ;;  %s1276_s9 = int_to_ptr.vmem [resolvable:$true] %s218_s9 }
  0x18   : > { %s229_s12 = sshll.u32 %s1180_s11, 4  ;;  %s1684_s2 = sld [smem:[#allocation21_spill]]  ;;  %s1278_s12 = int_to_ptr.vmem [resolvable:$true] %s229_s12 }
  0x19   : > { %p1272_p10 = pnand %p848_p9, %p1674_p1 }
  0x1b   : > { %p1288_p12 = pneg %p1272_p10 }
  0x1e   : > { %s922_s15 = scalar_lea.hbm %s1684_s2, 16 }
  0x1f   : > { %p923_p11 = scmp.ne.s32.totalorder %s1684_s2, %s922_s15  ;;  %p929_p3 = scmp.lt.u32.totalorder %s922_s15, %s1684_s2 }
  0x21   : > { %p925_p13 = pnand %p1288_p12, %p923_p11 }
  0x23   : > { %p926_p0 = pneg %p925_p13 }
  0x25   : > { %p931_p5 = pnand %p929_p3, %p926_p0 }
  0x27   : > { %934 = shalt.err (!%p931_p5)
}
  0x28   : > { %s935_s26 = scalar_lea.vmem %s208_s7, 16  ;;  %s942_s30 = scalar_lea.vmem %s208_s7, 32 }
  0x29   : > { %p936_p7 = scmp.ne.s32.totalorder %s208_s7, %s935_s26  ;;  %p943_p2 = scmp.lt.s32.totalorder %s208_s7, %s208_s7 }
  0x2a   : > { %p944_p6 = scmp.lt.s32.totalorder %s942_s30, %s935_s26 }
  0x2b   : > { %p938_p9 = pnand %p936_p7, %p1288_p12 }
  0x2c   : > { %p945_p4 = por %p944_p6, %p943_p2 }
  0x2d   : > { %p939_p1 = pneg %p938_p9 }
  0x2f   : > { %p946_p8 = pnand %p945_p4, %p939_p1 }
  0x31   : > { %949 = shalt.err (!%p946_p8)
}
  0x32   : > { %851 = dma.hbm_to_vmem [thread:$0]  (!%p1272_p10), %s1684_s2, 16, %s208_s7, [#allocation6]  }
  0x33   : > { %s1686_s3 = sld [smem:[#allocation22_spill]] }
  0x39   : > { %s950_s15 = scalar_lea.hbm %s1686_s3, 16 }
  0x3a   : > { %p951_p11 = scmp.ne.s32.totalorder %s1686_s3, %s950_s15  ;;  %p957_p1 = scmp.lt.u32.totalorder %s950_s15, %s1686_s3 }
  0x3c   : > { %p953_p13 = pnand %p951_p11, %p1288_p12 }
  0x3e   : > { %p954_p2 = pneg %p953_p13 }
  0x40   : > { %p959_p4 = pnand %p957_p1, %p954_p2 }
  0x42   : > { %962 = shalt.err (!%p959_p4)
}
  0x43   : > { %s963_s7 = scalar_lea.vmem %s1276_s9, 16  ;;  %s970_s26 = scalar_lea.vmem %s1276_s9, 32 }
  0x44   : > { %p964_p6 = scmp.ne.s32.totalorder %s1276_s9, %s963_s7  ;;  %p971_p3 = scmp.lt.s32.totalorder %s1276_s9, %s1276_s9 }
  0x45   : > { %p972_p5 = scmp.lt.s32.totalorder %s970_s26, %s963_s7 }
  0x46   : > { %p966_p8 = pnand %p964_p6, %p1288_p12 }
  0x47   : > { %p973_p7 = por %p972_p5, %p971_p3 }
  0x48   : > { %p967_p0 = pneg %p966_p8 }
  0x4a   : > { %p974_p9 = pnand %p973_p7, %p967_p0 }
  0x4c   : > { %977 = shalt.err (!%p974_p9)
}
  0x4d   : > { %854 = dma.hbm_to_vmem [thread:$0]  (!%p1272_p10), %s1686_s3, 16, %s1276_s9, [#allocation9]  }
  0x4e   : > { %s978_s14 = scalar_lea.hbm %s1671_s4, 16 }
  0x4f   : > { %p979_p11 = scmp.ne.s32.totalorder %s1671_s4, %s978_s14  ;;  %p985_p1 = scmp.lt.u32.totalorder %s978_s14, %s1671_s4 }
  0x51   : > { %p981_p13 = pnand %p979_p11, %p1288_p12 }
  0x53   : > { %p982_p2 = pneg %p981_p13 }
  0x55   : > { %p987_p4 = pnand %p985_p1, %p982_p2 }
  0x57   : > { %990 = shalt.err (!%p987_p4)
}
  0x58   : > { %s991_s9 = scalar_lea.vmem %s1278_s12, 16  ;;  %s998_s20 = scalar_lea.vmem %s1278_s12, 32 }
  0x59   : > { %p992_p6 = scmp.ne.s32.totalorder %s1278_s12, %s991_s9  ;;  %p999_p3 = scmp.lt.s32.totalorder %s1278_s12, %s1278_s12 }
  0x5a   : > { %p1000_p5 = scmp.lt.s32.totalorder %s998_s20, %s991_s9 }
  0x5b   : > { %p994_p8 = pnand %p992_p6, %p1288_p12 }
  0x5c   : > { %p1001_p7 = por %p1000_p5, %p999_p3 }
  0x5d   : > { %p995_p0 = pneg %p994_p8 }
  0x5f   : > { %p1002_p9 = pnand %p1001_p7, %p995_p0 }
  0x61   : > { %1005 = shalt.err (!%p1002_p9)
}
  0x62   : > { %857 = dma.hbm_to_vmem [thread:$0]  (!%p1272_p10), %s1671_s4, 16, %s1278_s12, [#allocation9]  }
  0x63   : > { %s1181_s30 = smov [#allocation11]   ;;  %s1006_s14 = scalar_lea.hbm %s1672_s5, 16 }
  0x64   : > { %s240_s8 = sshll.u32 %s1181_s30, 4  ;;  %p1007_p11 = scmp.ne.s32.totalorder %s1672_s5, %s1006_s14  ;;  %s241_s8 = int_to_ptr.vmem [resolvable:$true] %s240_s8 }
  0x65   : > { %p1013_p1 = scmp.lt.u32.totalorder %s1006_s14, %s1672_s5 }
  0x66   : > { %p1009_p13 = pnand %p1007_p11, %p1288_p12 }
  0x68   : > { %p1010_p2 = pneg %p1009_p13 }
  0x6a   : > { %p1015_p4 = pnand %p1013_p1, %p1010_p2 }
  0x6c   : > { %1018 = shalt.err (!%p1015_p4)
}
  0x6d   : > { %s1019_s12 = scalar_lea.vmem %s241_s8, 16  ;;  %s1026_s9 = scalar_lea.vmem %s241_s8, 32 }
  0x6e   : > { %p1020_p6 = scmp.ne.s32.totalorder %s241_s8, %s1019_s12  ;;  %p1027_p3 = scmp.lt.s32.totalorder %s241_s8, %s241_s8 }
  0x6f   : > { %p1028_p5 = scmp.lt.s32.totalorder %s1026_s9, %s1019_s12 }
  0x70   : > { %p1022_p8 = pnand %p1020_p6, %p1288_p12 }
  0x71   : > { %p1029_p7 = por %p1028_p5, %p1027_p3 }
  0x72   : > { %p1023_p0 = pneg %p1022_p8 }
  0x74   : > { %p1030_p9 = pnand %p1029_p7, %p1023_p0 }
  0x76   : > { %1033 = shalt.err (!%p1030_p9)
}
  0x77   : > { %860 = dma.hbm_to_vmem [thread:$0]  (!%p1272_p10), %s1672_s5, 16, %s241_s8, [#allocation12]  }
  0x78   : > { %s1371_s18 = sadd.s32 1, %s1176_s24   ;;  %s34_s10 = sadd.s32 1, %s1172_s23 }
  0x79   : > { %s31_s26 = ssub.s32 %s1176_s24, %s1371_s18  ;;  %p41_p12 = scmp.ne.s32.totalorder %s1172_s23, %s1168_s22 }
  0x7a   : > { %p32_p11 = scmp.eq.s32.totalorder %s31_s26, 0  ;;  %p42_p13 = scmp.eq.s32.totalorder %s1176_s24, 0 }
  0x7b   : > { %p1687_p2 = scmp.eq.s32.totalorder %s1245_s25, 3  ;;  %p876_p4 = scmp.lt.s32.totalorder %s1176_s24, 4 }
  0x7c   : > { %s1387_s11 = scalar_select %p32_p11, %s1172_s23, %s34_s10  }
  0x7d   : > { %p1381_p1 = por %p1687_p2, %p41_p12  ;;  %p43_p6 = por %p42_p13, %p41_p12 }
  0x7e   : > { %s251_s13 = sand.u32 1, %s1172_s23   ;;  %s745_s8 = sshll.u32 %s1176_s24, 10 }
  0x7f   : > { %s1390_s14 = sshll.u32 %s251_s13, 6  ;;  %s1689_s0 = sld [smem:[#allocation20_spill]] }
  0x80   : > { %s255_s19 = scalar_lea.vmem [#allocation2], %s1390_s14  ;;  %p1403_p10 = pnand %p876_p4, %p43_p6 }
  0x81   : > { %s262_s12 = sshll.u32 %s255_s19, 4  ;;  %s1407_s20 = scalar_lea.sflag [#allocation3], %s251_s13  ;;  %s1401_s12 = int_to_ptr.vmem [resolvable:$true] %s262_s12 }
  0x82   : > { %p1036_p0 = pneg %p1403_p10 }
  0x85   : > { %s1398_s17 = scalar_lea.hbm %s1689_s0, %s745_s8  ;;  %s1039_s15 = scalar_lea.hbm %s1689_s0, 4096 }
  0x86   : > { %s1034_s7 = scalar_lea.hbm %s1398_s17, 1024  ;;  %p1040_p7 = scmp.lt.u32.totalorder %s1398_s17, %s1689_s0 }
  0x87   : > { %p1035_p8 = scmp.ne.s32.totalorder %s1398_s17, %s1034_s7  ;;  %p1041_p9 = scmp.lt.u32.totalorder %s1039_s15, %s1034_s7 }
  0x88   : > { %p1043_p11 = scmp.lt.u32.totalorder %s1034_s7, %s1398_s17 }
  0x89   : > { %p1037_p3 = pnand %p1036_p0, %p1035_p8  ;;  %p1042_p12 = por %p1041_p9, %p1040_p7 }
  0x8b   : > { %p1038_p5 = pneg %p1037_p3  ;;  %p1044_p13 = por %p1043_p11, %p1042_p12 }
  0x8d   : > { %p1045_p2 = pnand %p1044_p13, %p1038_p5 }
  0x8f   : > { %1048 = shalt.err (!%p1045_p2)
}
  0x90   : > { %s1049_s13 = scalar_lea.vmem %s1401_s12, 1024  ;;  %s1182_s10 = smov [#allocation2]  }
  0x91   : > { %p1050_p4 = scmp.ne.s32.totalorder %s1401_s12, %s1049_s13  ;;  %s1054_s26 = sshll.u32 %s1182_s10, 4  ;;  %s1055_s26 = int_to_ptr.vmem [resolvable:$false] %s1054_s26 }
  0x92   : > { %s1056_s16 = scalar_lea.vmem %s1055_s26, 2048  ;;  %p1057_p3 = scmp.lt.s32.totalorder %s1401_s12, %s1055_s26 }
  0x93   : > { %p1052_p6 = pnand %p1050_p4, %p1036_p0  ;;  %p1058_p7 = scmp.lt.s32.totalorder %s1056_s16, %s1049_s13 }
  0x95   : > { %p1053_p8 = pneg %p1052_p6  ;;  %p1059_p9 = por %p1058_p7, %p1057_p3 }
  0x97   : > { %p1060_p12 = pnand %p1059_p9, %p1053_p8 }
  0x99   : > { %1063 = shalt.err (!%p1060_p12)
}
  0x9a   : > { %s1183_s7 = smov 64   ;;  %s1184_s15 = smov 4  }
  0x9b   : > { %864 = dma.hbm_to_vmem [thread:$0]  (!%p1403_p10), %s1398_s17, 1024, %s1401_s12, %s1407_s20, %s1183_s7, %s1183_s7, %s1184_s15  }
  0x9c   : > { %s1443_s10 = scalar_lea.hbm %s1668_s1, %s745_s8  ;;  %s276_s26 = scalar_lea.vmem [#allocation5], %s1390_s14 }
  0x9d   : > { %s283_s16 = sshll.u32 %s276_s26, 4  ;;  %s272_s0 = sand.u32 1, %s1176_s24   ;;  %s1446_s16 = int_to_ptr.vmem [resolvable:$true] %s283_s16 }
  0x9e   : > { %s1449_s2 = scalar_lea.sflag [#allocation6], %s272_s0  ;;  %s1064_s3 = scalar_lea.hbm %s1443_s10, 1024 }
  0x9f   : > { %p1065_p5 = scmp.ne.s32.totalorder %s1443_s10, %s1064_s3  ;;  %s1069_s12 = scalar_lea.hbm %s1668_s1, 4096 }
  0xa0   : > { %p1070_p2 = scmp.lt.u32.totalorder %s1443_s10, %s1668_s1  ;;  %p1071_p4 = scmp.lt.u32.totalorder %s1069_s12, %s1064_s3 }
  0xa1   : > { %p1067_p11 = pnand %p1065_p5, %p1036_p0  ;;  %p1073_p8 = scmp.lt.u32.totalorder %s1064_s3, %s1443_s10 }
  0xa2   : > { %p1072_p6 = por %p1071_p4, %p1070_p2 }
  0xa3   : > { %p1068_p13 = pneg %p1067_p11 }
  0xa4   : > { %p1074_p3 = por %p1073_p8, %p1072_p6 }
  0xa6   : > { %p1075_p7 = pnand %p1074_p3, %p1068_p13 }
  0xa8   : > { %1078 = shalt.err (!%p1075_p7)
}
  0xa9   : > { %s1079_s0 = scalar_lea.vmem %s1446_s16, 1024  ;;  %s1185_s14 = smov [#allocation5]  }
  0xaa   : > { %p1080_p9 = scmp.ne.s32.totalorder %s1446_s16, %s1079_s0  ;;  %s1084_s13 = sshll.u32 %s1185_s14, 4  ;;  %s1085_s13 = int_to_ptr.vmem [resolvable:$false] %s1084_s13 }
  0xab   : > { %s1086_s26 = scalar_lea.vmem %s1085_s13, 2048  ;;  %p1087_p11 = scmp.lt.s32.totalorder %s1446_s16, %s1085_s13 }
  0xac   : > { %p1082_p12 = pnand %p1080_p9, %p1036_p0  ;;  %p1088_p2 = scmp.lt.s32.totalorder %s1086_s26, %s1079_s0 }
  0xae   : > { %p1083_p5 = pneg %p1082_p12  ;;  %p1089_p4 = por %p1088_p2, %p1087_p11 }
  0xb0   : > { %p1090_p6 = pnand %p1089_p4, %p1083_p5 }
  0xb2   : > { %1093 = shalt.err (!%p1090_p6)
}
  0xb3   : > { %867 = dma.hbm_to_vmem [thread:$0]  (!%p1403_p10), %s1443_s10, 1024, %s1446_s16, %s1449_s2, %s1183_s7, %s1183_s7, %s1184_s15  }
  0xb4   : > { %p1691_p0 = scmp.ne.s32.totalorder %s1682_s29, 0 }
  0xb5   : > { %s1481_s3 = sand.u32 (!%p1691_p0), 1, %s1168_s22   ;;  %p1692_p13 = scmp.ne.s32.totalorder (!%p1691_p0), %s1680_s27, 0 }
  0xb6   : > { %295 = sbr.rel (%p1691_p0) target bundleno = 257 (0x101), region = 44  ;;  %s729_s17 = sshll.u32 (!%p1691_p0), %s1481_s3, 6 }
  0xb7   : > { %s298_s8 = scalar_lea.sflag (!%p1691_p0), [#allocation3], %s1481_s3  ;;  %s1485_s12 = scalar_lea.vmem (!%p1691_p0), [#allocation2], %s729_s17 }
  0xbd   : > { %1139 = dma.done.wait (%p1692_p13), %s298_s8, 1024  }
  0xbe   : > { %1141 = vsyncadd (%p1692_p13), %s298_s8, 4294966272  ;;  %s306_s2 = sand.u32 1, %s1245_s25   ;;  %s1492_s9 = scalar_lea.vmem [#allocation5], %s729_s17 }
  0xbf   : > { %s307_s29 = scalar_lea.sflag [#allocation6], %s306_s2 }
  0xc0   : > { %1143 = dma.done.wait (%p1692_p13), %s307_s29, 1024  }
  0xc1   : > { %1145 = vsyncadd (%p1692_p13), %s307_s29, 4294966272  ;;  %p1693_p10 = scmp.eq.s32.totalorder %s1245_s25, 0 }
  0xc3   : > { %1147 = dma.done.wait (%p1693_p10), [#allocation6], 16   ;;  %p1694_p8 = pmov %p1693_p10 }
  0xc5   : > { %1149 = vsyncadd (%p1694_p8), [#allocation6], 4294967280  ;;  %p1695_p3 = pmov %p1694_p8 }
  0xc7   : > { %1151 = dma.done.wait (%p1695_p3), [#allocation9], 32   ;;  %p1696_p7 = pmov %p1695_p3 }
  0xc8   : > { %p1697_p9 = pmov %p1695_p3 }
  0xc9   : > { %1153 = vsyncadd (%p1696_p7), [#allocation9], 4294967264 }
  0xca   : > { %1155 = dma.done.wait (%p1697_p9), [#allocation12], 16   ;;  %p1698_p12 = pmov %p1695_p3 }
  0xcb   : > { %v749_v0 = vld [vmem:[%s1485_s12] sm:$0xff]   ;;  %v812_v9 = vld [vmem:[%s1485_s12 + $0x8] sm:$0xff]   ;;  %v813_v20 = vld [vmem:[%s1485_s12 + $0x10] sm:$0xff]   ;;  %s735_s27 = sshll.u32 %s1481_s3, 7  ;;  %s747_s15 = sshll.u32 %s1245_s25, 11 }
  0xcc   : > { %1157 = vsyncadd (%p1698_p12), [#allocation12], 4294967280  ;;  %v1511_v1 = vld [vmem:[#allocation7] ss:$0 sm:$0xff]  ;;  %v750_v2 = vunpack.c.l.bf16 %v749_v0  ;;  %v1514_v4 = vld [vmem:[#allocation10] ss:$0 sm:$0xff]  ;;  %v751_v5 = vunpack.c.h.bf16 %v749_v0  ;;  %v754_v14 = vunpack.c.l.bf16 %v812_v9  ;;  %v755_v18 = vunpack.c.h.bf16 %v812_v9  ;;  %s1620_s19 = scalar_lea.hbm %s1673_s6, %s747_s15 }
  0xcd   : > { %v781_v3 = vld [vmem:[%s1492_s9] sm:$0xff]   ;;  %v819_v10 = vld [vmem:[%s1492_s9 + $0x8] sm:$0xff]   ;;  %v820_v21 = vld [vmem:[%s1492_s9 + $0x10] sm:$0xff]   ;;  %v758_v32 = vunpack.c.l.bf16 %v813_v20  ;;  %v759_v41 = vunpack.c.h.bf16 %v813_v20  ;;  %s1549_s7 = scalar_lea.vmem [#allocation13], %s735_s27  ;;  %s568_s0 = scalar_lea.sflag [#allocation4], %s1481_s3 }
  0xce   : > { %v1516_v6 = vld [vmem:[#allocation8] ss:$0 sm:$0xff]  ;;  %v782_v7 = vunpack.c.l.bf16 %v781_v3  ;;  %v783_v8 = vunpack.c.h.bf16 %v781_v3  ;;  %v402_v11 = vmul.f32 %v750_v2, %v1511_v1  ;;  %v1521_v12 = vld [vmem:[#allocation11] ss:$0 sm:$0xff]  ;;  %v403_v13 = vmul.f32 %v751_v5, %v1511_v1  ;;  %v814_v42 = vld [vmem:[%s1485_s12 + $0x18] sm:$0xff]   ;;  %s581_s10 = sshll.u32 %s1549_s7, 4  ;;  %s1622_s10 = int_to_ptr.vmem [resolvable:$true] %s581_s10 }
  0xcf   : > { %v786_v15 = vunpack.c.l.bf16 %v819_v10  ;;  %v787_v19 = vunpack.c.h.bf16 %v819_v10  ;;  %v404_v24 = vmul.f32 %v754_v14, %v1511_v1  ;;  %v405_v28 = vmul.f32 %v755_v18, %v1511_v1  ;;  %v821_v43 = vld [vmem:[%s1492_s9 + $0x18] sm:$0xff]   ;;  %v815_v52 = vld [vmem:[%s1485_s12 + $0x20] sm:$0xff]   ;;  %v816_v14 = vld [vmem:[%s1485_s12 + $0x28] sm:$0xff]   ;;  %s1094_s14 = scalar_lea.vmem %s1622_s10, 2048  ;;  %s1186_s25 = smov [#allocation13]  }
  0xd0   : > { %v480_v16 = vmul.f32 %v782_v7, %v1514_v4  ;;  %v481_v17 = vmul.f32 %v783_v8, %v1514_v4  ;;  %v425_v22 = vadd.f32 %v1516_v6, %v402_v11  ;;  %v426_v23 = vadd.f32 %v1516_v6, %v403_v13  ;;  %v822_v57 = vld [vmem:[%s1492_s9 + $0x20] sm:$0xff]   ;;  %p1095_p5 = scmp.ne.s32.totalorder %s1622_s10, %s1094_s14  ;;  %s1098_s13 = sshll.u32 %s1186_s25, 4  ;;  %s1099_s13 = int_to_ptr.vmem [resolvable:$false] %s1098_s13 }
  0xd1   : > { %v482_v25 = vmul.f32 %v786_v15, %v1514_v4  ;;  %v483_v29 = vmul.f32 %v787_v19, %v1514_v4  ;;  %v427_v30 = vadd.f32 %v1516_v6, %v404_v24  ;;  %v790_v33 = vunpack.c.l.bf16 %v820_v21  ;;  %v823_v19 = vld [vmem:[%s1492_s9 + $0x28] sm:$0xff]   ;;  %s1100_s26 = scalar_lea.vmem %s1099_s13, 4096  ;;  %p1101_p4 = scmp.lt.s32.totalorder %s1622_s10, %s1099_s13 }
  0xd2   : > { %v503_v26 = vadd.f32 %v1521_v12, %v480_v16  ;;  %v504_v27 = vadd.f32 %v1521_v12, %v481_v17  ;;  %v428_v36 = vadd.f32 %v1516_v6, %v405_v28  ;;  %v406_v39 = vmul.f32 %v758_v32, %v1511_v1  ;;  %v817_v32 = vld [vmem:[%s1485_s12 + $0x30] sm:$0xff]   ;;  %p1096_p11 = pnand %p1095_p5, %p1381_p1  ;;  %p1102_p6 = scmp.lt.s32.totalorder %s1100_s26, %s1094_s14 }
  0xd3   : > { %v505_v31 = vadd.f32 %v1521_v12, %v482_v25  ;;  %v506_v37 = vadd.f32 %v1521_v12, %v483_v29  ;;  %v484_v40 = vmul.f32 %v790_v33, %v1514_v4  ;;  %v791_v47 = vunpack.c.h.bf16 %v820_v21  ;;  %v824_v33 = vld [vmem:[%s1492_s9 + $0x30] sm:$0xff]  }
  0xd4   : > { %v519_v34 = vadd.f32 %v503_v26, %v425_v22  ;;  %v520_v35 = vadd.f32 %v504_v27, %v426_v23  ;;  %v429_v49 = vadd.f32 %v1516_v6, %v406_v39  ;;  %v407_v51 = vmul.f32 %v759_v41, %v1511_v1  ;;  %p1097_p2 = pneg %p1096_p11  ;;  %p1103_p0 = por %p1102_p6, %p1101_p4 }
  0xd5   : > { %v521_v38 = vadd.f32 %v505_v31, %v427_v30  ;;  %v522_v46 = vadd.f32 %v506_v37, %v428_v36  ;;  %v507_v50 = vadd.f32 %v1521_v12, %v484_v40  ;;  %v485_v54 = vmul.f32 %v791_v47, %v1514_v4 }
  0xd6   : > { %v535_v44 = vmax.f32 %v519_v34, 0.0  ;;  %v536_v45 = vmax.f32 %v520_v35, 0.0  ;;  %v762_v55 = vunpack.c.l.bf16 %v814_v42  ;;  %v794_v56 = vunpack.c.l.bf16 %v821_v43  ;;  %p1104_p13 = pnand %p1103_p0, %p1097_p2 }
  0xd7   : > { %v537_v48 = vmax.f32 %v521_v38, 0.0  ;;  %v538_v53 = vmax.f32 %v522_v46, 0.0  ;;  %v523_v58 = vadd.f32 %v507_v50, %v429_v49  ;;  %v430_v59 = vadd.f32 %v1516_v6, %v407_v51  ;;  %v818_v46 = vld [vmem:[%s1485_s12 + $0x38] sm:$0xff]  }
  0xd8   : > { %551 = vst [vmem:[%s1549_s7] sm:$0xff] %v535_v44  ;;  %552 = vst [vmem:[%s1549_s7 + $0x8] sm:$0xff] %v536_v45  ;;  %v763_v60 = vunpack.c.h.bf16 %v814_v42  ;;  %v795_v61 = vunpack.c.h.bf16 %v821_v43  ;;  %v508_v62 = vadd.f32 %v1521_v12, %v485_v54  ;;  %v408_v63 = vmul.f32 %v762_v55, %v1511_v1  ;;  %v825_v55 = vld [vmem:[%s1492_s9 + $0x38] sm:$0xff]  }
  0xd9   : > { %553 = vst [vmem:[%s1549_s7 + $0x10] sm:$0xff] %v537_v48  ;;  %554 = vst [vmem:[%s1549_s7 + $0x18] sm:$0xff] %v538_v53  ;;  %v486_v0 = vmul.f32 %v794_v56, %v1514_v4  ;;  %v766_v2 = vunpack.c.l.bf16 %v815_v52  ;;  %v539_v3 = vmax.f32 %v523_v58, 0.0  ;;  %v798_v8 = vunpack.c.l.bf16 %v822_v57 }
  0xda   : > { %v409_v5 = vmul.f32 %v763_v60, %v1511_v1  ;;  %v487_v7 = vmul.f32 %v795_v61, %v1514_v4  ;;  %v524_v9 = vadd.f32 %v508_v62, %v430_v59  ;;  %v431_v10 = vadd.f32 %v1516_v6, %v408_v63 }
  0xdb   : > { %v509_v11 = vadd.f32 %v1521_v12, %v486_v0  ;;  %v410_v13 = vmul.f32 %v766_v2, %v1511_v1  ;;  %555 = vst [vmem:[%s1549_s7 + $0x20] sm:$0xff] %v539_v3  ;;  %v488_v17 = vmul.f32 %v798_v8, %v1514_v4  ;;  %v767_v18 = vunpack.c.h.bf16 %v815_v52 }
  0xdc   : > { %v432_v15 = vadd.f32 %v1516_v6, %v409_v5  ;;  %v510_v16 = vadd.f32 %v1521_v12, %v487_v7  ;;  %v540_v20 = vmax.f32 %v524_v9, 0.0  ;;  %v799_v23 = vunpack.c.h.bf16 %v822_v57 }
  0xdd   : > { %v525_v21 = vadd.f32 %v509_v11, %v431_v10  ;;  %v433_v22 = vadd.f32 %v1516_v6, %v410_v13  ;;  %v511_v25 = vadd.f32 %v1521_v12, %v488_v17  ;;  %v411_v26 = vmul.f32 %v767_v18, %v1511_v1 }
  0xde   : > { %v526_v24 = vadd.f32 %v510_v16, %v432_v15  ;;  %v770_v27 = vunpack.c.l.bf16 %v816_v14  ;;  %556 = vst [vmem:[%s1549_s7 + $0x28] sm:$0xff] %v540_v20  ;;  %v489_v29 = vmul.f32 %v799_v23, %v1514_v4  ;;  %v802_v30 = vunpack.c.l.bf16 %v823_v19 }
  0xdf   : > { %v541_v28 = vmax.f32 %v525_v21, 0.0  ;;  %v771_v31 = vunpack.c.h.bf16 %v816_v14  ;;  %v527_v35 = vadd.f32 %v511_v25, %v433_v22  ;;  %v434_v36 = vadd.f32 %v1516_v6, %v411_v26 }
  0xe0   : > { %v542_v34 = vmax.f32 %v526_v24, 0.0  ;;  %v412_v37 = vmul.f32 %v770_v27, %v1511_v1  ;;  %v512_v38 = vadd.f32 %v1521_v12, %v489_v29  ;;  %v490_v39 = vmul.f32 %v802_v30, %v1514_v4 }
  0xe1   : > { %557 = vst [vmem:[%s1549_s7 + $0x30] sm:$0xff] %v541_v28  ;;  %v413_v40 = vmul.f32 %v771_v31, %v1511_v1  ;;  %v803_v41 = vunpack.c.h.bf16 %v823_v19  ;;  %v543_v42 = vmax.f32 %v527_v35, 0.0  ;;  %v774_v44 = vunpack.c.l.bf16 %v817_v32 }
  0xe2   : > { %558 = vst [vmem:[%s1549_s7 + $0x38] sm:$0xff] %v542_v34  ;;  %v435_v43 = vadd.f32 %v1516_v6, %v412_v37  ;;  %v806_v45 = vunpack.c.l.bf16 %v824_v33  ;;  %v528_v47 = vadd.f32 %v512_v38, %v434_v36  ;;  %v513_v48 = vadd.f32 %v1521_v12, %v490_v39 }
  0xe3   : > { %v436_v49 = vadd.f32 %v1516_v6, %v413_v40  ;;  %v491_v50 = vmul.f32 %v803_v41, %v1514_v4  ;;  %559 = vst [vmem:[%s1549_s7 + $0x40] sm:$0xff] %v543_v42  ;;  %v414_v51 = vmul.f32 %v774_v44, %v1511_v1  ;;  %v775_v53 = vunpack.c.h.bf16 %v817_v32 }
  0xe4   : > { %v492_v52 = vmul.f32 %v806_v45, %v1514_v4  ;;  %v807_v54 = vunpack.c.h.bf16 %v824_v33  ;;  %v544_v56 = vmax.f32 %v528_v47, 0.0  ;;  %v529_v57 = vadd.f32 %v513_v48, %v435_v43 }
  0xe5   : > { %v514_v58 = vadd.f32 %v1521_v12, %v491_v50  ;;  %v778_v59 = vunpack.c.l.bf16 %v818_v46  ;;  %v437_v60 = vadd.f32 %v1516_v6, %v414_v51  ;;  %v415_v62 = vmul.f32 %v775_v53, %v1511_v1 }
  0xe6   : > { %v515_v61 = vadd.f32 %v1521_v12, %v492_v52  ;;  %v493_v63 = vmul.f32 %v807_v54, %v1514_v4  ;;  %560 = vst [vmem:[%s1549_s7 + $0x48] sm:$0xff] %v544_v56  ;;  %v545_v0 = vmax.f32 %v529_v57, 0.0  ;;  %v810_v5 = vunpack.c.l.bf16 %v825_v55 }
  0xe7   : > { %v530_v2 = vadd.f32 %v514_v58, %v436_v49  ;;  %v416_v3 = vmul.f32 %v778_v59, %v1511_v1  ;;  %v438_v8 = vadd.f32 %v1516_v6, %v415_v62  ;;  %v779_v10 = vunpack.c.h.bf16 %v818_v46 }
  0xe8   : > { %v531_v7 = vadd.f32 %v515_v61, %v437_v60  ;;  %v516_v9 = vadd.f32 %v1521_v12, %v493_v63  ;;  %561 = vst [vmem:[%s1549_s7 + $0x50] sm:$0xff] %v545_v0  ;;  %v494_v14 = vmul.f32 %v810_v5, %v1514_v4  ;;  %v811_v15 = vunpack.c.h.bf16 %v825_v55 }
  0xe9   : > { %v546_v11 = vmax.f32 %v530_v2, 0.0  ;;  %v439_v13 = vadd.f32 %v1516_v6, %v416_v3  ;;  %v417_v18 = vmul.f32 %v779_v10, %v1511_v1 }
  0xea   : > { %v547_v16 = vmax.f32 %v531_v7, 0.0  ;;  %v532_v17 = vadd.f32 %v516_v9, %v438_v8  ;;  %v517_v19 = vadd.f32 %v1521_v12, %v494_v14  ;;  %v495_v20 = vmul.f32 %v811_v15, %v1514_v4 }
  0xeb   : > { %562 = vst [vmem:[%s1549_s7 + $0x58] sm:$0xff] %v546_v11  ;;  %v440_v22 = vadd.f32 %v1516_v6, %v417_v18 }
  0xec   : > { %563 = vst [vmem:[%s1549_s7 + $0x60] sm:$0xff] %v547_v16  ;;  %v548_v21 = vmax.f32 %v532_v17, 0.0  ;;  %v533_v23 = vadd.f32 %v517_v19, %v439_v13  ;;  %v518_v24 = vadd.f32 %v1521_v12, %v495_v20 }
  0xee   : > { %564 = vst [vmem:[%s1549_s7 + $0x68] sm:$0xff] %v548_v21  ;;  %v549_v1 = vmax.f32 %v533_v23, 0.0  ;;  %v534_v25 = vadd.f32 %v518_v24, %v440_v22 }
  0xf0   : > { %565 = vst [vmem:[%s1549_s7 + $0x70] sm:$0xff] %v549_v1  ;;  %v550_v4 = vmax.f32 %v534_v25, 0.0 }
  0xf2   : > { %566 = vst [vmem:[%s1549_s7 + $0x78] sm:$0xff] %v550_v4 }
  0xf3   : > { %1107 = shalt.err (!%p1104_p13)
}
  0xf4   : > { %s1108_s17 = scalar_lea.hbm %s1620_s19, 2048  ;;  %s1112_s2 = scalar_lea.hbm %s1673_s6, 8192 }
  0xf5   : > { %p1109_p10 = scmp.ne.s32.totalorder %s1620_s19, %s1108_s17  ;;  %p1113_p7 = scmp.lt.u32.totalorder %s1620_s19, %s1673_s6 }
  0xf6   : > { %p1114_p9 = scmp.lt.u32.totalorder %s1112_s2, %s1108_s17  ;;  %p1116_p5 = scmp.lt.u32.totalorder %s1108_s17, %s1620_s19 }
  0xf7   : > { %p1110_p8 = pnand %p1109_p10, %p1381_p1 }
  0xf8   : > { %p1115_p12 = por %p1114_p9, %p1113_p7 }
  0xf9   : > { %p1111_p3 = pneg %p1110_p8 }
  0xfa   : > { %p1117_p11 = por %p1116_p5, %p1115_p12 }
  0xfc   : > { %p1118_p2 = pnand %p1117_p11, %p1111_p3 }
  0xfe   : > { %1121 = shalt.err (!%p1118_p2)
}
  0xff   : > { %s1187_s27 = smov 128   ;;  %s1188_s7 = smov 8  }
 0x100   : > { %846 = dma.vmem_to_hbm [thread:$0]  (%p1381_p1), %s1622_s10, 2048, %s1620_s19, %s568_s0, %s1187_s27, %s1187_s27, %s1188_s7  }
 0x101 PF: > { %p881_p4 = scmp.ge.s32.totalorder %s1176_s24, 2  ;;  %s596_s15 = sand.u32 1, %s1164_s21  }
 0x102   : > { %p1699_p6 = scmp.ne.s32.totalorder %s1681_s28, 0  ;;  %s597_s16 = scalar_lea.sflag [#allocation4], %s596_s15 }
 0x104   : > { %p869_p0 = pnand %p881_p4, %p1699_p6 }
 0x106   : > { %1159 = dma.done.wait (!%p869_p0), %s597_s16, 2048  }
 0x107   : > { %1161 = vsyncadd (!%p869_p0), %s597_s16, 4294965248  ;;  %p24_p13 = scmp.ge.s32.totalorder %s1371_s18, 6   ;;  %s1700_s21 = smov %s1168_s22 }
 0x108   : > { %s1701_s22 = smov %s1172_s23  ;;  %s1702_s23 = smov %s1387_s11 }
 0x109   : > { %s1703_s24 = smov %s1371_s18  ;;  %26 = sbr.rel (!%p24_p13) target bundleno = 13 (0xd), region = 118 }
 0x110   :  { %602 = vsyncpa [#allocation3], 1 }
 0x111   :  { %604 = vsyncpa [#allocation3 + $0x1], 1 }
 0x112   :  { %605 = vsyncpa [#allocation6], 1 }
 0x113   :  { %607 = vsyncpa [#allocation6 + $0x1], 1 }
 0x114   :  { %608 = vsyncpa [#allocation9], 1 }
 0x115   :  { %609 = vsyncpa [#allocation12], 1 }
 0x116   :  { %610 = vsyncpa [#allocation4], 1 }
 0x117   :  { %612 = vsyncpa [#allocation4 + $0x1], 1 }

// kernel: basic_block_forward.6
= control target key start
LH: loop header
LB: loop body
LE: loop exit
PB: predicated region body
PF: predicated region fallthrough
CT: control target
= control target key end

     0   :  { %s2992_s0 = inlined_call_operand.hbm [shape: bf16[512,128], index: 0, kind: input, shape index: {}]   ;;  %s2993_s1 = inlined_call_operand.hbm [shape: bf16[128,128], index: 1, kind: input, shape index: {}]   ;;  %s2994_s2 = inlined_call_operand.hbm [shape: bf16[512,128], index: 2, kind: input, shape index: {}]   ;;  %s2995_s3 = inlined_call_operand.hbm [shape: bf16[128,128], index: 3, kind: input, shape index: {}]   ;;  %s2996_s4 = inlined_call_operand.hbm [shape: bf16[512,128], index: 4, kind: output, shape index: {0}]   ;;  %s2997_s5 = inlined_call_operand.hbm [shape: bf16[512,128], index: 5, kind: output, shape index: {1}]   ;;  %s2998_s6 = inlined_call_operand.hbm [shape: f32[32,128], index: 6, kind: output, shape index: {2}]   ;;  %s2999_s7 = inlined_call_operand.hbm [shape: f32[32,128], index: 7, kind: output, shape index: {3}]   ;;  %s3000_s8 = inlined_call_operand.hbm [shape: f32[32,128], index: 8, kind: output, shape index: {4}]   ;;  %s3001_s9 = inlined_call_operand.hbm [shape: f32[32,128], index: 9, kind: output, shape index: {5}]  }
   0x1   :  { %3025 = sst [smem:[#allocation31_spill]] %s2992_s0 }
   0x2   :  { %3026 = sst [smem:[#allocation32_spill]] %s2993_s1 }
   0x3   :  { %3027 = sst [smem:[#allocation33_spill]] %s3000_s8 }
   0x4   :  { %3028 = sst [smem:[#allocation34_spill]] %s3001_s9 }
   0x5   :  { %15 = vsyncpa [#allocation3], 0 }
   0x6   :  { %17 = vsyncpa [#allocation3 + $0x1], 0 }
   0x7   :  { %18 = vsyncpa [#allocation6], 0 }
   0x8   :  { %19 = vsyncpa [#allocation4], 0 }
   0x9   :  { %21 = vsyncpa [#allocation4 + $0x1], 0 }
   0xa   :  { %22 = vsyncpa [#allocation11], 0 }
   0xb   :  { %24 = vsyncpa [#allocation11 + $0x1], 0 }
   0xc   :  { %25 = vsyncpa [#allocation14], 0 }
   0xd   :  { %27 = vsyncpa [#allocation14 + $0x1], 0 }
   0xe   :  { %28 = vsyncpa [#allocation17], 0 }
   0xf   :  { %30 = vsyncpa [#allocation17 + $0x1], 0  ;;  %s2443_s30 = smov 0   ;;  %s2445_s10 = smov 0  }
  0x10   :  { %s2447_s11 = smov 0   ;;  %s2449_s12 = smov 0  }
  0x11 LB: > { %3029 = sst [smem:[#allocation26_spill]] %s2365_s30  ;;  %s2464_s13 = sadd.s32 4294967295, %s2377_s12   ;;  %s2377_s12 = sphi %s2449_s12, %s3066_s12   ;;  %s2373_s11 = sphi %s2447_s11, %s3068_s11   ;;  %s2369_s10 = sphi %s2445_s10, %s3070_s10   ;;  %s2365_s30 = sphi %s2443_s30, %s3069_s30  }
  0x12   : > { %3030 = sst [smem:[#allocation27_spill]] %s2373_s11  ;;  %s3002_s14 = sadd.s32 4294967294, %s2377_s12  }
  0x13   : > { %p56_p0 = scmp.ne.s32.totalorder %s2369_s10, %s2365_s30  ;;  %p3003_p1 = scmp.eq.s32.totalorder %s2464_s13, 0 }
  0x14   : > { %p154_p3 = scmp.eq.s32.totalorder %s3002_s14, 3  ;;  %p1571_p5 = scmp.ge.s32.totalorder %s2377_s12, 1 }
  0x15   : > { %p2475_p4 = por %p3003_p1, %p56_p0  ;;  %p291_p7 = scmp.lt.s32.totalorder %s2377_s12, 5 }
  0x16   : > { %p2480_p6 = por %p154_p3, %p56_p0  ;;  %s2379_s18 = smov [#allocation5]  }
  0x17   : > { %s3031_s15 = scalar_select %p2475_p4, 1, 0 }
  0x18   : > { %s3032_s16 = scalar_select %p2480_p6, 1, 0 }
  0x19   : > { %p2485_p8 = pnand %p1571_p5, %p291_p7  ;;  %s303_s19 = sshll.u32 %s2379_s18, 4  ;;  %s304_s19 = int_to_ptr.vmem [resolvable:$true] %s303_s19 }
  0x1a   : > { %3033 = sst [smem:[#allocation28_spill]] %s3032_s16  ;;  %s2498_s21 = sadd.s32 1, %s2377_s12  }
  0x1b   : > { %s3034_s17 = scalar_select %p2485_p8, 1, 0 }
  0x1c   : > { %p1922_p9 = pneg %p2485_p8  ;;  %3036 = sst [smem:[#allocation29_spill]] %s2498_s21 }
  0x1d   : > { %s43_s22 = sadd.s32 1, %s2373_s11  ;;  %s40_s23 = ssub.s32 %s2377_s12, %s2498_s21 }
  0x1e   : > { %p2493_p10 = pnand %p1922_p9, %p3003_p1  ;;  %s3037_s1 = sld [smem:[#allocation32_spill]] }
  0x20   : > { %p3015_p12 = pneg %p2493_p10 }
  0x24   : > { %s2031_s26 = scalar_lea.hbm %s3037_s1, 1024 }
  0x25   : > { %p2032_p11 = scmp.ne.s32.totalorder %s3037_s1, %s2031_s26  ;;  %p2038_p3 = scmp.lt.u32.totalorder %s2031_s26, %s3037_s1 }
  0x27   : > { %p2034_p13 = pnand %p3015_p12, %p2032_p11 }
  0x29   : > { %p2035_p0 = pneg %p2034_p13 }
  0x2b   : > { %p2040_p5 = pnand %p2038_p3, %p2035_p0 }
  0x2d   : > { %2043 = shalt.err (!%p2040_p5)
}
  0x2e   : > { %s2044_s14 = scalar_lea.vmem %s304_s19, 1024  ;;  %p2052_p2 = scmp.lt.s32.totalorder %s304_s19, %s304_s19 }
  0x2f   : > { %p2045_p7 = scmp.ne.s32.totalorder %s304_s19, %s2044_s14  ;;  %p2053_p6 = scmp.lt.s32.totalorder %s2044_s14, %s2044_s14 }
  0x31   : > { %p2047_p9 = pnand %p2045_p7, %p3015_p12  ;;  %p2054_p4 = por %p2053_p6, %p2052_p2 }
  0x33   : > { %p2048_p1 = pneg %p2047_p9 }
  0x35   : > { %p2055_p8 = pnand %p2054_p4, %p2048_p1 }
  0x37   : > { %2058 = shalt.err (!%p2055_p8)
}
  0x38   : > { %s3010_s24 = smov 64   ;;  %s3013_s25 = smov 4  }
  0x39   : > { %1925 = dma.hbm_to_vmem [thread:$0]  (!%p2493_p10), %s3037_s1, 1024, %s304_s19, [#allocation6], %s3010_s24, %s3010_s24, %s3013_s25  }
  0x3a   : > { %p41_p1 = scmp.eq.s32.totalorder %s40_s23, 0  ;;  %p50_p2 = scmp.ne.s32.totalorder %s2373_s11, %s2369_s10 }
  0x3b   : > { %p51_p4 = scmp.eq.s32.totalorder %s2377_s12, 0  ;;  %p1957_p6 = scmp.lt.s32.totalorder %s2377_s12, 4 }
  0x3c   : > { %s2533_s27 = scalar_select %p41_p1, %s2373_s11, %s43_s22  }
  0x3d   : > { %p52_p8 = por %p51_p4, %p50_p2  ;;  %p3039_p11 = scmp.eq.s32.totalorder %s2464_s13, 3 }
  0x3e   : > { %3038 = sst [smem:[#allocation30_spill]] %s2533_s27  ;;  %s330_s29 = sand.u32 1, %s2377_s12  }
  0x3f   : > { %p2537_p13 = por %p3039_p11, %p50_p2  ;;  %s332_s18 = sand.u32 1, %s2373_s11  }
  0x40   : > { %s1575_s21 = sshll.u32 %s332_s18, 6  ;;  %s3012_s16 = sshll.u32 %s2377_s12, 10 }
  0x41   : > { %s3040_s28 = scalar_select %p2537_p13, 1, 0 }
  0x42   : > { %s3041_s0 = sld [smem:[#allocation31_spill]]  ;;  %s334_s22 = scalar_lea.vmem [#allocation2], %s1575_s21 }
  0x43   : > { %s341_s23 = sshll.u32 %s334_s22, 4  ;;  %p2553_p0 = pnand %p1957_p6, %p52_p8  ;;  %s2551_s23 = int_to_ptr.vmem [resolvable:$true] %s341_s23 }
  0x44   : > { %s355_s18 = scalar_lea.vmem [#allocation7], %s1575_s21  ;;  %s2559_s30 = scalar_lea.sflag [#allocation3], %s330_s29 }
  0x45   : > { %s3042_s26 = scalar_select %p2553_p0, 1, 0 }
  0x46   : > { %s2557_s24 = sshll.u32 %s355_s18, 4  ;;  %p3020_p5 = pneg %p2553_p0  ;;  %s2598_s24 = int_to_ptr.vmem [resolvable:$true] %s2557_s24 }
  0x48   : > { %s2549_s19 = scalar_lea.hbm %s3041_s0, %s3012_s16  ;;  %s2064_s25 = scalar_lea.hbm %s3041_s0, 4096 }
  0x49   : > { %s2059_s14 = scalar_lea.hbm %s2549_s19, 1024  ;;  %p2065_p1 = scmp.lt.u32.totalorder %s2549_s19, %s3041_s0 }
  0x4a   : > { %p2060_p3 = scmp.ne.s32.totalorder %s2549_s19, %s2059_s14  ;;  %p2066_p2 = scmp.lt.u32.totalorder %s2064_s25, %s2059_s14 }
  0x4b   : > { %p2068_p6 = scmp.lt.u32.totalorder %s2059_s14, %s2549_s19 }
  0x4c   : > { %p2062_p7 = pnand %p3020_p5, %p2060_p3  ;;  %p2067_p4 = por %p2066_p2, %p2065_p1 }
  0x4e   : > { %p2063_p9 = pneg %p2062_p7  ;;  %p2069_p8 = por %p2068_p6, %p2067_p4 }
  0x50   : > { %p2070_p11 = pnand %p2069_p8, %p2063_p9 }
  0x52   : > { %2073 = shalt.err (!%p2070_p11)
}
  0x53   : > { %s2074_s21 = scalar_lea.vmem %s2551_s23, 1024  ;;  %s2382_s16 = smov [#allocation2]  }
  0x54   : > { %p2075_p3 = scmp.ne.s32.totalorder %s2551_s23, %s2074_s21  ;;  %s2079_s29 = sshll.u32 %s2382_s16, 4  ;;  %s2080_s29 = int_to_ptr.vmem [resolvable:$false] %s2079_s29 }
  0x55   : > { %s2081_s1 = scalar_lea.vmem %s2080_s29, 2048  ;;  %p2082_p13 = scmp.lt.s32.totalorder %s2551_s23, %s2080_s29 }
  0x56   : > { %p2077_p7 = pnand %p2075_p3, %p3020_p5  ;;  %p2083_p1 = scmp.lt.s32.totalorder %s2081_s1, %s2074_s21 }
  0x58   : > { %p2078_p12 = pneg %p2077_p7  ;;  %p2084_p2 = por %p2083_p1, %p2082_p13 }
  0x5a   : > { %p2085_p4 = pnand %p2084_p2, %p2078_p12 }
  0x5c   : > { %2088 = shalt.err (!%p2085_p4)
}
  0x5d   : > { %s3043_s25 = smov 4   ;;  %s3044_s27 = smov 64  }
  0x5e   : > { %1932 = dma.hbm_to_vmem [thread:$0]  (!%p2553_p0), %s2549_s19, 1024, %s2551_s23, %s2559_s30, %s3044_s27, %s3044_s27, %s3043_s25  }
  0x5f   : > { %s3045_s18 = sshll.u32 %s2377_s12, 10  ;;  %s2383_s16 = smov [#allocation8]  }
  0x60   : > { %s2595_s21 = scalar_lea.hbm %s2994_s2, %s3045_s18  ;;  %s316_s29 = sshll.u32 %s2383_s16, 4  ;;  %s317_s29 = int_to_ptr.vmem [resolvable:$true] %s316_s29 }
  0x61   : > { %s2089_s11 = scalar_lea.hbm %s2995_s3, 1024  ;;  %p3046_p13 = pneg %p2493_p10 }
  0x62   : > { %p2090_p12 = scmp.ne.s32.totalorder %s2995_s3, %s2089_s11  ;;  %p2096_p8 = scmp.lt.u32.totalorder %s2089_s11, %s2995_s3 }
  0x64   : > { %p2092_p9 = pnand %p2090_p12, %p3046_p13 }
  0x66   : > { %p2093_p6 = pneg %p2092_p9 }
  0x68   : > { %p2098_p11 = pnand %p2096_p8, %p2093_p6 }
  0x6a   : > { %2101 = shalt.err (!%p2098_p11)
}
  0x6b   : > { %s2102_s18 = scalar_lea.vmem %s317_s29, 1024  ;;  %p3047_p7 = pmov %p3046_p13 }
  0x6c   : > { %p2103_p3 = scmp.ne.s32.totalorder %s317_s29, %s2102_s18  ;;  %p2110_p4 = scmp.lt.s32.totalorder %s317_s29, %s317_s29 }
  0x6d   : > { %p2111_p5 = scmp.lt.s32.totalorder %s2102_s18, %s2102_s18 }
  0x6e   : > { %p2105_p1 = pnand %p2103_p3, %p3047_p7 }
  0x6f   : > { %p2112_p0 = por %p2111_p5, %p2110_p4 }
  0x70   : > { %p2106_p2 = pneg %p2105_p1 }
  0x72   : > { %p2113_p12 = pnand %p2112_p0, %p2106_p2 }
  0x74   : > { %2116 = shalt.err (!%p2113_p12)
}
  0x75   : > { %1928 = dma.hbm_to_vmem [thread:$0]  (!%p2493_p10), %s2995_s3, 1024, %s317_s29, [#allocation6], %s3044_s27, %s3044_s27, %s3043_s25  }
  0x76   : > { %s2117_s9 = scalar_lea.hbm %s2595_s21, 1024  ;;  %p3048_p9 = scmp.ne.s32.totalorder %s3042_s26, 0 }
  0x77   : > { %p2118_p13 = scmp.ne.s32.totalorder %s2595_s21, %s2117_s9  ;;  %s2122_s14 = scalar_lea.hbm %s2994_s2, 4096 }
  0x78   : > { %p3049_p5 = pneg %p3048_p9  ;;  %p2123_p8 = scmp.lt.u32.totalorder %s2595_s21, %s2994_s2 }
  0x79   : > { %p2124_p11 = scmp.lt.u32.totalorder %s2122_s14, %s2117_s9  ;;  %p2126_p7 = scmp.lt.u32.totalorder %s2117_s9, %s2595_s21 }
  0x7a   : > { %p2120_p0 = pnand %p2118_p13, %p3049_p5 }
  0x7b   : > { %p2125_p3 = por %p2124_p11, %p2123_p8 }
  0x7c   : > { %p2121_p6 = pneg %p2120_p0 }
  0x7d   : > { %p2127_p1 = por %p2126_p7, %p2125_p3 }
  0x7f   : > { %p2128_p2 = pnand %p2127_p1, %p2121_p6 }
  0x81   : > { %2131 = shalt.err (!%p2128_p2)
}
  0x82   : > { %s2132_s29 = scalar_lea.vmem %s2598_s24, 1024  ;;  %p3050_p4 = pmov %p3049_p5 }
  0x83   : > { %p2133_p10 = scmp.ne.s32.totalorder %s2598_s24, %s2132_s29  ;;  %s2384_s1 = smov [#allocation7]  }
  0x84   : > { %s2137_s19 = sshll.u32 %s2384_s1, 4  ;;  %s2138_s19 = int_to_ptr.vmem [resolvable:$false] %s2137_s19 }
  0x85   : > { %p2135_p12 = pnand %p2133_p10, %p3050_p4  ;;  %s2139_s23 = scalar_lea.vmem %s2138_s19, 2048 }
  0x86   : > { %p2140_p5 = scmp.lt.s32.totalorder %s2598_s24, %s2138_s19  ;;  %p2141_p0 = scmp.lt.s32.totalorder %s2139_s23, %s2132_s29 }
  0x87   : > { %p2136_p13 = pneg %p2135_p12 }
  0x88   : > { %p2142_p8 = por %p2141_p0, %p2140_p5 }
  0x8a   : > { %p2143_p11 = pnand %p2142_p8, %p2136_p13 }
  0x8c   : > { %2146 = shalt.err (!%p2143_p11)
}
  0x8d   : > { %1935 = dma.hbm_to_vmem [thread:$0]  (!%p3048_p9), %s2595_s21, 1024, %s2598_s24, %s2559_s30, %s3044_s27, %s3044_s27, %s3043_s25  }
  0x8e   : > { %p3051_p6 = scmp.ne.s32.totalorder %s3034_s17, 0 }
  0x8f   : > { %s2653_s18 = sand.u32 (!%p3051_p6), 1, %s2464_s13   ;;  %s2656_s0 = sand.u32 (!%p3051_p6), 1, %s2369_s10  }
  0x90   : > { %374 = sbr.rel (%p3051_p6) target bundleno = 573 (0x23d), region = 36  ;;  %s2659_s26 = sshll.u32 (!%p3051_p6), %s2656_s0, 6 }
  0x91   : > { %s377_s8 = scalar_lea.sflag (!%p3051_p6), [#allocation3], %s2653_s18  ;;  %s2663_s9 = scalar_lea.vmem (!%p3051_p6), [#allocation2], %s2659_s26 }
  0x92   : > { %p3052_p3 = scmp.ne.s32.totalorder (!%p3051_p6), %s3031_s15, 0 }
  0x97   : > { %2332 = dma.done.wait (%p3052_p3), %s377_s8, 1024  }
  0x98   : > { %2334 = vsyncadd (%p3052_p3), %s377_s8, 4294966272  ;;  %p3053_p9 = scmp.eq.s32.totalorder %s2464_s13, 0 }
  0x9a   : > { %2336 = dma.done.wait (%p3053_p9), [#allocation6], 1024   ;;  %p3054_p7 = pmov %p3053_p9 }
  0x9b   : > { %s2674_s17 = scalar_lea.vmem [#allocation7], %s2659_s26 }
  0x9c   : > { %2338 = vsyncadd (%p3054_p7), [#allocation6], 4294966272 }
  0x9d   : > { %2340 = dma.done.wait (%p3052_p3), %s377_s8, 1024  }
  0x9e   : > { %2342 = vsyncadd (%p3052_p3), %s377_s8, 4294966272  ;;  %p3055_p1 = pmov %p3054_p7 }
  0xa0   : > { %2344 = dma.done.wait (%p3055_p1), [#allocation6], 1024   ;;  %p3056_p2 = pmov %p3055_p1 }
  0xa1   : > { %v1999_v0 = vld [vmem:[#allocation5] sm:$0xff]   ;;  %v2001_v2 = vld [vmem:[#allocation5 + $0x8] sm:$0xff]   ;;  %v2003_v4 = vld [vmem:[#allocation5 + $0x10] sm:$0xff]   ;;  %s2701_s15 = scalar_lea.vmem [#allocation9], %s2659_s26  ;;  %s2705_s24 = scalar_lea.vmem [#allocation10], %s2659_s26 }
  0xa2   : > { %2346 = vsyncadd (%p3056_p2), [#allocation6], 4294966272  ;;  %v2000_v1 = vld [vmem:[#allocation8] sm:$0xff]   ;;  %1834 = vmatprep.subr.bf16.mxu0 %v1999_v0  ;;  %v2002_v3 = vld [vmem:[#allocation8 + $0x8] sm:$0xff]   ;;  %s1236_s30 = sshll.u32 %s2701_s15, 4  ;;  %s1252_s25 = sshll.u32 %s2705_s24, 4  ;;  %s2737_s30 = int_to_ptr.vmem [resolvable:$true] %s1236_s30  ;;  %s2748_s25 = int_to_ptr.vmem [resolvable:$true] %s1252_s25 }
  0xa3   : > { %1866 = vmatprep.subr.bf16.mxu1 %v2000_v1  ;;  %1835 = vmatpush3.bf16.msra.mxu0 %v1999_v0  ;;  %v2004_v5 = vld [vmem:[#allocation8 + $0x10] sm:$0xff]   ;;  %v2005_v6 = vld [vmem:[#allocation5 + $0x18] sm:$0xff]   ;;  %v2007_v8 = vld [vmem:[#allocation5 + $0x20] sm:$0xff]   ;;  %s1706_s27 = sshll.u32 %s2464_s13, 10  ;;  %s1198_s29 = scalar_lea.sflag [#allocation4], %s2656_s0 }
  0xa4   : > { %1867 = vmatpush3.bf16.msra.mxu1 %v2000_v1  ;;  %1836 = vmatprep.subr.bf16.mxu0 %v2001_v2  ;;  %v2006_v7 = vld [vmem:[#allocation8 + $0x18] sm:$0xff]   ;;  %v2008_v9 = vld [vmem:[#allocation8 + $0x20] sm:$0xff]   ;;  %v2009_v10 = vld [vmem:[#allocation5 + $0x28] sm:$0xff]   ;;  %s2733_s20 = scalar_lea.hbm %s2996_s4, %s1706_s27  ;;  %s2744_s16 = scalar_lea.hbm %s2997_s5, %s1706_s27 }
  0xa5   : > { %1868 = vmatprep.subr.bf16.mxu1 %v2002_v3  ;;  %v2010_v11 = vld [vmem:[#allocation8 + $0x28] sm:$0xff]   ;;  %v2015_v12 = vld [vmem:[%s2663_s9] sm:$0xff]   ;;  %v2011_v14 = vld [vmem:[#allocation5 + $0x30] sm:$0xff]   ;;  %s2147_s1 = scalar_lea.vmem %s2737_s30, 1024  ;;  %p3057_p4 = scmp.ne.s32.totalorder %s3040_s28, 0 }
  0xa6   : > { %v2016_v13 = vld [vmem:[%s2674_s17] sm:$0xff]   ;;  %1850 = vmatprep.mubr.bf16.mxu0 %v2015_v12  ;;  %v2012_v15 = vld [vmem:[#allocation8 + $0x30] sm:$0xff]   ;;  %v2013_v16 = vld [vmem:[#allocation5 + $0x38] sm:$0xff]   ;;  %p2148_p10 = scmp.ne.s32.totalorder %s2737_s30, %s2147_s1  ;;  %s2385_s19 = smov [#allocation9]  }
  0xa7   : > { %1837 = vmatpush3.bf16.msra.mxu0 %v2001_v2  ;;  %1882 = vmatprep.mubr.bf16.mxu1 %v2016_v13  ;;  %v2014_v17 = vld [vmem:[#allocation8 + $0x38] sm:$0xff]   ;;  %v2017_v18 = vld [vmem:[%s2663_s9 + $0x8] sm:$0xff]   ;;  %v2019_v20 = vld [vmem:[%s2663_s9 + $0x10] sm:$0xff]   ;;  %s2151_s23 = sshll.u32 %s2385_s19, 4  ;;  %s2152_s23 = int_to_ptr.vmem [resolvable:$false] %s2151_s23 }
  0xa8   : > { %1869 = vmatpush3.bf16.msra.mxu1 %v2002_v3  ;;  %1838 = vmatprep.subr.bf16.mxu0 %v2003_v4  ;;  %v2018_v19 = vld [vmem:[%s2674_s17 + $0x8] sm:$0xff]   ;;  %v2020_v21 = vld [vmem:[%s2674_s17 + $0x10] sm:$0xff]   ;;  %v2021_v22 = vld [vmem:[%s2663_s9 + $0x18] sm:$0xff]   ;;  %p2149_p12 = pnand %p2148_p10, %p3057_p4  ;;  %s2153_s26 = scalar_lea.vmem %s2152_s23, 2048 }
  0xa9   : > { %1870 = vmatprep.subr.bf16.mxu1 %v2004_v5  ;;  %v2022_v23 = vld [vmem:[%s2674_s17 + $0x18] sm:$0xff]   ;;  %v2023_v24 = vld [vmem:[%s2663_s9 + $0x20] sm:$0xff]   ;;  %v2025_v26 = vld [vmem:[%s2663_s9 + $0x28] sm:$0xff]   ;;  %p2154_p5 = scmp.lt.s32.totalorder %s2737_s30, %s2152_s23  ;;  %p2155_p0 = scmp.lt.s32.totalorder %s2153_s26, %s2147_s1 }
  0xaa   : > { %v2024_v25 = vld [vmem:[%s2674_s17 + $0x20] sm:$0xff]   ;;  %v2026_v27 = vld [vmem:[%s2674_s17 + $0x28] sm:$0xff]   ;;  %v2027_v28 = vld [vmem:[%s2663_s9 + $0x30] sm:$0xff]   ;;  %p2150_p13 = pneg %p2149_p12 }
  0xab   : > { %1839 = vmatpush3.bf16.msra.mxu0 %v2003_v4  ;;  %v2028_v29 = vld [vmem:[%s2674_s17 + $0x30] sm:$0xff]   ;;  %v2029_v30 = vld [vmem:[%s2663_s9 + $0x38] sm:$0xff]   ;;  %p2156_p8 = por %p2155_p0, %p2154_p5 }
  0xac   : > { %1871 = vmatpush3.bf16.msra.mxu1 %v2004_v5  ;;  %1840 = vmatprep.subr.bf16.mxu0 %v2005_v6  ;;  %v2030_v31 = vld [vmem:[%s2674_s17 + $0x38] sm:$0xff]  }
  0xad   : > { %1872 = vmatprep.subr.bf16.mxu1 %v2006_v7  ;;  %p2157_p11 = pnand %p2156_p8, %p2150_p13 }
  0xaf   : > { %1841 = vmatpush3.bf16.msra.mxu0 %v2005_v6 }
  0xb0   : > { %1873 = vmatpush3.bf16.msra.mxu1 %v2006_v7  ;;  %1842 = vmatprep.subr.bf16.mxu0 %v2007_v8 }
  0xb1   : > { %1874 = vmatprep.subr.bf16.mxu1 %v2008_v9 }
  0xb3   : > { %1843 = vmatpush3.bf16.msra.mxu0 %v2007_v8 }
  0xb4   : > { %1875 = vmatpush3.bf16.msra.mxu1 %v2008_v9  ;;  %1844 = vmatprep.subr.bf16.mxu0 %v2009_v10 }
  0xb5   : > { %1876 = vmatprep.subr.bf16.mxu1 %v2010_v11 }
  0xb7   : > { %1845 = vmatpush3.bf16.msra.mxu0 %v2009_v10 }
  0xb8   : > { %1877 = vmatpush3.bf16.msra.mxu1 %v2010_v11  ;;  %1846 = vmatprep.subr.bf16.mxu0 %v2011_v14 }
  0xb9   : > { %1878 = vmatprep.subr.bf16.mxu1 %v2012_v15 }
  0xbb   : > { %1847 = vmatpush3.bf16.msra.mxu0 %v2011_v14 }
  0xbc   : > { %1879 = vmatpush3.bf16.msra.mxu1 %v2012_v15  ;;  %1848 = vmatprep.subr.bf16.mxu0 %v2013_v16 }
  0xbd   : > { %1880 = vmatprep.subr.bf16.mxu1 %v2014_v17 }
  0xbf   : > { %1849 = vmatpush3.bf16.msra.mxu0 %v2013_v16 }
  0xc0   : > { %1881 = vmatpush3.bf16.msra.mxu1 %v2014_v17 }
  0xc2   : > { %1851 = vmatmul.mubr.bf16.vlgmr.msra.gmra.mrb[0].mxu0 %v2017_v18 }
  0xc3   : > { %1883 = vmatmul.mubr.bf16.vlgmr.msra.gmra.mrb[0].mxu1 %v2018_v19  ;;  %1854 = vmatprep.mubr.bf16.mxu0 %v2019_v20 }
  0xc4   : > { %1886 = vmatprep.mubr.bf16.mxu1 %v2020_v21 }
  0xca   : > { %1855 = vmatmul.mubr.bf16.gmra.mrb[4].mxu0 %v2021_v22 }
  0xcb   : > { %1887 = vmatmul.mubr.bf16.gmra.mrb[4].mxu1 %v2022_v23  ;;  %1858 = vmatprep.mubr.bf16.mxu0 %v2023_v24 }
  0xcc   : > { %1890 = vmatprep.mubr.bf16.mxu1 %v2024_v25 }
  0xd2   : > { %1859 = vmatmul.mubr.bf16.gmra.mrb[8].mxu0 %v2025_v26 }
  0xd3   : > { %1891 = vmatmul.mubr.bf16.gmra.mrb[8].mxu1 %v2026_v27  ;;  %1862 = vmatprep.mubr.bf16.mxu0 %v2027_v28 }
  0xd4   : > { %1894 = vmatprep.mubr.bf16.mxu1 %v2028_v29 }
  0xda   : > { %1863 = vmatmul.mubr.bf16.gmra.mrb[12].mxu0 %v2029_v30 }
  0xdb   : > { %1895 = vmatmul.mubr.bf16.gmra.mrb[12].mxu1 %v2030_v31 }
 0x195   : > { %v1852_v32 = vpop.f32.mrb[0].mxu0 }
 0x196   : > { %v1884_v33 = vpop.f32.mrb[0].mxu1  ;;  %v629_v34 = vpop.f32.mrb[1].mxu0  ;;  %v1101_v50 = vmul.f32 %v1852_v32, %v1852_v32 }
 0x197   : > { %v854_v35 = vpop.f32.mrb[1].mxu1  ;;  %v1853_v36 = vpop.f32.mrb[2].mxu0  ;;  %v1099_v37 = vmul.f32 %v629_v34, %v629_v34  ;;  %v1161_v52 = vmul.f32 %v1884_v33, %v1884_v33 }
 0x198   : > { %v1716_v38 = vpack.c.bf16 %v1853_v36, %v1852_v32  ;;  %v1885_v39 = vpop.f32.mrb[2].mxu1  ;;  %v632_v40 = vpop.f32.mrb[3].mxu0  ;;  %v1159_v41 = vmul.f32 %v854_v35, %v854_v35  ;;  %v1102_v56 = vmul.f32 %v1853_v36, %v1853_v36 }
 0x199   : > { %v1756_v42 = vpack.c.bf16 %v1885_v39, %v1884_v33  ;;  %v1711_v43 = vpack.c.bf16 %v632_v40, %v629_v34  ;;  %v1077_v44 = vadd.f32 %v632_v40, %v629_v34  ;;  %v857_v45 = vpop.f32.mrb[3].mxu1  ;;  %v1100_v46 = vmul.f32 %v632_v40, %v632_v40 }
 0x19a   : > { %1788 = vst [vmem:[%s2701_s15 + $0x8] sm:$0xff] %v1716_v38   ;;  %v1751_v47 = vpack.c.bf16 %v857_v45, %v854_v35  ;;  %v1137_v48 = vadd.f32 %v857_v45, %v854_v35  ;;  %v1160_v49 = vmul.f32 %v857_v45, %v857_v45  ;;  %v1162_v59 = vmul.f32 %v1885_v39, %v1885_v39 }
 0x19b   : > { %1795 = vst [vmem:[%s2705_s24 + $0x8] sm:$0xff] %v1756_v42   ;;  %1712 = vst [vmem:[%s2701_s15] sm:$0xff] %v1711_v43   ;;  %v1078_v51 = vadd.f32 %v1852_v32, %v1077_v44  ;;  %v1115_v53 = vadd.f32 %v1100_v46, %v1099_v37 }
 0x19c   : > { %1752 = vst [vmem:[%s2705_s24] sm:$0xff] %v1751_v47   ;;  %v1138_v54 = vadd.f32 %v1884_v33, %v1137_v48  ;;  %v1175_v55 = vadd.f32 %v1160_v49, %v1159_v41 }
 0x19d   : > { %v1856_v57 = vpop.f32.mrb[4].mxu0  ;;  %v1079_v58 = vadd.f32 %v1853_v36, %v1078_v51  ;;  %v1116_v60 = vadd.f32 %v1115_v53, %v1101_v50 }
 0x19e   : > { %v1176_v61 = vadd.f32 %v1175_v55, %v1161_v52  ;;  %v1888_v62 = vpop.f32.mrb[4].mxu1  ;;  %v645_v63 = vpop.f32.mrb[5].mxu0  ;;  %v1139_v0 = vadd.f32 %v1885_v39, %v1138_v54  ;;  %v1105_v22 = vmul.f32 %v1856_v57, %v1856_v57 }
 0x19f   : > { %v1080_v1 = vadd.f32 %v1079_v58, %v645_v63  ;;  %v1103_v2 = vmul.f32 %v645_v63, %v645_v63  ;;  %v870_v3 = vpop.f32.mrb[5].mxu1  ;;  %v1857_v4 = vpop.f32.mrb[6].mxu0  ;;  %v1117_v5 = vadd.f32 %v1116_v60, %v1102_v56  ;;  %v1165_v24 = vmul.f32 %v1888_v62, %v1888_v62 }
 0x1a0   : > { %v1140_v6 = vadd.f32 %v1139_v0, %v870_v3  ;;  %v1163_v7 = vmul.f32 %v870_v3, %v870_v3  ;;  %v1177_v8 = vadd.f32 %v1176_v61, %v1162_v59  ;;  %v1889_v9 = vpop.f32.mrb[6].mxu1  ;;  %v648_v10 = vpop.f32.mrb[7].mxu0  ;;  %v1726_v11 = vpack.c.bf16 %v1857_v4, %v1856_v57 }
 0x1a1   : > { %v1766_v12 = vpack.c.bf16 %v1889_v9, %v1888_v62  ;;  %v873_v13 = vpop.f32.mrb[7].mxu1  ;;  %v1118_v14 = vadd.f32 %v1117_v5, %v1103_v2  ;;  %v1721_v16 = vpack.c.bf16 %v648_v10, %v645_v63  ;;  %v1081_v17 = vadd.f32 %v1080_v1, %v648_v10 }
 0x1a2   : > { %v1178_v15 = vadd.f32 %v1177_v8, %v1163_v7  ;;  %1790 = vst [vmem:[%s2701_s15 + $0x18] sm:$0xff] %v1726_v11   ;;  %v1104_v18 = vmul.f32 %v648_v10, %v648_v10  ;;  %v1761_v19 = vpack.c.bf16 %v873_v13, %v870_v3  ;;  %v1141_v20 = vadd.f32 %v1140_v6, %v873_v13 }
 0x1a3   : > { %1797 = vst [vmem:[%s2705_s24 + $0x18] sm:$0xff] %v1766_v12   ;;  %v1164_v21 = vmul.f32 %v873_v13, %v873_v13  ;;  %1789 = vst [vmem:[%s2701_s15 + $0x10] sm:$0xff] %v1721_v16   ;;  %v1082_v23 = vadd.f32 %v1856_v57, %v1081_v17  ;;  %v1106_v29 = vmul.f32 %v1857_v4, %v1857_v4 }
 0x1a4   : > { %v1119_v25 = vadd.f32 %v1118_v14, %v1104_v18  ;;  %1796 = vst [vmem:[%s2705_s24 + $0x10] sm:$0xff] %v1761_v19   ;;  %v1142_v26 = vadd.f32 %v1888_v62, %v1141_v20  ;;  %v1166_v33 = vmul.f32 %v1889_v9, %v1889_v9 }
 0x1a5   : > { %v1179_v27 = vadd.f32 %v1178_v15, %v1164_v21  ;;  %v1860_v28 = vpop.f32.mrb[8].mxu0  ;;  %v1083_v32 = vadd.f32 %v1857_v4, %v1082_v23 }
 0x1a6   : > { %v1892_v30 = vpop.f32.mrb[8].mxu1  ;;  %v661_v31 = vpop.f32.mrb[9].mxu0  ;;  %v1120_v34 = vadd.f32 %v1119_v25, %v1105_v22  ;;  %v1143_v40 = vadd.f32 %v1889_v9, %v1142_v26  ;;  %v1109_v59 = vmul.f32 %v1860_v28, %v1860_v28 }
 0x1a7   : > { %v1180_v35 = vadd.f32 %v1179_v27, %v1165_v24  ;;  %v1107_v36 = vmul.f32 %v661_v31, %v661_v31  ;;  %v886_v37 = vpop.f32.mrb[9].mxu1  ;;  %v1861_v38 = vpop.f32.mrb[10].mxu0  ;;  %v1084_v39 = vadd.f32 %v1083_v32, %v661_v31  ;;  %v1169_v62 = vmul.f32 %v1892_v30, %v1892_v30 }
 0x1a8   : > { %v1167_v41 = vmul.f32 %v886_v37, %v886_v37  ;;  %v1736_v42 = vpack.c.bf16 %v1861_v38, %v1860_v28  ;;  %v1893_v43 = vpop.f32.mrb[10].mxu1  ;;  %v664_v44 = vpop.f32.mrb[11].mxu0  ;;  %v1121_v45 = vadd.f32 %v1120_v34, %v1106_v29  ;;  %v1144_v49 = vadd.f32 %v1143_v40, %v886_v37 }
 0x1a9   : > { %v1181_v46 = vadd.f32 %v1180_v35, %v1166_v33  ;;  %v1776_v47 = vpack.c.bf16 %v1893_v43, %v1892_v30  ;;  %v889_v48 = vpop.f32.mrb[11].mxu1  ;;  %v1731_v50 = vpack.c.bf16 %v664_v44, %v661_v31  ;;  %v1085_v51 = vadd.f32 %v1084_v39, %v664_v44 }
 0x1aa   : > { %1792 = vst [vmem:[%s2701_s15 + $0x28] sm:$0xff] %v1736_v42   ;;  %v1122_v52 = vadd.f32 %v1121_v45, %v1107_v36  ;;  %v1108_v54 = vmul.f32 %v664_v44, %v664_v44  ;;  %v1771_v55 = vpack.c.bf16 %v889_v48, %v886_v37  ;;  %v1145_v57 = vadd.f32 %v1144_v49, %v889_v48 }
 0x1ab   : > { %v1182_v53 = vadd.f32 %v1181_v46, %v1167_v41  ;;  %1799 = vst [vmem:[%s2705_s24 + $0x28] sm:$0xff] %v1776_v47   ;;  %1791 = vst [vmem:[%s2701_s15 + $0x20] sm:$0xff] %v1731_v50   ;;  %v1086_v56 = vadd.f32 %v1860_v28, %v1085_v51  ;;  %v1168_v58 = vmul.f32 %v889_v48, %v889_v48 }
 0x1ac   : > { %v1123_v60 = vadd.f32 %v1122_v52, %v1108_v54  ;;  %1798 = vst [vmem:[%s2705_s24 + $0x20] sm:$0xff] %v1771_v55   ;;  %v1146_v63 = vadd.f32 %v1892_v30, %v1145_v57  ;;  %v1110_v4 = vmul.f32 %v1861_v38, %v1861_v38  ;;  %v1170_v5 = vmul.f32 %v1893_v43, %v1893_v43 }
 0x1ad   : > { %v1864_v61 = vpop.f32.mrb[12].mxu0  ;;  %v1183_v0 = vadd.f32 %v1182_v53, %v1168_v58  ;;  %v1087_v3 = vadd.f32 %v1861_v38, %v1086_v56 }
 0x1ae   : > { %v2719_v1 = vpop.f32.mrb[12].mxu1  ;;  %v677_v2 = vpop.f32.mrb[13].mxu0  ;;  %v1124_v6 = vadd.f32 %v1123_v60, %v1109_v59  ;;  %v1147_v12 = vadd.f32 %v1893_v43, %v1146_v63  ;;  %v2751_v30 = vmul.f32 %v1864_v61, %v1864_v61 }
 0x1af   : > { %v1111_v7 = vmul.f32 %v677_v2, %v677_v2  ;;  %v902_v8 = vpop.f32.mrb[13].mxu1  ;;  %v2722_v9 = vpop.f32.mrb[14].mxu0  ;;  %v1184_v10 = vadd.f32 %v1183_v0, %v1169_v62  ;;  %v1088_v11 = vadd.f32 %v1087_v3, %v677_v2 }
 0x1b0   : > { %v1171_v13 = vmul.f32 %v902_v8, %v902_v8  ;;  %v2725_v14 = vpop.f32.mrb[14].mxu1  ;;  %v680_v15 = vpop.f32.mrb[15].mxu0  ;;  %v1125_v16 = vadd.f32 %v1124_v6, %v1110_v4  ;;  %v1746_v17 = vpack.c.bf16 %v2722_v9, %v1864_v61  ;;  %v1148_v20 = vadd.f32 %v1147_v12, %v902_v8 }
 0x1b1   : > { %v1786_v18 = vpack.c.bf16 %v2725_v14, %v2719_v1  ;;  %v905_v19 = vpop.f32.mrb[15].mxu1  ;;  %v1185_v21 = vadd.f32 %v1184_v10, %v1170_v5  ;;  %v1741_v22 = vpack.c.bf16 %v680_v15, %v677_v2  ;;  %v1089_v24 = vadd.f32 %v1088_v11, %v680_v15 }
 0x1b2   : > { %v1126_v23 = vadd.f32 %v1125_v16, %v1111_v7  ;;  %1794 = vst [vmem:[%s2701_s15 + $0x38] sm:$0xff] %v1746_v17   ;;  %v1112_v25 = vmul.f32 %v680_v15, %v680_v15  ;;  %v1781_v26 = vpack.c.bf16 %v905_v19, %v902_v8  ;;  %v1149_v28 = vadd.f32 %v1148_v20, %v905_v19 }
 0x1b3   : > { %1801 = vst [vmem:[%s2705_s24 + $0x38] sm:$0xff] %v1786_v18   ;;  %v1186_v27 = vadd.f32 %v1185_v21, %v1171_v13  ;;  %1793 = vst [vmem:[%s2701_s15 + $0x30] sm:$0xff] %v1741_v22   ;;  %v1172_v29 = vmul.f32 %v905_v19, %v905_v19  ;;  %v2753_v31 = vadd.f32 %v1864_v61, %v1089_v24 }
 0x1b4   : > { %v2755_v32 = vadd.f32 %v1126_v23, %v1112_v25  ;;  %1800 = vst [vmem:[%s2705_s24 + $0x30] sm:$0xff] %v1781_v26  }
 0x1b5   : > { %2160 = shalt.err (!%p2157_p11)
}
 0x1b6   : > { %s2161_s8 = scalar_lea.hbm %s2733_s20, 1024  ;;  %s2165_s15 = scalar_lea.hbm %s2996_s4, 4096 }
 0x1b7   : > { %p2162_p6 = scmp.ne.s32.totalorder %s2733_s20, %s2161_s8  ;;  %p2166_p7 = scmp.lt.u32.totalorder %s2733_s20, %s2996_s4 }
 0x1b8   : > { %p2167_p1 = scmp.lt.u32.totalorder %s2165_s15, %s2161_s8  ;;  %p2169_p10 = scmp.lt.u32.totalorder %s2161_s8, %s2733_s20 }
 0x1b9   : > { %p2163_p3 = pnand %p2162_p6, %p3057_p4 }
 0x1ba   : > { %p2168_p2 = por %p2167_p1, %p2166_p7 }
 0x1bb   : > { %p2164_p9 = pneg %p2163_p3 }
 0x1bc   : > { %p2170_p12 = por %p2169_p10, %p2168_p2 }
 0x1be   : > { %p2171_p13 = pnand %p2170_p12, %p2164_p9 }
 0x1c0   : > { %2174 = shalt.err (!%p2171_p13)
}
 0x1c1   : > { %s2386_s21 = smov 64   ;;  %s2387_s11 = smov 4   ;;  %v1173_v33 = vmul.f32 %v2719_v1, %v2719_v1  ;;  %v1150_v34 = vadd.f32 %v2719_v1, %v1149_v28  ;;  %v1187_v35 = vadd.f32 %v1186_v27, %v1172_v29 }
 0x1c2   : > { %1910 = dma.vmem_to_hbm [thread:$0]  (%p3057_p4), %s2737_s30, 1024, %s2733_s20, %s1198_s29, %s2386_s21, %s2386_s21, %s2387_s11  }
 0x1c3   : > { %s1203_s14 = scalar_lea.sflag [#allocation11], %s2653_s18  ;;  %s2175_s22 = scalar_lea.vmem %s2748_s25, 1024 }
 0x1c4   : > { %p2176_p5 = scmp.ne.s32.totalorder %s2748_s25, %s2175_s22  ;;  %s2388_s1 = smov [#allocation10]  }
 0x1c5   : > { %s2179_s19 = sshll.u32 %s2388_s1, 4  ;;  %s2180_s19 = int_to_ptr.vmem [resolvable:$false] %s2179_s19 }
 0x1c6   : > { %p2177_p0 = pnand %p2176_p5, %p3057_p4  ;;  %s2181_s23 = scalar_lea.vmem %s2180_s19, 2048 }
 0x1c7   : > { %p2182_p11 = scmp.lt.s32.totalorder %s2748_s25, %s2180_s19  ;;  %p2183_p6 = scmp.lt.s32.totalorder %s2181_s23, %s2175_s22 }
 0x1c8   : > { %p2178_p8 = pneg %p2177_p0 }
 0x1c9   : > { %p2184_p3 = por %p2183_p6, %p2182_p11 }
 0x1cb   : > { %p2185_p9 = pnand %p2184_p3, %p2178_p8 }
 0x1cd   : > { %2188 = shalt.err (!%p2185_p9)
}
 0x1ce   : > { %s2189_s30 = scalar_lea.hbm %s2744_s16, 1024  ;;  %s2193_s26 = scalar_lea.hbm %s2997_s5, 4096 }
 0x1cf   : > { %p2190_p7 = scmp.ne.s32.totalorder %s2744_s16, %s2189_s30  ;;  %p2194_p10 = scmp.lt.u32.totalorder %s2744_s16, %s2997_s5 }
 0x1d0   : > { %p2195_p12 = scmp.lt.u32.totalorder %s2193_s26, %s2189_s30  ;;  %p2197_p5 = scmp.lt.u32.totalorder %s2189_s30, %s2744_s16 }
 0x1d1   : > { %p2191_p1 = pnand %p2190_p7, %p3057_p4 }
 0x1d2   : > { %p2196_p13 = por %p2195_p12, %p2194_p10 }
 0x1d3   : > { %p2192_p2 = pneg %p2191_p1 }
 0x1d4   : > { %p2198_p0 = por %p2197_p5, %p2196_p13 }
 0x1d6   : > { %p2199_p8 = pnand %p2198_p0, %p2192_p2 }
 0x1d8   : > { %2202 = shalt.err (!%p2199_p8)
}
 0x1d9   : > { %1911 = dma.vmem_to_hbm [thread:$0]  (%p3057_p4), %s2748_s25, 1024, %s2744_s16, %s1203_s14, %s2386_s21, %s2386_s21, %s2387_s11   ;;  %v1114_v36 = vmul.f32 %v2722_v9, %v2722_v9  ;;  %v1091_v37 = vadd.f32 %v2722_v9, %v2753_v31  ;;  %v1128_v38 = vadd.f32 %v2755_v32, %v2751_v30  ;;  %v1174_v39 = vmul.f32 %v2725_v14, %v2725_v14 }
 0x1da   : > { %v1151_v40 = vadd.f32 %v2725_v14, %v1150_v34  ;;  %v1188_v41 = vadd.f32 %v1187_v35, %v1173_v33  ;;  %s2825_s17 = sshll.u32 %s2656_s0, 3  ;;  %s2828_s25 = sshll.u32 %s2464_s13, 7 }
 0x1db   : > { %v1092_v42 = vrot.slane %v1091_v37, 4  ;;  %v1129_v43 = vadd.f32 %v1128_v38, %v1114_v36  ;;  %s3024_s16 = scalar_lea.vmem [#allocation13], %s2825_s17  ;;  %s2837_s21 = scalar_lea.hbm %s2999_s7, %s2828_s25 }
 0x1dc   : > { %v1152_v44 = vrot.slane %v1151_v40, 4  ;;  %v1189_v45 = vadd.f32 %v1188_v41, %v1174_v39  ;;  %s1281_s15 = sshll.u32 %s3024_s16, 4  ;;  %s440_s13 = scalar_lea.vmem [#allocation12], %s2825_s17  ;;  %s2840_s15 = int_to_ptr.vmem [resolvable:$true] %s1281_s15 }
 0x1dd   : > { %v1093_v46 = vadd.f32 %v1092_v42, %v1091_v37  ;;  %v1130_v47 = vrot.slane %v1129_v43, 4  ;;  %s1268_s11 = sshll.u32 %s440_s13, 4  ;;  %s454_s22 = scalar_lea.vmem [#allocation15], %s2825_s17  ;;  %s2851_s11 = int_to_ptr.vmem [resolvable:$true] %s1268_s11 }
 0x1de   : > { %v1153_v48 = vadd.f32 %v1152_v44, %v1151_v40  ;;  %v1190_v49 = vrot.slane %v1189_v45, 4  ;;  %s1294_s1 = sshll.u32 %s454_s22, 4  ;;  %s2849_s30 = scalar_lea.hbm %s2998_s6, %s2828_s25  ;;  %s2864_s1 = int_to_ptr.vmem [resolvable:$true] %s1294_s1 }
 0x1df   : > { %v1094_v50 = vrot.slane %v1093_v46, 2  ;;  %v1131_v51 = vadd.f32 %v1130_v47, %v1129_v43  ;;  %s3058_s26 = sld [smem:[#allocation33_spill]]  ;;  %s3023_s9 = scalar_lea.vmem [#allocation16], %s2825_s17 }
 0x1e0   : > { %v1154_v52 = vrot.slane %v1153_v48, 2  ;;  %v1191_v53 = vadd.f32 %v1190_v49, %v1189_v45  ;;  %s2862_s24 = sshll.u32 %s3023_s9, 4  ;;  %s2203_s27 = scalar_lea.vmem %s2851_s11, 128  ;;  %s2900_s24 = int_to_ptr.vmem [resolvable:$true] %s2862_s24 }
 0x1e1   : > { %v1095_v54 = vadd.f32 %v1094_v50, %v1093_v46  ;;  %v1132_v55 = vrot.slane %v1131_v51, 2  ;;  %p2204_p11 = scmp.ne.s32.totalorder %s2851_s11, %s2203_s27  ;;  %s2389_s19 = smov [#allocation12]  }
 0x1e2   : > { %v1155_v56 = vadd.f32 %v1154_v52, %v1153_v48  ;;  %v1192_v57 = vrot.slane %v1191_v53, 2  ;;  %s2207_s23 = sshll.u32 %s2389_s19, 4  ;;  %s2208_s23 = int_to_ptr.vmem [resolvable:$false] %s2207_s23 }
 0x1e3   : > { %v1096_v58 = vrot.slane %v1095_v54, 1  ;;  %v1133_v59 = vadd.f32 %v1132_v55, %v1131_v51  ;;  %p2205_p6 = pnand %p2204_p11, %p3057_p4  ;;  %s2209_s20 = scalar_lea.vmem %s2208_s23, 256 }
 0x1e4   : > { %v1156_v60 = vrot.slane %v1155_v56, 1  ;;  %v1193_v61 = vadd.f32 %v1192_v57, %v1191_v53  ;;  %p2210_p9 = scmp.lt.s32.totalorder %s2851_s11, %s2208_s23  ;;  %p2211_p7 = scmp.lt.s32.totalorder %s2209_s20, %s2203_s27 }
 0x1e5   : > { %v1097_v62 = vadd.f32 %v1096_v58, %v1095_v54  ;;  %v1134_v63 = vrot.slane %v1133_v59, 1  ;;  %s2857_s8 = scalar_lea.hbm %s3058_s26, %s2828_s25  ;;  %p2206_p3 = pneg %p2205_p6 }
 0x1e6   : > { %v1157_v0 = vadd.f32 %v1156_v60, %v1155_v56  ;;  %v1194_v1 = vrot.slane %v1193_v61, 1  ;;  %p2212_p1 = por %p2211_p7, %p2210_p9 }
 0x1e7   : > { %v1135_v2 = vadd.f32 %v1134_v63, %v1133_v59  ;;  %1098 = vst [vmem:[%s440_s13] sm:$0xff] %v1097_v62 }
 0x1e8   : > { %p2213_p2 = pnand %p2212_p1, %p2206_p3 }
 0x1ea   : > { %2216 = shalt.err (!%p2213_p2)
}
 0x1eb   : > { %s2217_s13 = scalar_lea.hbm %s2849_s30, 128  ;;  %s2221_s19 = scalar_lea.hbm %s2998_s6, 512 }
 0x1ec   : > { %p2218_p10 = scmp.ne.s32.totalorder %s2849_s30, %s2217_s13  ;;  %p2222_p5 = scmp.lt.u32.totalorder %s2849_s30, %s2998_s6 }
 0x1ed   : > { %p2223_p0 = scmp.lt.u32.totalorder %s2221_s19, %s2217_s13  ;;  %p2225_p11 = scmp.lt.u32.totalorder %s2217_s13, %s2849_s30 }
 0x1ee   : > { %p2219_p12 = pnand %p2218_p10, %p3057_p4 }
 0x1ef   : > { %p2224_p8 = por %p2223_p0, %p2222_p5 }
 0x1f0   : > { %p2220_p13 = pneg %p2219_p12 }
 0x1f1   : > { %p2226_p6 = por %p2225_p11, %p2224_p8 }
 0x1f3   : > { %p2227_p3 = pnand %p2226_p6, %p2220_p13 }
 0x1f5   : > { %2230 = shalt.err (!%p2227_p3)
}
 0x1f6   : > { %1912 = dma.vmem_to_hbm [thread:$0]  (%p3057_p4), %s2851_s11, 128, %s2849_s30, %s1203_s14   ;;  %1158 = vst [vmem:[%s454_s22] sm:$0xff] %v1157_v0  ;;  %v1195_v3 = vadd.f32 %v1194_v1, %v1193_v61 }
 0x1f7   : > { %s3059_s16 = scalar_lea.vmem [#allocation13], %s2825_s17  ;;  %s3060_s20 = sld [smem:[#allocation34_spill]] }
 0x1f8   : > { %1136 = vst [vmem:[%s3059_s16] sm:$0xff] %v1135_v2  ;;  %s1213_s29 = scalar_lea.sflag [#allocation14], %s2653_s18  ;;  %s2231_s19 = scalar_lea.vmem %s2840_s15, 128 }
 0x1f9   : > { %p2232_p9 = scmp.ne.s32.totalorder %s2840_s15, %s2231_s19  ;;  %s2390_s23 = smov [#allocation13]  }
 0x1fa   : > { %s2235_s14 = sshll.u32 %s2390_s23, 4  ;;  %s2236_s14 = int_to_ptr.vmem [resolvable:$false] %s2235_s14 }
 0x1fb   : > { %p2233_p7 = pnand %p2232_p9, %p3057_p4  ;;  %s2237_s11 = scalar_lea.vmem %s2236_s14, 256 }
 0x1fc   : > { %p2238_p2 = scmp.lt.s32.totalorder %s2840_s15, %s2236_s14  ;;  %p2239_p10 = scmp.lt.s32.totalorder %s2237_s11, %s2231_s19 }
 0x1fd   : > { %s2897_s13 = scalar_lea.hbm %s3060_s20, %s2828_s25  ;;  %p2234_p1 = pneg %p2233_p7 }
 0x1fe   : > { %p2240_p12 = por %p2239_p10, %p2238_p2 }
 0x200   : > { %p2241_p13 = pnand %p2240_p12, %p2234_p1 }
 0x202   : > { %2244 = shalt.err (!%p2241_p13)
}
 0x203   : > { %s2245_s25 = scalar_lea.hbm %s2837_s21, 128  ;;  %s2249_s16 = scalar_lea.hbm %s2999_s7, 512 }
 0x204   : > { %p2246_p5 = scmp.ne.s32.totalorder %s2837_s21, %s2245_s25  ;;  %p2250_p11 = scmp.lt.u32.totalorder %s2837_s21, %s2999_s7 }
 0x205   : > { %p2251_p6 = scmp.lt.u32.totalorder %s2249_s16, %s2245_s25  ;;  %p2253_p9 = scmp.lt.u32.totalorder %s2245_s25, %s2837_s21 }
 0x206   : > { %p2247_p0 = pnand %p2246_p5, %p3057_p4 }
 0x207   : > { %p2252_p3 = por %p2251_p6, %p2250_p11 }
 0x208   : > { %p2248_p8 = pneg %p2247_p0 }
 0x209   : > { %p2254_p7 = por %p2253_p9, %p2252_p3 }
 0x20b   : > { %p2255_p1 = pnand %p2254_p7, %p2248_p8 }
 0x20d   : > { %2258 = shalt.err (!%p2255_p1)
}
 0x20e   : > { %1913 = dma.vmem_to_hbm [thread:$0]  (%p3057_p4), %s2840_s15, 128, %s2837_s21, %s1213_s29  }
 0x20f   : > { %s3061_s19 = scalar_lea.vmem [#allocation16], %s2825_s17  ;;  %s2259_s23 = scalar_lea.vmem %s2864_s1, 128 }
 0x210   : > { %1196 = vst [vmem:[%s3061_s19] sm:$0xff] %v1195_v3  ;;  %p2260_p2 = scmp.ne.s32.totalorder %s2864_s1, %s2259_s23  ;;  %s2391_s14 = smov [#allocation15]  }
 0x211   : > { %s2263_s11 = sshll.u32 %s2391_s14, 4  ;;  %s2264_s11 = int_to_ptr.vmem [resolvable:$false] %s2263_s11 }
 0x212   : > { %p2261_p10 = pnand %p2260_p2, %p3057_p4  ;;  %s2265_s25 = scalar_lea.vmem %s2264_s11, 256 }
 0x213   : > { %p2266_p13 = scmp.lt.s32.totalorder %s2864_s1, %s2264_s11  ;;  %p2267_p5 = scmp.lt.s32.totalorder %s2265_s25, %s2259_s23 }
 0x214   : > { %p2262_p12 = pneg %p2261_p10 }
 0x215   : > { %p2268_p0 = por %p2267_p5, %p2266_p13 }
 0x217   : > { %p2269_p8 = pnand %p2268_p0, %p2262_p12 }
 0x219   : > { %2272 = shalt.err (!%p2269_p8)
}
 0x21a   : > { %s2273_s17 = scalar_lea.hbm %s2857_s8, 128  ;;  %s2277_s22 = scalar_lea.hbm %s3058_s26, 512 }
 0x21b   : > { %p2274_p11 = scmp.ne.s32.totalorder %s2857_s8, %s2273_s17  ;;  %p2278_p9 = scmp.lt.u32.totalorder %s2857_s8, %s3058_s26 }
 0x21c   : > { %p2279_p7 = scmp.lt.u32.totalorder %s2277_s22, %s2273_s17  ;;  %p2281_p2 = scmp.lt.u32.totalorder %s2273_s17, %s2857_s8 }
 0x21d   : > { %p2275_p6 = pnand %p2274_p11, %p3057_p4 }
 0x21e   : > { %p2280_p1 = por %p2279_p7, %p2278_p9 }
 0x21f   : > { %p2276_p3 = pneg %p2275_p6 }
 0x220   : > { %p2282_p10 = por %p2281_p2, %p2280_p1 }
 0x222   : > { %p2283_p12 = pnand %p2282_p10, %p2276_p3 }
 0x224   : > { %2286 = shalt.err (!%p2283_p12)
}
 0x225   : > { %1914 = dma.vmem_to_hbm [thread:$0]  (%p3057_p4), %s2864_s1, 128, %s2857_s8, %s1213_s29  }
 0x226   : > { %s1223_s9 = scalar_lea.sflag [#allocation17], %s2656_s0  ;;  %s2287_s27 = scalar_lea.vmem %s2900_s24, 128 }
 0x227   : > { %p2288_p13 = scmp.ne.s32.totalorder %s2900_s24, %s2287_s27  ;;  %s2392_s19 = smov [#allocation16]  }
 0x228   : > { %s2291_s23 = sshll.u32 %s2392_s19, 4  ;;  %s2292_s23 = int_to_ptr.vmem [resolvable:$false] %s2291_s23 }
 0x229   : > { %p2289_p5 = pnand %p2288_p13, %p3057_p4  ;;  %s2293_s14 = scalar_lea.vmem %s2292_s23, 256 }
 0x22a   : > { %p2294_p8 = scmp.lt.s32.totalorder %s2900_s24, %s2292_s23  ;;  %p2295_p11 = scmp.lt.s32.totalorder %s2293_s14, %s2287_s27 }
 0x22b   : > { %p2290_p0 = pneg %p2289_p5 }
 0x22c   : > { %p2296_p6 = por %p2295_p11, %p2294_p8 }
 0x22e   : > { %p2297_p3 = pnand %p2296_p6, %p2290_p0 }
 0x230   : > { %2300 = shalt.err (!%p2297_p3)
}
 0x231   : > { %s2301_s18 = scalar_lea.hbm %s2897_s13, 128  ;;  %s2305_s8 = scalar_lea.hbm %s3060_s20, 512 }
 0x232   : > { %p2302_p9 = scmp.ne.s32.totalorder %s2897_s13, %s2301_s18  ;;  %p2306_p2 = scmp.lt.u32.totalorder %s2897_s13, %s3060_s20 }
 0x233   : > { %p2307_p10 = scmp.lt.u32.totalorder %s2305_s8, %s2301_s18  ;;  %p2309_p13 = scmp.lt.u32.totalorder %s2301_s18, %s2897_s13 }
 0x234   : > { %p2303_p7 = pnand %p2302_p9, %p3057_p4 }
 0x235   : > { %p2308_p12 = por %p2307_p10, %p2306_p2 }
 0x236   : > { %p2304_p1 = pneg %p2303_p7 }
 0x237   : > { %p2310_p5 = por %p2309_p13, %p2308_p12 }
 0x239   : > { %p2311_p0 = pnand %p2310_p5, %p2304_p1 }
 0x23b   : > { %2314 = shalt.err (!%p2311_p0)
}
 0x23c   : > { %1915 = dma.vmem_to_hbm [thread:$0]  (%p3057_p4), %s2900_s24, 128, %s2897_s13, %s1223_s9  }
 0x23d PF: > { %s3062_s25 = sld [smem:[#allocation26_spill]]  ;;  %s3063_s17 = sld [smem:[#allocation28_spill]] }
 0x23e   : > { %p1960_p8 = scmp.ge.s32.totalorder %s2377_s12, 2 }
 0x243   : > { %s1319_s15 = sand.u32 1, %s3062_s25   ;;  %p3064_p11 = scmp.ne.s32.totalorder %s3063_s17, 0 }
 0x244   : > { %s1320_s21 = scalar_lea.sflag [#allocation4], %s1319_s15 }
 0x245   : > { %p1937_p6 = pnand %p1960_p8, %p3064_p11 }
 0x247   : > { %2348 = dma.done.wait (!%p1937_p6), %s1320_s21, 1024  }
 0x248   : > { %2350 = vsyncadd (!%p1937_p6), %s1320_s21, 4294966272  ;;  %s3065_s22 = sadd.s32 4294967294, %s2377_s12  }
 0x249   : > { %s1328_s30 = sand.u32 1, %s3065_s22  }
 0x24a   : > { %s1329_s16 = scalar_lea.sflag [#allocation11], %s1328_s30 }
 0x24b   : > { %2352 = dma.done.wait (!%p1937_p6), %s1329_s16, 1152  }
 0x24c   : > { %2354 = vsyncadd (!%p1937_p6), %s1329_s16, 4294966144  ;;  %s1347_s28 = scalar_lea.sflag [#allocation14], %s1328_s30 }
 0x24d   : > { %2356 = dma.done.wait (!%p1937_p6), %s1347_s28, 256  }
 0x24e   : > { %2358 = vsyncadd (!%p1937_p6), %s1347_s28, 4294967040  ;;  %s1365_s24 = scalar_lea.sflag [#allocation17], %s1319_s15 }
 0x24f   : > { %2360 = dma.done.wait (!%p1937_p6), %s1365_s24, 128  }
 0x250   : > { %2362 = vsyncadd (!%p1937_p6), %s1365_s24, 4294967168  ;;  %s3066_s12 = sld [smem:[#allocation29_spill]]  ;;  %s3067_s13 = sld [smem:[#allocation27_spill]] }
 0x251   : > { %s3068_s11 = sld [smem:[#allocation30_spill]]  ;;  %s3069_s30 = smov %s2369_s10 }
 0x256   : > { %p33_p4 = scmp.ge.s32.totalorder %s3066_s12, 6   ;;  %s3070_s10 = smov %s3067_s13 }
 0x258   :  { %35 = sbr.rel (!%p33_p4) target bundleno = 17 (0x11), region = 181 }
 0x25f   :  { %1370 = vsyncpa [#allocation3], 1 }
 0x260   :  { %1372 = vsyncpa [#allocation3 + $0x1], 1 }
 0x261   :  { %1373 = vsyncpa [#allocation6], 1 }
 0x262   :  { %1374 = vsyncpa [#allocation4], 1 }
 0x263   :  { %1376 = vsyncpa [#allocation4 + $0x1], 1 }
 0x264   :  { %1377 = vsyncpa [#allocation11], 1 }
 0x265   :  { %1379 = vsyncpa [#allocation11 + $0x1], 1 }
 0x266   :  { %1380 = vsyncpa [#allocation14], 1 }
 0x267   :  { %1382 = vsyncpa [#allocation14 + $0x1], 1 }
 0x268   :  { %1383 = vsyncpa [#allocation17], 1 }
 0x269   :  { %1385 = vsyncpa [#allocation17 + $0x1], 1 }

</bundles_post_ra>
